<compile_context>
chip_gen: v5e
topology: v5e:2x2
jax: 0.10.0
libtpu: 0.0.40
codegen_flags: <defaults>
</compile_context>

<pallas_src>
import functools

import jax
import jax.numpy as jnp
from jax.experimental import pallas as pl
from jax.experimental.pallas import tpu as pltpu

BN_EPS = 1e-5


def _round_up(n, m):
    return ((n + m - 1) // m) * m


# ---------------------------------------------------------------------------
# Generation-aware tiling configuration
# ---------------------------------------------------------------------------
def _hw_vmem_bytes():
    """Best-effort VMEM capacity query; falls back to the v7x-conservative 64 MiB."""
    try:
        return int(pltpu.get_tpu_info().vmem_capacity_bytes)
    except Exception:
        return 64 * 1024 * 1024


def _tiling_config():
    vmem = _hw_vmem_bytes()
    if vmem >= 96 * 1024 * 1024:
        # v5e / v6e: 128 MiB physical VMEM -> large tiles, fewer grid steps,
        # longer DMA runs on the bound HBM stream.
        return dict(vmem_budget=64 * 1024 * 1024,
                    vmem_limit=96 * 1024 * 1024,
                    max_tile=16384,
                    prefer_even=False)
    # v7x: 64 MiB per TensorCore -> conservative budget, prefer an even number
    # of grid steps so the 2 TensorCores stay balanced.
    return dict(vmem_budget=24 * 1024 * 1024,
                vmem_limit=48 * 1024 * 1024,
                max_tile=8192,
                prefer_even=True)


# ---------------------------------------------------------------------------
# Fused stack of the small hidden blocks (one pallas_call, activation resident)
# ---------------------------------------------------------------------------
def _fused_hidden_stack_kernel(*refs, n_blocks):
    """refs = (x, w_0, gb_0, ..., w_{n-1}, gb_{n-1}, out).

    Each block: h = ReLU(BN(h @ W)); W is (in, out) bf16, gb is (2, out) f32
    holding [gamma; beta].  Bias is omitted (cancels under batch-stat BN).
    """
    x_ref = refs[0]
    o_ref = refs[-1]
    h = x_ref[...].astype(jnp.float32)
    for i in range(n_blocks):
        w_ref = refs[1 + 2 * i]
        gb_ref = refs[2 + 2 * i]
        y = jnp.dot(h.astype(jnp.bfloat16), w_ref[...],
                    preferred_element_type=jnp.float32)
        mean = jnp.mean(y, axis=0, keepdims=True)
        var = jnp.mean((y - mean) ** 2, axis=0, keepdims=True)
        # gamma folded into the normalization scale (single (1,N) vector).
        scale = gb_ref[0:1, :] * jax.lax.rsqrt(var + BN_EPS)
        h = jnp.maximum((y - mean) * scale + gb_ref[1:2, :], 0.0)
    o_ref[...] = h.astype(o_ref.dtype)


def fused_hidden_stack(x, blocks):
    """x: (B, z_dim) f32; blocks: list of (W (in,out) bf16, gamma_beta (2,out) f32).

    All hidden-layer weights together are << 2 MiB, so everything is placed in
    VMEM as whole arrays (no grid).  Output is bf16 so the downstream tiled
    kernel never re-casts the resident activations.
    """
    B = x.shape[0]
    n_out = blocks[-1][0].shape[1]
    operands = [x]
    for w, gb in blocks:
        operands += [w, gb]
    kernel = functools.partial(_fused_hidden_stack_kernel, n_blocks=len(blocks))
    return pl.pallas_call(
        kernel,
        out_shape=jax.ShapeDtypeStruct((B, n_out), jnp.bfloat16),
        compiler_params=pltpu.CompilerParams(
            vmem_limit_bytes=32 * 1024 * 1024),
    )(*operands)


# ---------------------------------------------------------------------------
# Single (large) genBlock, tiled over the output-feature axis
# ---------------------------------------------------------------------------
def _fused_linear_bn_act_kernel(x_ref, w_ref, gb_ref, o_ref, *, apply_sigmoid):
    """y = act(BN(x @ W)) for one output-feature tile.

    x_ref:  (B, K)        full batch / input features (resident, bf16)
    w_ref:  (K, Ntile)    weight tile (int8 or bf16), tile-contiguous in HBM
    gb_ref: (2, Ntile)    packed [gamma; beta] (f32)
    o_ref:  (B, Ntile)    f32 output tile

    BN uses biased batch statistics (training mode) which are per-feature, so
    tiling the feature axis is exact.  The Linear bias cancels exactly, and
    any per-output-channel weight scale (int8 quantization scale) cancels too.
    """
    x = x_ref[...]
    if x.dtype != jnp.bfloat16:
        x = x.astype(jnp.bfloat16)
    w = w_ref[...]
    if jnp.issubdtype(w.dtype, jnp.integer):
        w = w.astype(jnp.float32).astype(jnp.bfloat16)   # int8 values exact in bf16
    elif w.dtype != jnp.bfloat16:
        w = w.astype(jnp.bfloat16)
    y = jnp.dot(x, w, preferred_element_type=jnp.float32)
    mean = jnp.mean(y, axis=0, keepdims=True)
    var = jnp.mean((y - mean) ** 2, axis=0, keepdims=True)
    scale = gb_ref[0:1, :] * jax.lax.rsqrt(var + BN_EPS)   # gamma folded in
    z = (y - mean) * scale + gb_ref[1:2, :]
    z = jnp.maximum(z, 0.0)                                # ReLU
    if apply_sigmoid:                                      # final nn.Sigmoid
        z = jax.nn.sigmoid(z)
    o_ref[...] = z.astype(o_ref.dtype)


def _pick_feature_tile(K, N, batch, *, w_bytes, quantized, vmem_budget,
                       max_tile, min_grid=2, prefer_even=False):
    """Largest multiple of 128 dividing N that fits the VMEM budget.

    Accounts for: double-buffered W tile, the in-kernel bf16 dequant buffer
    (when the weight is quantized), double-buffered f32 output tile, the
    resident bf16 activations and the double-buffered gamma/beta tile.
    Prefers tiles that leave >= min_grid steps (and, optionally, an even
    number of steps for v7x's 2 TensorCores).  Never returns a block that
    does not fit; raises instead of silently VMEM-OOMing.
    """
    def need(t):
        b = 2 * K * t * w_bytes            # double-buffered W tile stream
        if quantized:
            b += K * t * 2                 # bf16 dequant buffer (MXU operand)
        b += 2 * batch * t * 4             # double-buffered f32 output tile
        b += batch * K * 2                 # resident bf16 activations
        b += 2 * 2 * t * 4                 # double-buffered gamma/beta tile
        return b

    if N % 128 != 0:
        if need(N) <= vmem_budget:
            return N                       # tiny / odd feature dim: one block
        # TODO(synk): pad o_dim to a multiple of 128 for large non-aligned N.
        raise ValueError(
            f"o_dim={N} is not a multiple of 128 and a single full-feature "
            f"block does not fit the {vmem_budget} byte VMEM budget")

    cands = [t for t in range(128, min(N, max_tile) + 1, 128)
             if N % t == 0 and need(t) <= vmem_budget]
    if not cands:
        raise ValueError(
            f"no feature tile fits the {vmem_budget} byte VMEM budget for "
            f"K={K}, N={N}, batch={batch}")
    pref = [t for t in cands if N // t >= min_grid]
    pool = pref if pref else cands
    if prefer_even:
        even = [t for t in pool if (N // t) % 2 == 0]
        if even:
            pool = even
    return max(pool)


def fused_gen_block(x, w_blocked, gamma_beta, *, apply_sigmoid=False,
                    vmem_limit_bytes=48 * 1024 * 1024):
    """x: (B, K) bf16; w_blocked: (N//n_tile, K, n_tile) int8/bf16 (tile-contiguous);
    gamma_beta: (2, N) f32."""
    B, K = x.shape
    nb, K2, n_tile = w_blocked.shape
    assert K == K2
    N = nb * n_tile
    assert gamma_beta.shape == (2, N)

    kernel = functools.partial(_fused_linear_bn_act_kernel,
                               apply_sigmoid=apply_sigmoid)
    w_bytes = jnp.dtype(w_blocked.dtype).itemsize
    cost = pl.CostEstimate(
        flops=2 * B * K * N,
        transcendentals=(B * N) if apply_sigmoid else 0,
        bytes_accessed=(w_blocked.size * w_bytes
                        + x.size * jnp.dtype(x.dtype).itemsize
                        + B * N * 4 + 2 * N * 4),
    )

    return pl.pallas_call(
        kernel,
        out_shape=jax.ShapeDtypeStruct((B, N), jnp.float32),
        grid_spec=pltpu.PrefetchScalarGridSpec(
            num_scalar_prefetch=0,
            grid=(nb,),
            in_specs=[
                # resident activations (same block every step)
                pl.BlockSpec((B, K), lambda j: (0, 0)),
                # tile-contiguous W: one long linear DMA per grid step
                pl.BlockSpec((pl.Squeezed(), K, n_tile), lambda j: (j, 0, 0)),
                # packed [gamma; beta] tile
                pl.BlockSpec((2, n_tile), lambda j: (0, j)),
            ],
            out_specs=pl.BlockSpec((B, n_tile), lambda j: (0, j)),
        ),
        compiler_params=pltpu.CompilerParams(
            dimension_semantics=("parallel",),
            vmem_limit_bytes=vmem_limit_bytes),
        cost_estimate=cost,
    )(x, w_blocked, gamma_beta)


# ---------------------------------------------------------------------------
# Parameters & forward
# ---------------------------------------------------------------------------
def init_generator_params(key, z_dim=64, h_dim=120, o_dim=1024):
    """PyTorch-layout synthetic parameters: (W (out,in), b, gamma, beta) per block."""
    dims = [z_dim, h_dim, h_dim * 2, h_dim * 4, h_dim * 8, o_dim]
    params = []
    for i in range(5):
        key, kw, kb, kg, kbe = jax.random.split(key, 5)
        fan_in, fan_out = dims[i], dims[i + 1]
        w = jax.random.normal(kw, (fan_out, fan_in), jnp.float32) * 0.05
        b = jax.random.normal(kb, (fan_out,), jnp.float32) * 0.01
        gamma = 1.0 + 0.1 * jax.random.normal(kg, (fan_out,), jnp.float32)
        beta = 0.1 * jax.random.normal(kbe, (fan_out,), jnp.float32)
        params.append((w, b, gamma, beta))
    return params


def quantize_int8_per_channel(w):
    """w: (K, N) f32 -> (int8 (K, N), per-output-channel scale (N,)).

    The per-channel scale cancels exactly under training-mode BatchNorm
    (scaling column j of y rescales its mean and std identically), so the
    kernel never needs it — only int8 rounding error remains."""
    s = jnp.maximum(jnp.max(jnp.abs(w), axis=0, keepdims=True) / 127.0, 1e-8)
    q = jnp.clip(jnp.round(w / s), -127, 127).astype(jnp.int8)
    return q, s[0]


def prepare_params(torch_params, *, weight_quant="int8", batch_hint=128):
    """One-time parameter prep from PyTorch-layout (W (out,in), b, gamma, beta).

    * Hidden blocks: W pre-transposed to (in, out) bf16, intermediate feature
      dims zero-padded to multiples of 128 (exact — padded features stay 0 and
      feed zero weights), gamma/beta packed into one (2, out) f32 array.
    * Final block: W pre-transposed, optionally per-output-channel int8
      quantized (scale cancels under training-mode BN), then pre-blocked into
      a tile-contiguous (N//n_tile, K, n_tile) HBM layout; n_tile is chosen
      from the detected VMEM capacity.
    * The Linear bias is dropped everywhere — exact for training-mode BN only.
    """
    assert weight_quant in ("int8", "bf16")
    cfg = _tiling_config()

    n_blocks = len(torch_params)
    hidden = []
    prev_out = torch_params[0][0].shape[1]               # z_dim (left unpadded)
    for i in range(n_blocks - 1):
        w, _b, gamma, beta = torch_params[i]
        out_n, in_n = w.shape
        # Pad intermediate widths to lane multiples; never pad the final K.
        out_pad = out_n if i == n_blocks - 2 else _round_up(out_n, 128)
        w_t = jnp.zeros((prev_out, out_pad), jnp.float32)
        w_t = w_t.at[:in_n, :out_n].set(jnp.asarray(w, jnp.float32).T)
        gb = jnp.zeros((2, out_pad), jnp.float32)
        gb = gb.at[0].set(1.0)                            # padded gamma: inert
        gb = gb.at[0, :out_n].set(jnp.asarray(gamma, jnp.float32))
        gb = gb.at[1, :out_n].set(jnp.asarray(beta, jnp.float32))
        hidden.append((w_t.astype(jnp.bfloat16), gb))
        prev_out = out_pad

    w, _b, gamma, beta = torch_params[-1]
    N, K = w.shape
    assert K == prev_out, "final-layer input width must stay unpadded"
    w_t = jnp.asarray(w, jnp.float32).T                   # (K, N)
    if weight_quant == "int8":
        w_store, _scale = quantize_int8_per_channel(w_t)
        w_bytes, quantized = 1, True
    else:
        w_store = w_t.astype(jnp.bfloat16)
        w_bytes, quantized = 2, False

    n_tile = _pick_feature_tile(
        K, N, batch_hint, w_bytes=w_bytes, quantized=quantized,
        vmem_budget=cfg["vmem_budget"], max_tile=cfg["max_tile"],
        prefer_even=cfg["prefer_even"])
    nb = N // n_tile
    # Tile-contiguous HBM layout: each grid step streams one linear slab.
    w_blocked = w_store.reshape(K, nb, n_tile).transpose(1, 0, 2)
    gb_last = jnp.stack([jnp.asarray(gamma, jnp.float32),
                         jnp.asarray(beta, jnp.float32)])

    return dict(
        hidden=hidden,
        final=dict(w=w_blocked, gb=gb_last, n_tile=n_tile,
                   vmem_limit=cfg["vmem_limit"]),
    )


def generator_forward(noise, prepared_params):
    """Equivalent of Generator.forward(noise) in training mode."""
    h = fused_hidden_stack(noise.astype(jnp.float32), prepared_params["hidden"])
    f = prepared_params["final"]
    return fused_gen_block(h, f["w"], f["gb"], apply_sigmoid=True,
                           vmem_limit_bytes=f["vmem_limit"])


def _reference_forward(noise, torch_params):
    """Pure-JAX f32 reference (training-mode BN, with the Linear bias)."""
    x = noise.astype(jnp.float32)
    n = len(torch_params)
    for i, (w, b, gamma, beta) in enumerate(torch_params):
        y = x @ w.T + b
        mean = jnp.mean(y, axis=0, keepdims=True)
        var = jnp.mean((y - mean) ** 2, axis=0, keepdims=True)
        y = (y - mean) / jnp.sqrt(var + BN_EPS) * gamma + beta
        x = jnp.maximum(y, 0.0)
        if i == n - 1:
            x = jax.nn.sigmoid(x)
    return x


if __name__ == "__main__":
    # Small shapes consistent with the module: batch=8, z_dim=64, h_dim=120
    # (module default), o_dim=1024 (the default 262144 is just a larger feature
    # count handled by the same feature-tiled last-layer kernel).
    key = jax.random.PRNGKey(0)
    k_noise, k_params = jax.random.split(key)

    B, Z, H, O = 8, 64, 120, 1024
    noise = jax.random.normal(k_noise, (B, Z), jnp.float32)
    torch_params = init_generator_params(k_params, z_dim=Z, h_dim=H, o_dim=O)
    params = prepare_params(torch_params, weight_quant="int8", batch_hint=B)

    out = jax.block_until_ready(generator_forward(noise, params))
    assert out.shape == (B, O)

    # Reference 1: pure-JAX f32 with the final W replaced by its dequantized
    # int8 values -> isolates kernel correctness from int8 quantization error.
    w_last = jnp.asarray(torch_params[-1][0], jnp.float32)
    w_q, s = quantize_int8_per_channel(w_last.T)
    w_deq = (w_q.astype(jnp.float32) * s[None, :]).T
    deq_params = list(torch_params[:-1]) + [
        (w_deq, torch_params[-1][1], torch_params[-1][2], torch_params[-1][3])]
    ref_deq = _reference_forward(noise, deq_params)
    assert jnp.allclose(out, ref_deq, atol=2e-2, rtol=2e-2), \
        "kernel mismatch vs dequantized-weight reference"

    # Reference 2: fully f32 reference (additionally includes the int8
    # weight-quantization error of the final layer; its per-channel scale
    # cancels exactly under batch-statistics BatchNorm).
    ref = _reference_forward(noise, torch_params)
    assert jnp.allclose(out, ref, atol=5e-2, rtol=5e-2), \
        "mismatch vs full-precision reference"

    print("KERNEL_OK")
</pallas_src>

<mosaic_0001>
module attributes {stable_mosaic.version = 11 : i64} {
  func.func @_fused_hidden_stack_kernel(%arg0: memref<8x64xf32, #tpu.memory_space<vmem>>, %arg1: memref<64x128xbf16, #tpu.memory_space<vmem>>, %arg2: memref<2x128xf32, #tpu.memory_space<vmem>>, %arg3: memref<128x256xbf16, #tpu.memory_space<vmem>>, %arg4: memref<2x256xf32, #tpu.memory_space<vmem>>, %arg5: memref<256x512xbf16, #tpu.memory_space<vmem>>, %arg6: memref<2x512xf32, #tpu.memory_space<vmem>>, %arg7: memref<512x960xbf16, #tpu.memory_space<vmem>>, %arg8: memref<2x960xf32, #tpu.memory_space<vmem>>, %arg9: memref<8x960xbf16, #tpu.memory_space<vmem>>) attributes {dimension_semantics = [], scalar_prefetch = 0 : i64, scratch_operands = 0 : i64, tpu.core_type = #tpu.core_type<tc>} {
    %c0 = arith.constant 0 : index
    %c0_0 = arith.constant 0 : index
    %0 = vector.load %arg0[%c0, %c0_0] : memref<8x64xf32, #tpu.memory_space<vmem>>, vector<8x64xf32>
    %1 = arith.truncf %0 : vector<8x64xf32> to vector<8x64xbf16>
    %c0_1 = arith.constant 0 : index
    %c0_2 = arith.constant 0 : index
    %2 = vector.load %arg1[%c0_1, %c0_2] : memref<64x128xbf16, #tpu.memory_space<vmem>>, vector<64x128xbf16>
    %cst = arith.constant dense<0.000000e+00> : vector<8x128xf32>
    %3 = tpu.matmul %1, %2, %cst {dimension_numbers = #tpu.dot_dimension_numbers<[1], [0], [0], [1], [0, 0, 1, 1], [], []>} : vector<8x64xbf16>, vector<64x128xbf16>, vector<8x128xf32> -> vector<8x128xf32>
    %cst_3 = arith.constant dense<0.000000e+00> : vector<128xf32>
    %4 = vector.multi_reduction <add>, %3, %cst_3 [0] : vector<8x128xf32> to vector<128xf32>
    %5 = vector.shape_cast %4 : vector<128xf32> to vector<1x128xf32>
    %cst_4 = arith.constant 8.000000e+00 : f32
    %6 = vector.broadcast %cst_4 : f32 to vector<1x128xf32>
    %7 = arith.divf %5, %6 : vector<1x128xf32>
    %8 = vector.broadcast %7 : vector<1x128xf32> to vector<8x128xf32>
    %9 = arith.subf %3, %8 : vector<8x128xf32>
    %10 = arith.mulf %9, %9 : vector<8x128xf32>
    %cst_5 = arith.constant dense<0.000000e+00> : vector<128xf32>
    %11 = vector.multi_reduction <add>, %10, %cst_5 [0] : vector<8x128xf32> to vector<128xf32>
    %12 = vector.shape_cast %11 : vector<128xf32> to vector<1x128xf32>
    %cst_6 = arith.constant 8.000000e+00 : f32
    %13 = vector.broadcast %cst_6 : f32 to vector<1x128xf32>
    %14 = arith.divf %12, %13 : vector<1x128xf32>
    %c0_7 = arith.constant 0 : index
    %c0_8 = arith.constant 0 : index
    %15 = vector.load %arg2[%c0_7, %c0_8] : memref<2x128xf32, #tpu.memory_space<vmem>>, vector<1x128xf32>
    %cst_9 = arith.constant 9.99999974E-6 : f32
    %16 = vector.broadcast %cst_9 : f32 to vector<1x128xf32>
    %17 = arith.addf %14, %16 : vector<1x128xf32>
    %18 = math.rsqrt %17 : vector<1x128xf32>
    %19 = arith.mulf %15, %18 : vector<1x128xf32>
    %20 = vector.broadcast %7 : vector<1x128xf32> to vector<8x128xf32>
    %21 = arith.subf %3, %20 : vector<8x128xf32>
    %22 = vector.broadcast %19 : vector<1x128xf32> to vector<8x128xf32>
    %23 = arith.mulf %21, %22 : vector<8x128xf32>
    %c1 = arith.constant 1 : index
    %c0_10 = arith.constant 0 : index
    %24 = vector.load %arg2[%c1, %c0_10] : memref<2x128xf32, #tpu.memory_space<vmem>>, vector<1x128xf32>
    %25 = vector.broadcast %24 : vector<1x128xf32> to vector<8x128xf32>
    %26 = arith.addf %23, %25 : vector<8x128xf32>
    %cst_11 = arith.constant 0.000000e+00 : f32
    %27 = vector.broadcast %cst_11 : f32 to vector<8x128xf32>
    %28 = arith.maximumf %26, %27 : vector<8x128xf32>
    %29 = arith.truncf %28 : vector<8x128xf32> to vector<8x128xbf16>
    %c0_12 = arith.constant 0 : index
    %c0_13 = arith.constant 0 : index
    %30 = vector.load %arg3[%c0_12, %c0_13] : memref<128x256xbf16, #tpu.memory_space<vmem>>, vector<128x256xbf16>
    %cst_14 = arith.constant dense<0.000000e+00> : vector<8x256xf32>
    %31 = tpu.matmul %29, %30, %cst_14 {dimension_numbers = #tpu.dot_dimension_numbers<[1], [0], [0], [1], [0, 0, 1, 1], [], []>} : vector<8x128xbf16>, vector<128x256xbf16>, vector<8x256xf32> -> vector<8x256xf32>
    %cst_15 = arith.constant dense<0.000000e+00> : vector<256xf32>
    %32 = vector.multi_reduction <add>, %31, %cst_15 [0] : vector<8x256xf32> to vector<256xf32>
    %33 = vector.shape_cast %32 : vector<256xf32> to vector<1x256xf32>
    %cst_16 = arith.constant 8.000000e+00 : f32
    %34 = vector.broadcast %cst_16 : f32 to vector<1x256xf32>
    %35 = arith.divf %33, %34 : vector<1x256xf32>
    %36 = vector.broadcast %35 : vector<1x256xf32> to vector<8x256xf32>
    %37 = arith.subf %31, %36 : vector<8x256xf32>
    %38 = arith.mulf %37, %37 : vector<8x256xf32>
    %cst_17 = arith.constant dense<0.000000e+00> : vector<256xf32>
    %39 = vector.multi_reduction <add>, %38, %cst_17 [0] : vector<8x256xf32> to vector<256xf32>
    %40 = vector.shape_cast %39 : vector<256xf32> to vector<1x256xf32>
    %cst_18 = arith.constant 8.000000e+00 : f32
    %41 = vector.broadcast %cst_18 : f32 to vector<1x256xf32>
    %42 = arith.divf %40, %41 : vector<1x256xf32>
    %c0_19 = arith.constant 0 : index
    %c0_20 = arith.constant 0 : index
    %43 = vector.load %arg4[%c0_19, %c0_20] : memref<2x256xf32, #tpu.memory_space<vmem>>, vector<1x256xf32>
    %cst_21 = arith.constant 9.99999974E-6 : f32
    %44 = vector.broadcast %cst_21 : f32 to vector<1x256xf32>
    %45 = arith.addf %42, %44 : vector<1x256xf32>
    %46 = math.rsqrt %45 : vector<1x256xf32>
    %47 = arith.mulf %43, %46 : vector<1x256xf32>
    %48 = vector.broadcast %35 : vector<1x256xf32> to vector<8x256xf32>
    %49 = arith.subf %31, %48 : vector<8x256xf32>
    %50 = vector.broadcast %47 : vector<1x256xf32> to vector<8x256xf32>
    %51 = arith.mulf %49, %50 : vector<8x256xf32>
    %c1_22 = arith.constant 1 : index
    %c0_23 = arith.constant 0 : index
    %52 = vector.load %arg4[%c1_22, %c0_23] : memref<2x256xf32, #tpu.memory_space<vmem>>, vector<1x256xf32>
    %53 = vector.broadcast %52 : vector<1x256xf32> to vector<8x256xf32>
    %54 = arith.addf %51, %53 : vector<8x256xf32>
    %cst_24 = arith.constant 0.000000e+00 : f32
    %55 = vector.broadcast %cst_24 : f32 to vector<8x256xf32>
    %56 = arith.maximumf %54, %55 : vector<8x256xf32>
    %57 = arith.truncf %56 : vector<8x256xf32> to vector<8x256xbf16>
    %c0_25 = arith.constant 0 : index
    %c0_26 = arith.constant 0 : index
    %58 = vector.load %arg5[%c0_25, %c0_26] : memref<256x512xbf16, #tpu.memory_space<vmem>>, vector<256x512xbf16>
    %cst_27 = arith.constant dense<0.000000e+00> : vector<8x512xf32>
    %59 = tpu.matmul %57, %58, %cst_27 {dimension_numbers = #tpu.dot_dimension_numbers<[1], [0], [0], [1], [0, 0, 1, 1], [], []>} : vector<8x256xbf16>, vector<256x512xbf16>, vector<8x512xf32> -> vector<8x512xf32>
    %cst_28 = arith.constant dense<0.000000e+00> : vector<512xf32>
    %60 = vector.multi_reduction <add>, %59, %cst_28 [0] : vector<8x512xf32> to vector<512xf32>
    %61 = vector.shape_cast %60 : vector<512xf32> to vector<1x512xf32>
    %cst_29 = arith.constant 8.000000e+00 : f32
    %62 = vector.broadcast %cst_29 : f32 to vector<1x512xf32>
    %63 = arith.divf %61, %62 : vector<1x512xf32>
    %64 = vector.broadcast %63 : vector<1x512xf32> to vector<8x512xf32>
    %65 = arith.subf %59, %64 : vector<8x512xf32>
    %66 = arith.mulf %65, %65 : vector<8x512xf32>
    %cst_30 = arith.constant dense<0.000000e+00> : vector<512xf32>
    %67 = vector.multi_reduction <add>, %66, %cst_30 [0] : vector<8x512xf32> to vector<512xf32>
    %68 = vector.shape_cast %67 : vector<512xf32> to vector<1x512xf32>
    %cst_31 = arith.constant 8.000000e+00 : f32
    %69 = vector.broadcast %cst_31 : f32 to vector<1x512xf32>
    %70 = arith.divf %68, %69 : vector<1x512xf32>
    %c0_32 = arith.constant 0 : index
    %c0_33 = arith.constant 0 : index
    %71 = vector.load %arg6[%c0_32, %c0_33] : memref<2x512xf32, #tpu.memory_space<vmem>>, vector<1x512xf32>
    %cst_34 = arith.constant 9.99999974E-6 : f32
    %72 = vector.broadcast %cst_34 : f32 to vector<1x512xf32>
    %73 = arith.addf %70, %72 : vector<1x512xf32>
    %74 = math.rsqrt %73 : vector<1x512xf32>
    %75 = arith.mulf %71, %74 : vector<1x512xf32>
    %76 = vector.broadcast %63 : vector<1x512xf32> to vector<8x512xf32>
    %77 = arith.subf %59, %76 : vector<8x512xf32>
    %78 = vector.broadcast %75 : vector<1x512xf32> to vector<8x512xf32>
    %79 = arith.mulf %77, %78 : vector<8x512xf32>
    %c1_35 = arith.constant 1 : index
    %c0_36 = arith.constant 0 : index
    %80 = vector.load %arg6[%c1_35, %c0_36] : memref<2x512xf32, #tpu.memory_space<vmem>>, vector<1x512xf32>
    %81 = vector.broadcast %80 : vector<1x512xf32> to vector<8x512xf32>
    %82 = arith.addf %79, %81 : vector<8x512xf32>
    %cst_37 = arith.constant 0.000000e+00 : f32
    %83 = vector.broadcast %cst_37 : f32 to vector<8x512xf32>
    %84 = arith.maximumf %82, %83 : vector<8x512xf32>
    %85 = arith.truncf %84 : vector<8x512xf32> to vector<8x512xbf16>
    %c0_38 = arith.constant 0 : index
    %c0_39 = arith.constant 0 : index
    %86 = vector.load %arg7[%c0_38, %c0_39] : memref<512x960xbf16, #tpu.memory_space<vmem>>, vector<512x960xbf16>
    %cst_40 = arith.constant dense<0.000000e+00> : vector<8x960xf32>
    %87 = tpu.matmul %85, %86, %cst_40 {dimension_numbers = #tpu.dot_dimension_numbers<[1], [0], [0], [1], [0, 0, 1, 1], [], []>} : vector<8x512xbf16>, vector<512x960xbf16>, vector<8x960xf32> -> vector<8x960xf32>
    %cst_41 = arith.constant dense<0.000000e+00> : vector<960xf32>
    %88 = vector.multi_reduction <add>, %87, %cst_41 [0] : vector<8x960xf32> to vector<960xf32>
    %89 = vector.shape_cast %88 : vector<960xf32> to vector<1x960xf32>
    %cst_42 = arith.constant 8.000000e+00 : f32
    %90 = vector.broadcast %cst_42 : f32 to vector<1x960xf32>
    %91 = arith.divf %89, %90 : vector<1x960xf32>
    %92 = vector.broadcast %91 : vector<1x960xf32> to vector<8x960xf32>
    %93 = arith.subf %87, %92 : vector<8x960xf32>
    %94 = arith.mulf %93, %93 : vector<8x960xf32>
    %cst_43 = arith.constant dense<0.000000e+00> : vector<960xf32>
    %95 = vector.multi_reduction <add>, %94, %cst_43 [0] : vector<8x960xf32> to vector<960xf32>
    %96 = vector.shape_cast %95 : vector<960xf32> to vector<1x960xf32>
    %cst_44 = arith.constant 8.000000e+00 : f32
    %97 = vector.broadcast %cst_44 : f32 to vector<1x960xf32>
    %98 = arith.divf %96, %97 : vector<1x960xf32>
    %c0_45 = arith.constant 0 : index
    %c0_46 = arith.constant 0 : index
    %99 = vector.load %arg8[%c0_45, %c0_46] : memref<2x960xf32, #tpu.memory_space<vmem>>, vector<1x960xf32>
    %cst_47 = arith.constant 9.99999974E-6 : f32
    %100 = vector.broadcast %cst_47 : f32 to vector<1x960xf32>
    %101 = arith.addf %98, %100 : vector<1x960xf32>
    %102 = math.rsqrt %101 : vector<1x960xf32>
    %103 = arith.mulf %99, %102 : vector<1x960xf32>
    %104 = vector.broadcast %91 : vector<1x960xf32> to vector<8x960xf32>
    %105 = arith.subf %87, %104 : vector<8x960xf32>
    %106 = vector.broadcast %103 : vector<1x960xf32> to vector<8x960xf32>
    %107 = arith.mulf %105, %106 : vector<8x960xf32>
    %c1_48 = arith.constant 1 : index
    %c0_49 = arith.constant 0 : index
    %108 = vector.load %arg8[%c1_48, %c0_49] : memref<2x960xf32, #tpu.memory_space<vmem>>, vector<1x960xf32>
    %109 = vector.broadcast %108 : vector<1x960xf32> to vector<8x960xf32>
    %110 = arith.addf %107, %109 : vector<8x960xf32>
    %cst_50 = arith.constant 0.000000e+00 : f32
    %111 = vector.broadcast %cst_50 : f32 to vector<8x960xf32>
    %112 = arith.maximumf %110, %111 : vector<8x960xf32>
    %113 = arith.truncf %112 : vector<8x960xf32> to vector<8x960xbf16>
    %c0_51 = arith.constant 0 : index
    %c0_52 = arith.constant 0 : index
    %114 = vector.load %arg9[%c0_51, %c0_52] : memref<8x960xbf16, #tpu.memory_space<vmem>>, vector<8x960xbf16>
    tpu.vector_store %arg9[%c0_51, %c0_52], %113 {strides = array<i32>} : memref<8x960xbf16, #tpu.memory_space<vmem>>, vector<8x960xbf16>,
    return
  }
}

</mosaic_0001>

<bundles_post_ra>
// kernel: tpu_custom_call.1
= control target key start
LH: loop header
LB: loop body
LE: loop exit
PB: predicated region body
PF: predicated region fallthrough
CT: control target
= control target key end

     0   :  { %s7399_s0 = inlined_call_operand.vmem [shape: f32[8,64], index: 0, kind: input, shape index: {}]   ;;  %s7400_s1 = inlined_call_operand.vmem [shape: bf16[64,128], index: 1, kind: input, shape index: {}]   ;;  %s7401_s2 = inlined_call_operand.vmem [shape: f32[2,128], index: 2, kind: input, shape index: {}]   ;;  %s7402_s3 = inlined_call_operand.vmem [shape: bf16[128,256], index: 3, kind: input, shape index: {}]   ;;  %s7403_s4 = inlined_call_operand.vmem [shape: f32[2,256], index: 4, kind: input, shape index: {}]   ;;  %s7404_s5 = inlined_call_operand.vmem [shape: bf16[256,512], index: 5, kind: input, shape index: {}]   ;;  %s7405_s6 = inlined_call_operand.vmem [shape: f32[2,512], index: 6, kind: input, shape index: {}]   ;;  %s7406_s7 = inlined_call_operand.vmem [shape: bf16[512,960], index: 7, kind: input, shape index: {}]   ;;  %s7407_s8 = inlined_call_operand.vmem [shape: f32[2,960], index: 8, kind: input, shape index: {}]   ;;  %s7408_s9 = inlined_call_operand.hbm [shape: bf16[8,960], index: 9, kind: output, shape index: {}]  }
   0x1   :  { %v4631_v0 = vld [vmem:[%s7400_s1 + $0x18] sm:$0xff]  ;;  %v4630_v1 = vld [vmem:[%s7400_s1 + $0x10] sm:$0xff] }
   0x2   :  { %76 = vmatpush.bf16.msra.mxu0 %v4631_v0 }
   0x3   :  { %14 = vsyncpa [#allocation3], 0  ;;  %v4629_v2 = vld [vmem:[%s7400_s1 + $0x8] sm:$0xff]  ;;  %v4628_v3 = vld [vmem:[%s7400_s1] sm:$0xff]  ;;  %vm68_vm0 = vcmask 523264   ;;  %v5029_v6 = vmov 8.0  }
   0x4   :  { %v34_v4 = vld [vmem:[%s7399_s0] sm:$0xff]  ;;  %4971 = vrcp.f32 %v5029_v6  ;;  %v3339_v10 = vld [vmem:[%s7402_s3 + $0x70] sm:$0xf]  ;;  %v4647_v11 = vld [vmem:[%s7402_s3 + $0x74] sm:$0xf0]  ;;  %vm308_vm10 = vcmask 1040384  }
   0x5   :  { %v35_v5 = vpack.c.bf16 %v34_v4, %v34_v4  ;;  %v4646_v12 = vld [vmem:[%s7402_s3 + $0x74] sm:$0xf]  ;;  %v3340_v14 = vor.u32 %v4647_v11, %v3339_v10  ;;  %v3341_v15 = vld [vmem:[%s7402_s3 + $0x78] sm:$0xf0]  ;;  %v3331_v20 = vld [vmem:[%s7402_s3 + $0x60] sm:$0xf] }
   0x6   :  { %77 = vmatpush.bf16.msra.mxu0 %v4630_v1  ;;  %v3344_v17 = vor.u32 %v4646_v12, %v3341_v15  ;;  %v4645_v21 = vld [vmem:[%s7402_s3 + $0x64] sm:$0xf0]  ;;  %v4644_v22 = vld [vmem:[%s7402_s3 + $0x64] sm:$0xf]  ;;  %v3333_v24 = vld [vmem:[%s7402_s3 + $0x68] sm:$0xf0] }
   0x7   :  { %224 = vmatpush.bf16.msra.mxu1 %v3340_v14  ;;  %v3332_v23 = vor.u32 %v4645_v21, %v3331_v20  ;;  %v3323_v25 = vld [vmem:[%s7402_s3 + $0x50] sm:$0xf]  ;;  %v4643_v26 = vld [vmem:[%s7402_s3 + $0x54] sm:$0xf0]  ;;  %v3336_v28 = vor.u32 %v4644_v22, %v3333_v24  ;;  %v4642_v29 = vld [vmem:[%s7402_s3 + $0x54] sm:$0xf] }
   0x8   :  { %237 = vmatpush.bf16.msra.mxu2 %v3344_v17  ;;  %v3325_v30 = vld [vmem:[%s7402_s3 + $0x58] sm:$0xf0]  ;;  %v3324_v32 = vor.u32 %v4643_v26, %v3323_v25  ;;  %v3315_v35 = vld [vmem:[%s7402_s3 + $0x40] sm:$0xf]  ;;  %v4641_v36 = vld [vmem:[%s7402_s3 + $0x44] sm:$0xf0] }
   0x9   :  { %v3328_v34 = vor.u32 %v4642_v29, %v3325_v30  ;;  %v4640_v38 = vld [vmem:[%s7402_s3 + $0x44] sm:$0xf]  ;;  %v3317_v39 = vld [vmem:[%s7402_s3 + $0x48] sm:$0xf0]  ;;  %v3316_v42 = vor.u32 %v4641_v36, %v3315_v35  ;;  %v3307_v45 = vld [vmem:[%s7402_s3 + $0x30] sm:$0xf] }
   0xa   :  { %78 = vmatpush.bf16.msra.mxu0 %v4629_v2  ;;  %v4972_v7 = vpop.eup %4971  ;;  %v3320_v44 = vor.u32 %v4640_v38, %v3317_v39  ;;  %v4639_v46 = vld [vmem:[%s7402_s3 + $0x34] sm:$0xf0]  ;;  %v4638_v47 = vld [vmem:[%s7402_s3 + $0x34] sm:$0xf]  ;;  %v3309_v48 = vld [vmem:[%s7402_s3 + $0x38] sm:$0xf0] }
   0xb   :  { %v92_v8 = vmul.f32 8.0, %v4972_v7  ;;  %225 = vmatpush.bf16.msra.mxu1 %v3332_v23  ;;  %vm96_vm1 = vweird.f32 %v4972_v7  ;;  %v3308_v50 = vor.u32 %v4639_v46, %v3307_v45  ;;  %v3312_v52 = vor.u32 %v4638_v47, %v3309_v48  ;;  %v3299_v53 = vld [vmem:[%s7402_s3 + $0x20] sm:$0xf]  ;;  %v4637_v54 = vld [vmem:[%s7402_s3 + $0x24] sm:$0xf0]  ;;  %s3255_s29 = sshll.u32 %s7408_s9, 4  ;;  %s3256_s29 = int_to_ptr.hbm [resolvable:$true] %s3255_s29 }
   0xc   :  { %238 = vmatpush.bf16.msra.mxu2 %v3336_v28  ;;  %v4636_v55 = vld [vmem:[%s7402_s3 + $0x24] sm:$0xf]  ;;  %v3301_v56 = vld [vmem:[%s7402_s3 + $0x28] sm:$0xf0]  ;;  %v3300_v58 = vor.u32 %v4637_v54, %v3299_v53  ;;  %v3291_v61 = vld [vmem:[%s7402_s3 + $0x10] sm:$0xf] }
   0xd   :  { %v93_v9 = vsub.f32 1.0, %v92_v8  ;;  %v3304_v60 = vor.u32 %v4636_v55, %v3301_v56  ;;  %v4635_v62 = vld [vmem:[%s7402_s3 + $0x14] sm:$0xf0]  ;;  %v4634_v63 = vld [vmem:[%s7402_s3 + $0x14] sm:$0xf] }
   0xe   :  { %79 = vmatpush.bf16.msra.mxu0 %v4628_v3  ;;  %v3293_v0 = vld [vmem:[%s7402_s3 + $0x18] sm:$0xf0]  ;;  %v3292_v2 = vor.u32 %v4635_v62, %v3291_v61  ;;  %v4633_v6 = vld [vmem:[%s7402_s3 + $0x4] sm:$0xf0]  ;;  %v3285_v8 = vld [vmem:[%s7402_s3 + $0x8] sm:$0xf0] }
   0xf   :  { %v94_v18 = vmul.f32 %v4972_v7, %v93_v9  ;;  %226 = vmatpush.bf16.msra.mxu1 %v3324_v32  ;;  %v3296_v4 = vor.u32 %v4634_v63, %v3293_v0  ;;  %v108_v21 = vld [vmem:[%s7401_s2] sm:$0x1]  ;;  %v4970_v26 = vld [vmem:[%s7401_s2 + $0x1] ss:$0 sm:$0xff]  ;;  %v4678_v32 = vld [vmem:[%s7404_s5 + $0xec] sm:$0xf0] }
  0x10   :  { %239 = vmatpush.bf16.msra.mxu2 %v3328_v34  ;;  %v4710_v35 = vld [vmem:[%s7404_s5 + $0x1ec] sm:$0xf0]  ;;  %v4676_v36 = vld [vmem:[%s7404_s5 + $0xe4] sm:$0xf]  ;;  %v3572_v46 = vld [vmem:[%s7404_s5 + $0x1c0] sm:$0xf] }
  0x11   :  { %3280 = vmatmul.msk.bf16.vlgmr.msra.gmra.mxu0 %vm68_vm0, %v35_v5  ;;  %v95_v31 = vadd.f32 %v4972_v7, %v94_v18  ;;  %v3283_v5 = vld [vmem:[%s7402_s3] sm:$0xf]  ;;  %v4674_v45 = vld [vmem:[%s7404_s5 + $0xcc] sm:$0xf0]  ;;  %v4704_v55 = vld [vmem:[%s7404_s5 + $0x1c4] sm:$0xf] }
  0x12   :  { %v3284_v10 = vor.u32 %v4633_v6, %v3283_v5  ;;  %v3574_v56 = vld [vmem:[%s7404_s5 + $0x1d0] sm:$0xf0]  ;;  %v3556_v61 = vld [vmem:[%s7404_s5 + $0x1a0] sm:$0xf]  ;;  %v4702_v63 = vld [vmem:[%s7404_s5 + $0x1ac] sm:$0xf0] }
  0x13   :  { %v5145_v41 = vsel %vm96_vm1, %v4972_v7, %v95_v31  ;;  %227 = vmatpush.bf16.msra.mxu1 %v3316_v42  ;;  %v4632_v7 = vld [vmem:[%s7402_s3 + $0x4] sm:$0xf]  ;;  %v3460_v31 = vld [vmem:[%s7404_s5 + $0xe0] sm:$0xf]  ;;  %v3590_v42 = vld [vmem:[%s7404_s5 + $0x1f0] sm:$0xf0] }
  0x14   :  { %240 = vmatpush.bf16.msra.mxu2 %v3320_v44  ;;  %v3288_v12 = vor.u32 %v4632_v7, %v3285_v8  ;;  %v3461_v34 = vor.u32 %v4678_v32, %v3460_v31  ;;  %v3444_v44 = vld [vmem:[%s7404_s5 + $0xc0] sm:$0xf]  ;;  %v4668_v0 = vld [vmem:[%s7404_s5 + $0xa4] sm:$0xf]  ;;  %v3558_v6 = vld [vmem:[%s7404_s5 + $0x1b0] sm:$0xf0] }
  0x15   :  { %v3445_v48 = vor.u32 %v4674_v45, %v3444_v44  ;;  %v4700_v5 = vld [vmem:[%s7404_s5 + $0x1a4] sm:$0xf]  ;;  %v3524_v31 = vld [vmem:[%s7404_s5 + $0x160] sm:$0xf]  ;;  %v4694_v32 = vld [vmem:[%s7404_s5 + $0x16c] sm:$0xf0] }
  0x16   :  { %716 = vmatpush.bf16.msra.mxu3 %v3461_v34  ;;  %v3561_v8 = vor.u32 %v4700_v5, %v3558_v6 }
  0x17   :  { %228 = vmatpush.bf16.msra.mxu1 %v3308_v50  ;;  %v4672_v50 = vld [vmem:[%s7404_s5 + $0xc4] sm:$0xf] }
  0x18   :  { %241 = vmatpush.bf16.msra.mxu2 %v3312_v52 }
  0x1a   :  { %717 = vmatpush.bf16.msra.mxu3 %v3445_v48  ;;  %v4658_v48 = vld [vmem:[%s7404_s5 + $0x4c] sm:$0xf0] }
  0x1b   :  { %229 = vmatpush.bf16.msra.mxu1 %v3300_v58 }
  0x1c   :  { %242 = vmatpush.bf16.msra.mxu2 %v3304_v60  ;;  %v4670_v60 = vld [vmem:[%s7404_s5 + $0xac] sm:$0xf0] }
  0x1f   :  { %230 = vmatpush.bf16.msra.mxu1 %v3292_v2 }
  0x20   :  { %243 = vmatpush.bf16.msra.mxu2 %v3296_v4 }
  0x23   :  { %231 = vmatpush.bf16.msra.mxu1 %v3284_v10 }
  0x24   :  { %244 = vmatpush.bf16.msra.mxu2 %v3288_v12  ;;  %v4666_v12 = vld [vmem:[%s7404_s5 + $0x8c] sm:$0xf0] }
  0x8e   :  { %v81_v13 = vpop.f32.mrf.mxu0 }
  0x8f   :  { %v85_v16 = vrot.slane %v81_v13, 4 }
  0x91   :  { %v86_v19 = vadd.f32 %v85_v16, %v81_v13 }
  0x93   :  { %v87_v27 = vrot.slane %v86_v19, 2 }
  0x95   :  { %v88_v33 = vadd.f32 %v87_v27, %v86_v19 }
  0x96   :  { %v83_v37 = vpop.f32.mrf.mxu0 }
  0x97   :  { %v89_v40 = vrot.slane %v88_v33, 1  ;;  %v3462_v37 = vld [vmem:[%s7404_s5 + $0xf0] sm:$0xf0] }
  0x98   :  { %v3465_v39 = vor.u32 %v4676_v36, %v3462_v37  ;;  %v3525_v36 = vor.u32 %v4694_v32, %v3524_v31  ;;  %v3398_v37 = vld [vmem:[%s7404_s5 + $0x70] sm:$0xf0]  ;;  %v3596_v32 = vld [vmem:[%s7404_s5 + $0x1e8] sm:$0xf] }
  0x99   :  { %v90_v43 = vadd.f32 %v89_v40, %v88_v33  ;;  %v3588_v33 = vld [vmem:[%s7404_s5 + $0x1e0] sm:$0xf]  ;;  %v4708_v40 = vld [vmem:[%s7404_s5 + $0x1e4] sm:$0xf] }
  0x9a   :  { %v3589_v38 = vor.u32 %v4710_v35, %v3588_v33  ;;  %742 = vmatpush.bf16.msrb.mxu1 %v3465_v39  ;;  %v4660_v33 = vld [vmem:[%s7404_s5 + $0x64] sm:$0xf]  ;;  %v3526_v39 = vld [vmem:[%s7404_s5 + $0x170] sm:$0xf0] }
  0x9b   :  { %v98_v49 = vmul.f32 %v5145_v41, %v90_v43  ;;  %v3593_v43 = vor.u32 %v4708_v40, %v3590_v42  ;;  %v3401_v42 = vor.u32 %v4660_v33, %v3398_v37  ;;  %v4711_v33 = vld [vmem:[%s7404_s5 + $0x1f4] sm:$0xf0]  ;;  %v3470_v37 = vld [vmem:[%s7404_s5 + $0xf8] sm:$0xf0] }
  0x9c   :  { %729 = vmatpush.bf16.msrb.mxu0 %v3589_v38  ;;  %v4692_v38 = vld [vmem:[%s7404_s5 + $0x164] sm:$0xf] }
  0x9d   :  { %v99_v51 = vsub.f32 %v81_v13, %v98_v49  ;;  %755 = vmatpush.bf16.msrb.mxu2 %v3593_v43  ;;  %v4706_v49 = vld [vmem:[%s7404_s5 + $0x1cc] sm:$0xf0]  ;;  %v3529_v43 = vor.u32 %v4692_v38, %v3526_v39  ;;  %v4709_v38 = vld [vmem:[%s7404_s5 + $0x1ec] sm:$0xf] }
  0x9e   :  { %v3573_v53 = vor.u32 %v4706_v49, %v3572_v46  ;;  %v3380_v46 = vld [vmem:[%s7404_s5 + $0x40] sm:$0xf] }
  0x9f   :  { %v100_v57 = vmul.f32 %v99_v51, %v99_v51  ;;  %v3381_v49 = vor.u32 %v4658_v48, %v3380_v46  ;;  %v4675_v48 = vld [vmem:[%s7404_s5 + $0xd4] sm:$0xf0] }
  0xa0   :  { %730 = vmatpush.bf16.msrb.mxu0 %v3573_v53 }
  0xa1   :  { %v101_v59 = vrot.slane %v100_v57, 4 }
  0xa3   :  { %v102_v1 = vadd.f32 %v101_v59, %v100_v57  ;;  %v3577_v57 = vor.u32 %v4704_v55, %v3574_v56  ;;  %v3428_v59 = vld [vmem:[%s7404_s5 + $0xa0] sm:$0xf]  ;;  %v3382_v55 = vld [vmem:[%s7404_s5 + $0x50] sm:$0xf0]  ;;  %v4688_v56 = vld [vmem:[%s7404_s5 + $0x144] sm:$0xf] }
  0xa4   :  { %v3429_v62 = vor.u32 %v4670_v60, %v3428_v59 }
  0xa5   :  { %v103_v3 = vrot.slane %v102_v1, 2  ;;  %756 = vmatpush.bf16.msrb.mxu2 %v3577_v57  ;;  %v3510_v57 = vld [vmem:[%s7404_s5 + $0x150] sm:$0xf0] }
  0xa6   :  { %718 = vmatpush.bf16.msra.mxu3 %v3429_v62  ;;  %v3513_v59 = vor.u32 %v4688_v56, %v3510_v57  ;;  %v3364_v62 = vld [vmem:[%s7404_s5 + $0x20] sm:$0xf]  ;;  %v4705_v56 = vld [vmem:[%s7404_s5 + $0x1cc] sm:$0xf] }
  0xa7   :  { %v104_v9 = vadd.f32 %v103_v3, %v102_v1  ;;  %v3430_v1 = vld [vmem:[%s7404_s5 + $0xb0] sm:$0xf0]  ;;  %v3557_v3 = vor.u32 %v4702_v63, %v3556_v61  ;;  %v4654_v63 = vld [vmem:[%s7404_s5 + $0x2c] sm:$0xf0] }
  0xa8   :  { %v3433_v4 = vor.u32 %v4668_v0, %v3430_v1  ;;  %v3365_v0 = vor.u32 %v4654_v63, %v3364_v62  ;;  %v3492_v1 = vld [vmem:[%s7404_s5 + $0x120] sm:$0xf] }
  0xa9   :  { %v105_v11 = vrot.slane %v104_v9, 1  ;;  %731 = vmatpush.bf16.msrb.mxu0 %v3557_v3  ;;  %757 = vmatpush.bf16.msrb.mxu2 %v3561_v8  ;;  %v4652_v3 = vld [vmem:[%s7404_s5 + $0x24] sm:$0xf]  ;;  %v3366_v8 = vld [vmem:[%s7404_s5 + $0x30] sm:$0xf0] }
  0xab   :  { %v106_v13 = vadd.f32 %v105_v11, %v104_v9  ;;  %v3412_v11 = vld [vmem:[%s7404_s5 + $0x80] sm:$0xf] }
  0xad   :  { %v107_v14 = vmul.f32 %v106_v13, %v5145_v41 }
  0xaf   :  { %v109_v15 = vadd.f32 1e-05, %v107_v14  ;;  %v3413_v14 = vor.u32 %v4666_v12, %v3412_v11  ;;  %v3369_v11 = vor.u32 %v4652_v3, %v3366_v8  ;;  %v3438_v8 = vld [vmem:[%s7404_s5 + $0xb8] sm:$0xf0] }
  0xb1   :  { %4973 = vrsqrt.f32 %v109_v15  ;;  %vm116_vm3 = vweird.f32 %v109_v15  ;;  %719 = vmatpush.bf16.msra.mxu3 %v3413_v14  ;;  %v3348_v14 = vld [vmem:[%s7404_s5] sm:$0xf] }
  0xb7   :  { %v4974_v16 = vpop.eup %4973 }
  0xb8   :  { %v111_v17 = vmul.f32 %v4974_v16, %v109_v15  ;;  %vm117_vm2 = vweird.f32 %v4974_v16  ;;  %v3540_v15 = vld [vmem:[%s7404_s5 + $0x180] sm:$0xf] }
  0xb9   :  { %vm118_vm4 = vmor %vm116_vm3, %vm117_vm2 }
  0xba   :  { %v112_v18 = vmul.f32 %v4974_v16, %v111_v17  ;;  %v4664_v17 = vld [vmem:[%s7404_s5 + $0x84] sm:$0xf] }
  0xbc   :  { %v113_v19 = vmul.f32 0.5, %v112_v18 }
  0xbe   :  { %v114_v20 = vsub.f32 1.5, %v113_v19 }
  0xc0   :  { %v115_v22 = vmul.f32 %v4974_v16, %v114_v20 }
  0xc2   :  { %v119_v23 = vsel %vm118_vm4, %v4974_v16, %v115_v22  ;;  %v4698_v16 = vld [vmem:[%s7404_s5 + $0x18c] sm:$0xf0]  ;;  %v4696_v22 = vld [vmem:[%s7404_s5 + $0x184] sm:$0xf] }
  0xc3   :  { %v120_v24 = vmul.f32 %v119_v23, %v108_v21  ;;  %v3541_v20 = vor.u32 %v4698_v16, %v3540_v15  ;;  %v3414_v21 = vld [vmem:[%s7404_s5 + $0x90] sm:$0xf0]  ;;  %v4650_v15 = vld [vmem:[%s7404_s5 + $0xc] sm:$0xf0] }
  0xc4   :  { %v3417_v23 = vor.u32 %v4664_v17, %v3414_v21  ;;  %v3349_v16 = vor.u32 %v4650_v15, %v3348_v14  ;;  %v3476_v17 = vld [vmem:[%s7404_s5 + $0x100] sm:$0xf]  ;;  %v3548_v15 = vld [vmem:[%s7404_s5 + $0x188] sm:$0xf] }
  0xc5   :  { %v121_v25 = vperm.slane %v120_v24, 0  ;;  %v3542_v24 = vld [vmem:[%s7404_s5 + $0x190] sm:$0xf0]  ;;  %732 = vmatpush.bf16.msrb.mxu0 %v3541_v20 }
  0xc7   :  { %v122_v27 = vmul.f32 %v121_v25, %v99_v51  ;;  %v3446_v51 = vld [vmem:[%s7404_s5 + $0xd0] sm:$0xf0] }
  0xc8   :  { %v3449_v54 = vor.u32 %v4672_v50, %v3446_v51  ;;  %v3508_v50 = vld [vmem:[%s7404_s5 + $0x140] sm:$0xf]  ;;  %v4656_v51 = vld [vmem:[%s7404_s5 + $0x44] sm:$0xf] }
  0xc9   :  { %v125_v28 = vadd.f32 %v4970_v26, %v122_v27  ;;  %v3545_v27 = vor.u32 %v4696_v22, %v3542_v24  ;;  %733 = vmatpush.bf16.msrb.mxu0 %v3525_v36  ;;  %v4680_v24 = vld [vmem:[%s7404_s5 + $0x104] sm:$0xf]  ;;  %v4677_v36 = vld [vmem:[%s7404_s5 + $0xec] sm:$0xf] }
  0xca   :  { %743 = vmatpush.bf16.msrb.mxu1 %v3449_v54 }
  0xcb   :  { %v126_v29 = vmax.f32 %v125_v28, 0.0  ;;  %v3396_v28 = vld [vmem:[%s7404_s5 + $0x60] sm:$0xf]  ;;  %758 = vmatpush.bf16.msrb.mxu2 %v3545_v27  ;;  %v3468_v27 = vld [vmem:[%s7404_s5 + $0xe8] sm:$0xf] }
  0xcd   :  { %v127_v30 = vpack.c.bf16 %v126_v29, %v126_v29  ;;  %v4662_v29 = vld [vmem:[%s7404_s5 + $0x6c] sm:$0xf0] }
  0xce   :  { %744 = vmatpush.bf16.msrb.mxu1 %v3433_v4 }
  0xcf   :  { %232 = vmatmul.bf16.vlgmr.msra.gmra.mxu1 %v127_v30  ;;  %245 = vmatmul.bf16.vlgmr.msra.gmra.mxu2 %v127_v30  ;;  %v3397_v30 = vor.u32 %v4662_v29, %v3396_v28  ;;  %v4679_v28 = vld [vmem:[%s7404_s5 + $0xf4] sm:$0xf0] }
  0xd0   :  { %759 = vmatpush.bf16.msrb.mxu2 %v3529_v43  ;;  %v3598_v43 = vld [vmem:[%s7404_s5 + $0x1f8] sm:$0xf0] }
  0xd1   :  { %720 = vmatpush.bf16.msra.mxu3 %v3397_v30  ;;  %v3601_v46 = vor.u32 %v4709_v38, %v3598_v43  ;;  %v3534_v38 = vld [vmem:[%s7404_s5 + $0x178] sm:$0xf0]  ;;  %v4659_v43 = vld [vmem:[%s7404_s5 + $0x54] sm:$0xf0] }
  0xd2   :  { %745 = vmatpush.bf16.msrb.mxu1 %v3417_v23  ;;  %v3350_v23 = vld [vmem:[%s7404_s5 + $0x10] sm:$0xf0] }
  0xd4   :  { %760 = vmatpush.bf16.msrb.mxu2 %v3513_v59  ;;  %v3436_v59 = vld [vmem:[%s7404_s5 + $0xa8] sm:$0xf] }
  0xd5   :  { %721 = vmatpush.bf16.msra.mxu3 %v3381_v49  ;;  %v3580_v49 = vld [vmem:[%s7404_s5 + $0x1c8] sm:$0xf] }
  0xd6   :  { %746 = vmatpush.bf16.msrb.mxu1 %v3401_v42  ;;  %v3473_v42 = vor.u32 %v4677_v36, %v3470_v37  ;;  %v4693_v37 = vld [vmem:[%s7404_s5 + $0x16c] sm:$0xf] }
  0xd9   :  { %722 = vmatpush.bf16.msra.mxu3 %v3365_v0 }
  0xdd   :  { %723 = vmatpush.bf16.msra.mxu3 %v3349_v16  ;;  %v4699_v16 = vld [vmem:[%s7404_s5 + $0x194] sm:$0xf0] }
 0x14c   :  { %v5236_v47 = vpop.f32.mrf.mxu1 }
 0x14d   :  { %v250_v52 = vrot.slane %v5236_v47, 4 }
 0x14f   :  { %v251_v58 = vadd.f32 %v250_v52, %v5236_v47 }
 0x151   :  { %v252_v2 = vrot.slane %v251_v58, 2 }
 0x152   :  { %v5279_v7 = vpop.f32.mrf.mxu2 }
 0x153   :  { %v253_v9 = vadd.f32 %v252_v2, %v251_v58  ;;  %v256_v10 = vrot.slane %v5279_v7, 4  ;;  %v3385_v58 = vor.u32 %v4656_v51, %v3382_v55  ;;  %v4686_v2 = vld [vmem:[%s7404_s5 + $0x12c] sm:$0xf0]  ;;  %v3454_v55 = vld [vmem:[%s7404_s5 + $0xd8] sm:$0xf0] }
 0x154   :  { %v235_v13 = vpop.f32.mrf.mxu1  ;;  %v3493_v6 = vor.u32 %v4686_v2, %v3492_v1  ;;  %v3564_v1 = vld [vmem:[%s7404_s5 + $0x1a8] sm:$0xf]  ;;  %v4703_v2 = vld [vmem:[%s7404_s5 + $0x1b4] sm:$0xf0] }
 0x155   :  { %v254_v18 = vrot.slane %v253_v9, 1  ;;  %v257_v19 = vadd.f32 %v256_v10, %v5279_v7  ;;  %747 = vmatpush.bf16.msrb.mxu1 %v3385_v58  ;;  %v3494_v10 = vld [vmem:[%s7404_s5 + $0x130] sm:$0xf0]  ;;  %v3582_v58 = vld [vmem:[%s7404_s5 + $0x1d8] sm:$0xf0] }
 0x156   :  { %v3585_v63 = vor.u32 %v4705_v56, %v3582_v58  ;;  %v4655_v56 = vld [vmem:[%s7404_s5 + $0x34] sm:$0xf0] }
 0x157   :  { %v255_v25 = vadd.f32 %v254_v18, %v253_v9  ;;  %v258_v26 = vrot.slane %v257_v19, 2  ;;  %v4684_v9 = vld [vmem:[%s7404_s5 + $0x124] sm:$0xf]  ;;  %v4682_v18 = vld [vmem:[%s7404_s5 + $0x10c] sm:$0xf0] }
 0x158   :  { %v3497_v12 = vor.u32 %v4684_v9, %v3494_v10  ;;  %v3477_v22 = vor.u32 %v4682_v18, %v3476_v17  ;;  %v4701_v9 = vld [vmem:[%s7404_s5 + $0x1ac] sm:$0xf] }
 0x159   :  { %v262_v34 = vmul.f32 %v255_v25, %v5145_v41  ;;  %v259_v35 = vadd.f32 %v258_v26, %v257_v19  ;;  %748 = vmatpush.bf16.msrb.mxu1 %v3369_v11  ;;  %v4648_v19 = vld [vmem:[%s7404_s5 + $0x4] sm:$0xf]  ;;  %v3478_v26 = vld [vmem:[%s7404_s5 + $0x110] sm:$0xf0]  ;;  %v3566_v11 = vld [vmem:[%s7404_s5 + $0x1b8] sm:$0xf0] }
 0x15a   :  { %v248_v40 = vpop.f32.mrf.mxu2  ;;  %761 = vmatpush.bf16.msrb.mxu2 %v3497_v12  ;;  %v3353_v25 = vor.u32 %v4648_v19, %v3350_v23  ;;  %v3481_v31 = vor.u32 %v4680_v24, %v3478_v26  ;;  %v3420_v12 = vld [vmem:[%s7404_s5 + $0x88] sm:$0xf]  ;;  %v3569_v14 = vor.u32 %v4701_v9, %v3566_v11  ;;  %v4665_v17 = vld [vmem:[%s7404_s5 + $0x8c] sm:$0xf]  ;;  %v3549_v19 = vor.u32 %v4699_v16, %v3548_v15  ;;  %v3358_v16 = vld [vmem:[%s7404_s5 + $0x18] sm:$0xf0] }
 0x15b   :  { %v5333_v44 = vsub.f32 %v5236_v47, %v262_v34  ;;  %v260_v45 = vrot.slane %v259_v35, 1  ;;  %v4690_v47 = vld [vmem:[%s7404_s5 + $0x14c] sm:$0xf0]  ;;  %v3469_v34 = vor.u32 %v4679_v28, %v3468_v27  ;;  %v3404_v27 = vld [vmem:[%s7404_s5 + $0x68] sm:$0xf] }
 0x15c   :  { %v3509_v54 = vor.u32 %v4690_v47, %v3508_v50  ;;  %v4707_v50 = vld [vmem:[%s7404_s5 + $0x1d4] sm:$0xf0]  ;;  %v3484_v11 = vld [vmem:[%s7404_s5 + $0x108] sm:$0xf]  ;;  %v4649_v15 = vld [vmem:[%s7404_s5 + $0xc] sm:$0xf] }
 0x15d   :  { %v266_v52 = vmul.f32 %v5333_v44, %v5333_v44  ;;  %v261_v53 = vadd.f32 %v260_v45, %v259_v35  ;;  %749 = vmatpush.bf16.msrb.mxu1 %v3353_v25  ;;  %v3597_v35 = vor.u32 %v4711_v33, %v3596_v32  ;;  %v3452_v45 = vld [vmem:[%s7404_s5 + $0xc8] sm:$0xf]  ;;  %768 = vmatpush.bf16.msrb.mxu3 %v3469_v34  ;;  %v4663_v28 = vld [vmem:[%s7404_s5 + $0x74] sm:$0xf0]  ;;  %v4661_v33 = vld [vmem:[%s7404_s5 + $0x6c] sm:$0xf] }
 0x15e   :  { %734 = vmatpush.bf16.msrb.mxu0 %v3509_v54  ;;  %762 = vmatpush.bf16.msrb.mxu2 %v3481_v31  ;;  %v4673_v54 = vld [vmem:[%s7404_s5 + $0xcc] sm:$0xf]  ;;  %v3405_v31 = vor.u32 %v4663_v28, %v3404_v27  ;;  %v4695_v32 = vld [vmem:[%s7404_s5 + $0x174] sm:$0xf0]  ;;  %v3406_v34 = vld [vmem:[%s7404_s5 + $0x78] sm:$0xf0] }
 0x15f   :  { %v268_v60 = vrot.slane %v266_v52, 4  ;;  %v263_v61 = vmul.f32 %v261_v53, %v5145_v41  ;;  %v3581_v53 = vor.u32 %v4707_v50, %v3580_v49  ;;  %v3457_v57 = vor.u32 %v4673_v54, %v3454_v55  ;;  %v3390_v49 = vld [vmem:[%s7404_s5 + $0x58] sm:$0xf0]  ;;  %v3372_v55 = vld [vmem:[%s7404_s5 + $0x28] sm:$0xf] }
 0x160   :  { %v3409_v36 = vor.u32 %v4661_v33, %v3406_v34 }
 0x161   :  { %v269_v4 = vadd.f32 %v268_v60, %v266_v52  ;;  %v5378_v5 = vsub.f32 %v5279_v7, %v263_v61  ;;  %794 = vmatpush.bf16.msra.mxu1 %v3473_v42  ;;  %v3453_v52 = vor.u32 %v4675_v48, %v3452_v45  ;;  %v4671_v60 = vld [vmem:[%s7404_s5 + $0xb4] sm:$0xf0]  ;;  %v3388_v42 = vld [vmem:[%s7404_s5 + $0x48] sm:$0xf]  ;;  %v4657_v48 = vld [vmem:[%s7404_s5 + $0x4c] sm:$0xf] }
 0x162   :  { %735 = vmatpush.bf16.msrb.mxu0 %v3493_v6  ;;  %807 = vmatpush.bf16.msra.mxu2 %v3601_v46  ;;  %v3437_v0 = vor.u32 %v4671_v60, %v3436_v59  ;;  %v4669_v6 = vld [vmem:[%s7404_s5 + $0xac] sm:$0xf]  ;;  %v3516_v45 = vld [vmem:[%s7404_s5 + $0x148] sm:$0xf]  ;;  %v4691_v46 = vld [vmem:[%s7404_s5 + $0x154] sm:$0xf0]  ;;  %v3389_v50 = vor.u32 %v4659_v43, %v3388_v42  ;;  %v3393_v54 = vor.u32 %v4657_v48, %v3390_v49 }
 0x163   :  { %v270_v13 = vrot.slane %v269_v4, 2  ;;  %v267_v7 = vmul.f32 %v5378_v5, %v5378_v5  ;;  %769 = vmatpush.bf16.msrb.mxu3 %v3453_v52  ;;  %v3441_v10 = vor.u32 %v4669_v6, %v3438_v8  ;;  %v3518_v52 = vld [vmem:[%s7404_s5 + $0x158] sm:$0xf0]  ;;  %v3356_v8 = vld [vmem:[%s7404_s5 + $0x8] sm:$0xf] }
 0x164   :  { %v3502_v6 = vld [vmem:[%s7404_s5 + $0x138] sm:$0xf0]  ;;  %v4085_v49 = vld [vmem:[%s7406_s7 + $0x3c0] sm:$0xf] }
 0x165   :  { %v271_v20 = vadd.f32 %v270_v13, %v269_v4  ;;  %v274_v21 = vrot.slane %v267_v7, 4  ;;  %795 = vmatpush.bf16.msra.mxu1 %v3457_v57  ;;  %v3565_v4 = vor.u32 %v4703_v2, %v3564_v1  ;;  %v4667_v13 = vld [vmem:[%s7404_s5 + $0x94] sm:$0xf0]  ;;  %v3500_v57 = vld [vmem:[%s7404_s5 + $0x128] sm:$0xf] }
 0x166   :  { %736 = vmatpush.bf16.msrb.mxu0 %v3477_v22  ;;  %808 = vmatpush.bf16.msra.mxu2 %v3585_v63  ;;  %v3421_v18 = vor.u32 %v4667_v13, %v3420_v12  ;;  %v3550_v22 = vld [vmem:[%s7404_s5 + $0x198] sm:$0xf0]  ;;  %v4653_v63 = vld [vmem:[%s7404_s5 + $0x2c] sm:$0xf]  ;;  %v4683_v12 = vld [vmem:[%s7404_s5 + $0x114] sm:$0xf0] }
 0x167   :  { %v272_v29 = vrot.slane %v271_v20, 1  ;;  %v275_v30 = vadd.f32 %v274_v21, %v267_v7  ;;  %770 = vmatpush.bf16.msrb.mxu3 %v3437_v0  ;;  %v4697_v21 = vld [vmem:[%s7404_s5 + $0x18c] sm:$0xf]  ;;  %v3374_v0 = vld [vmem:[%s7404_s5 + $0x38] sm:$0xf0] }
 0x168   :  { %v3553_v25 = vor.u32 %v4697_v21, %v3550_v22  ;;  %v4685_v1 = vld [vmem:[%s7404_s5 + $0x12c] sm:$0xf]  ;;  %v3377_v9 = vor.u32 %v4653_v63, %v3374_v0  ;;  %v3485_v21 = vor.u32 %v4683_v12, %v3484_v11  ;;  %v3361_v22 = vor.u32 %v4649_v15, %v3358_v16  ;;  %v4828_v0 = vld [vmem:[%s7406_s7 + $0x39c] sm:$0xf0] }
 0x169   :  { %v273_v39 = vadd.f32 %v272_v29, %v271_v20  ;;  %v276_v40 = vrot.slane %v275_v30, 2  ;;  %v3422_v20 = vld [vmem:[%s7404_s5 + $0x98] sm:$0xf0]  ;;  %796 = vmatpush.bf16.msra.mxu1 %v3441_v10  ;;  %v3532_v29 = vld [vmem:[%s7404_s5 + $0x168] sm:$0xf] }
 0x16a   :  { %781 = vmatpush.bf16.msra.mxu0 %v3597_v35  ;;  %v3425_v24 = vor.u32 %v4665_v17, %v3422_v20  ;;  %809 = vmatpush.bf16.msra.mxu2 %v3569_v14  ;;  %v3533_v35 = vor.u32 %v4695_v32, %v3532_v29  ;;  %v4651_v10 = vld [vmem:[%s7404_s5 + $0x14] sm:$0xf0]  ;;  %v3505_v14 = vor.u32 %v4685_v1, %v3502_v6  ;;  %v4681_v17 = vld [vmem:[%s7404_s5 + $0x10c] sm:$0xf]  ;;  %v4309_v1 = vld [vmem:[%s7406_s7 + $0x580] sm:$0xf] }
 0x16b   :  { %v280_v47 = vmul.f32 %v273_v39, %v5145_v41  ;;  %v277_v51 = vadd.f32 %v276_v40, %v275_v30  ;;  %771 = vmatpush.bf16.msrb.mxu3 %v3421_v18  ;;  %v3537_v40 = vor.u32 %v4693_v37, %v3534_v38  ;;  %v3486_v18 = vld [vmem:[%s7404_s5 + $0x118] sm:$0xf0]  ;;  %v3357_v20 = vor.u32 %v4651_v10, %v3356_v8  ;;  %v4956_v10 = vld [vmem:[%s7406_s7 + $0x79c] sm:$0xf0] }
 0x16c   :  { %v3489_v27 = vor.u32 %v4681_v17, %v3486_v18  ;;  %v3765_v15 = vld [vmem:[%s7406_s7 + $0x140] sm:$0xf] }
 0x16d   :  { %v5470_v61 = vadd.f32 1e-05, %v280_v47  ;;  %v278_v62 = vrot.slane %v277_v51, 1  ;;  %797 = vmatpush.bf16.msra.mxu1 %v3425_v24  ;;  %v3517_v47 = vor.u32 %v4691_v46, %v3516_v45  ;;  %v4756_v16 = vld [vmem:[%s7406_s7 + $0x15c] sm:$0xf0] }
 0x16e   :  { %782 = vmatpush.bf16.msra.mxu0 %v3581_v53  ;;  %810 = vmatpush.bf16.msra.mxu2 %v3553_v25  ;;  %v3766_v18 = vor.u32 %v4756_v16, %v3765_v15 }
 0x16f   :  { %4975 = vrsqrt.f32 %v5470_v61  ;;  %v279_v3 = vadd.f32 %v278_v62, %v277_v51  ;;  %772 = vmatpush.bf16.msrb.mxu3 %v3405_v31  ;;  %v4689_v51 = vld [vmem:[%s7404_s5 + $0x14c] sm:$0xf]  ;;  %v4687_v62 = vld [vmem:[%s7404_s5 + $0x134] sm:$0xf0]  ;;  %vm291_vm9 = vweird.f32 %v5470_v61 }
 0x170   :  { %v3521_v60 = vor.u32 %v4689_v51, %v3518_v52  ;;  %v4341_v51 = vld [vmem:[%s7406_s7 + $0x5c0] sm:$0xf] }
 0x171   :  { %v281_v7 = vmul.f32 %v279_v3, %v5145_v41  ;;  %798 = vmatpush.bf16.msra.mxu1 %v3409_v36  ;;  %v3373_v3 = vor.u32 %v4655_v56, %v3372_v55  ;;  %v4900_v52 = vld [vmem:[%s7406_s7 + $0x5dc] sm:$0xf0] }
 0x172   :  { %783 = vmatpush.bf16.msra.mxu0 %v3565_v4  ;;  %811 = vmatpush.bf16.msra.mxu2 %v3537_v40  ;;  %v3501_v4 = vor.u32 %v4687_v62, %v3500_v57  ;;  %v4597_v55 = vld [vmem:[%s7406_s7 + $0x7c0] sm:$0xf] }
 0x173   :  { %v5516_v23 = vadd.f32 1e-05, %v281_v7  ;;  %773 = vmatpush.bf16.msrb.mxu3 %v3389_v50  ;;  %v4964_v56 = vld [vmem:[%s7406_s7 + $0x7dc] sm:$0xf0] }
 0x174   :  { %v4598_v57 = vor.u32 %v4964_v56, %v4597_v55  ;;  %v4804_v55 = vld [vmem:[%s7406_s7 + $0x2dc] sm:$0xf0] }
 0x175   :  { %v5518_v26 = vpop.eup %4975  ;;  %4977 = vrsqrt.f32 %v5516_v23  ;;  %799 = vmatpush.bf16.msra.mxu1 %v3393_v54  ;;  %vm301_vm6 = vweird.f32 %v5516_v23  ;;  %v4342_v54 = vor.u32 %v4900_v52, %v4341_v51  ;;  %v4740_v51 = vld [vmem:[%s7406_s7 + $0xdc] sm:$0xf0] }
 0x176   :  { %v286_v30 = vmul.f32 %v5518_v26, %v5470_v61  ;;  %784 = vmatpush.bf16.msra.mxu0 %v3549_v19  ;;  %812 = vmatpush.bf16.msra.mxu2 %v3521_v60  ;;  %vm292_vm7 = vweird.f32 %v5518_v26  ;;  %v3345_v61 = vld [vmem:[%s7403_s4 + $0x1] ss:$2 sm:$0x3] }
 0x177   :  { %774 = vmatpush.bf16.msrb.mxu3 %v3373_v3  ;;  %vm293_vm11 = vmor %vm291_vm9, %vm292_vm7  ;;  %v322_v36 = vperm.slane %v3345_v61, 0  ;;  %v4053_v60 = vld [vmem:[%s7406_s7 + $0x380] sm:$0xf] }
 0x178   :  { %v287_v39 = vmul.f32 %v5518_v26, %v286_v30  ;;  %v4054_v6 = vor.u32 %v4828_v0, %v4053_v60  ;;  %v4469_v60 = vld [vmem:[%s7406_s7 + $0x6c0] sm:$0xf] }
 0x179   :  { %800 = vmatpush.bf16.msra.mxu1 %v3377_v9  ;;  %v4565_v9 = vld [vmem:[%s7406_s7 + $0x780] sm:$0xf] }
 0x17a   :  { %785 = vmatpush.bf16.msra.mxu0 %v3533_v35  ;;  %v288_v58 = vmul.f32 0.5, %v287_v39  ;;  %813 = vmatpush.bf16.msra.mxu2 %v3505_v14  ;;  %v323_v35 = vperm.slane %v3345_v61, 1  ;;  %v3733_v61 = vld [vmem:[%s7406_s7 + $0x100] sm:$0xf] }
 0x17b   :  { %v4978_v53 = vpop.eup %4977  ;;  %775 = vmatpush.bf16.msrb.mxu3 %v3357_v20  ;;  %v4820_v20 = vld [vmem:[%s7406_s7 + $0x35c] sm:$0xf0] }
 0x17c   :  { %v296_v59 = vmul.f32 %v4978_v53, %v5516_v23  ;;  %v289_v13 = vsub.f32 1.5, %v288_v58  ;;  %vm302_vm5 = vweird.f32 %v4978_v53  ;;  %v282_v23 = vld [vmem:[%s7403_s4] ss:$2 sm:$0x3] }
 0x17d   :  { %vm303_vm8 = vmor %vm301_vm6, %vm302_vm5  ;;  %801 = vmatpush.bf16.msra.mxu1 %v3361_v22  ;;  %v3797_v58 = vld [vmem:[%s7406_s7 + $0x180] sm:$0xf] }
 0x17e   :  { %v297_v2 = vmul.f32 %v4978_v53, %v296_v59  ;;  %786 = vmatpush.bf16.msra.mxu0 %v3517_v47  ;;  %v290_v24 = vmul.f32 %v5518_v26, %v289_v13  ;;  %814 = vmatpush.bf16.msra.mxu2 %v3489_v27  ;;  %v4836_v47 = vld [vmem:[%s7406_s7 + $0x3dc] sm:$0xf0]  ;;  %v4566_v13 = vor.u32 %v4956_v10, %v4565_v9 }
 0x17f   :  { %v4764_v59 = vld [vmem:[%s7406_s7 + $0x19c] sm:$0xf0] }
 0x180   :  { %v298_v7 = vmul.f32 0.5, %v297_v2  ;;  %v294_v30 = vsel %vm293_vm11, %v5518_v26, %v290_v24  ;;  %v3798_v63 = vor.u32 %v4764_v59, %v3797_v58  ;;  %v4892_v2 = vld [vmem:[%s7406_s7 + $0x59c] sm:$0xf0]  ;;  %vm939_vm11 = vcmask 1041408  }
 0x181   :  { %v4310_v8 = vor.u32 %v4892_v2, %v4309_v1  ;;  %v4277_v24 = vld [vmem:[%s7406_s7 + $0x540] sm:$0xf] }
 0x182   :  { %v299_v19 = vsub.f32 1.5, %v298_v7  ;;  %787 = vmatpush.bf16.msra.mxu0 %v3501_v4  ;;  %v4533_v27 = vld [vmem:[%s7406_s7 + $0x740] sm:$0xf] }
 0x183   :  { %v4213_v58 = vld [vmem:[%s7406_s7 + $0x4c0] sm:$0xf] }
 0x184   :  { %v300_v25 = vmul.f32 %v4978_v53, %v299_v19  ;;  %v4021_v19 = vld [vmem:[%s7406_s7 + $0x340] sm:$0xf] }
 0x185   :  { %v4022_v22 = vor.u32 %v4820_v20, %v4021_v19  ;;  %v4868_v59 = vld [vmem:[%s7406_s7 + $0x4dc] sm:$0xf0] }
 0x186   :  { %v304_v28 = vsel %vm303_vm8, %v4978_v53, %v300_v25  ;;  %788 = vmatpush.bf16.msra.mxu0 %v3485_v21  ;;  %v4086_v53 = vor.u32 %v4836_v47, %v4085_v49  ;;  %v4884_v25 = vld [vmem:[%s7406_s7 + $0x55c] sm:$0xf0]  ;;  %vm937_vm8 = vcmask 1042434  }
 0x187   :  { %v307_v29 = vrot.slane %v304_v28, 7  ;;  %v3701_v47 = vld [vmem:[%s7406_s7 + $0xc0] sm:$0xf] }
 0x188   :  { %v4932_v0 = vld [vmem:[%s7406_s7 + $0x6dc] sm:$0xf0] }
 0x189   :  { %v309_v31 = vsel %vm308_vm10, %v294_v30, %v307_v29  ;;  %v4948_v29 = vld [vmem:[%s7406_s7 + $0x75c] sm:$0xf0]  ;;  %v4470_v2 = vor.u32 %v4932_v0, %v4469_v60 }
 0x18a   :  { %v311_v32 = vmul.f32 %v309_v31, %v282_v23  ;;  %v4278_v23 = vor.u32 %v4884_v25, %v4277_v24  ;;  %v4534_v31 = vor.u32 %v4948_v29, %v4533_v27  ;;  %v4437_v20 = vld [vmem:[%s7406_s7 + $0x680] sm:$0xf] }
 0x18b   :  { %v3637_v29 = vld [vmem:[%s7406_s7 + $0x40] sm:$0xf] }
 0x18c   :  { %v313_v33 = vperm.slane %v311_v32, 0  ;;  %v314_v34 = vperm.slane %v311_v32, 1  ;;  %v4748_v32 = vld [vmem:[%s7406_s7 + $0x11c] sm:$0xf0] }
 0x18d   :  { %v4373_v0 = vld [vmem:[%s7406_s7 + $0x600] sm:$0xf] }
 0x18e   :  { %v318_v37 = vmul.f32 %v314_v34, %v5378_v5  ;;  %v317_v38 = vmul.f32 %v313_v33, %v5333_v44  ;;  %v3829_v44 = vld [vmem:[%s7406_s7 + $0x1c0] sm:$0xf] }
 0x18f   :  { %v4772_v5 = vld [vmem:[%s7406_s7 + $0x1dc] sm:$0xf0] }
 0x190   :  { %v327_v39 = vadd.f32 %v323_v35, %v318_v37  ;;  %v326_v40 = vadd.f32 %v322_v36, %v317_v38  ;;  %v3830_v50 = vor.u32 %v4772_v5, %v3829_v44  ;;  %v3734_v35 = vor.u32 %v4748_v32, %v3733_v61  ;;  %v3989_v36 = vld [vmem:[%s7406_s7 + $0x300] sm:$0xf] }
 0x191   :  { %v4812_v37 = vld [vmem:[%s7406_s7 + $0x31c] sm:$0xf0] }
 0x192   :  { %v328_v42 = vmax.f32 %v326_v40, 0.0  ;;  %v329_v26 = vmax.f32 %v327_v39, 0.0  ;;  %v3990_v40 = vor.u32 %v4812_v37, %v3989_v36  ;;  %v4940_v44 = vld [vmem:[%s7406_s7 + $0x71c] sm:$0xf0] }
 0x193   :  { %v3893_v32 = vld [vmem:[%s7406_s7 + $0x240] sm:$0xf] }
 0x194   :  { %v330_v43 = vpack.c.bf16 %v328_v42, %v328_v42  ;;  %v331_v45 = vpack.c.bf16 %v329_v26, %v329_v26  ;;  %v4245_v42 = vld [vmem:[%s7406_s7 + $0x500] sm:$0xf] }
 0x195   :  { %v4876_v26 = vld [vmem:[%s7406_s7 + $0x51c] sm:$0xf0] }
 0x196   :  { %724 = vmatmul.bf16.vlgmr.msra.gmra.mxu3 %v330_v43  ;;  %737 = vmatmul.bf16.vlgmr.msrb.gmra.mxu0 %v331_v45  ;;  %v4149_v37 = vld [vmem:[%s7406_s7 + $0x440] sm:$0xf] }
 0x197   :  { %750 = vmatmul.bf16.vlgmr.msrb.gmra.mxu1 %v330_v43  ;;  %763 = vmatmul.bf16.vlgmr.msrb.gmra.mxu2 %v331_v45 }
 0x198   :  { %2515 = vmatpush.bf16.msra.mxu3 %v3830_v50  ;;  %2528 = vmatpush.bf16.msrb.mxu0 %v4086_v53  ;;  %v3702_v53 = vor.u32 %v4740_v51, %v3701_v47 }
 0x199   :  { %2541 = vmatpush.bf16.msrb.mxu1 %v4342_v54  ;;  %2554 = vmatpush.bf16.msrb.mxu2 %v4598_v57  ;;  %v3957_v54 = vld [vmem:[%s7406_s7 + $0x2c0] sm:$0xf] }
 0x19a   :  { %v3958_v57 = vor.u32 %v4804_v55, %v3957_v54 }
 0x19c   :  { %2516 = vmatpush.bf16.msra.mxu3 %v3798_v63  ;;  %2529 = vmatpush.bf16.msrb.mxu0 %v4054_v6  ;;  %v4214_v63 = vor.u32 %v4868_v59, %v4213_v58  ;;  %v4732_v6 = vld [vmem:[%s7406_s7 + $0x9c] sm:$0xf0] }
 0x19d   :  { %2542 = vmatpush.bf16.msrb.mxu1 %v4310_v8  ;;  %2555 = vmatpush.bf16.msrb.mxu2 %v4566_v13  ;;  %v3925_v8 = vld [vmem:[%s7406_s7 + $0x280] sm:$0xf] }
 0x19e   :  { %v4796_v13 = vld [vmem:[%s7406_s7 + $0x29c] sm:$0xf0] }
 0x19f   :  { %v4117_v58 = vld [vmem:[%s7406_s7 + $0x400] sm:$0xf] }
 0x1a0   :  { %2517 = vmatpush.bf16.msra.mxu3 %v3766_v18  ;;  %2530 = vmatpush.bf16.msrb.mxu0 %v4022_v22  ;;  %v3926_v18 = vor.u32 %v4796_v13, %v3925_v8  ;;  %v4844_v59 = vld [vmem:[%s7406_s7 + $0x41c] sm:$0xf0]  ;;  %v4768_v8 = vld [vmem:[%s7406_s7 + $0x1c4] sm:$0xf] }
 0x1a1   :  { %2543 = vmatpush.bf16.msrb.mxu1 %v4278_v23  ;;  %2556 = vmatpush.bf16.msrb.mxu2 %v4534_v31 }
 0x1a4   :  { %2518 = vmatpush.bf16.msra.mxu3 %v3734_v35  ;;  %2531 = vmatpush.bf16.msrb.mxu0 %v3990_v40 }
 0x1a6   :  { %776 = vmatmul.bf16.vlgmr.msrb.gmra.mxu3 %v330_v43  ;;  %789 = vmatmul.bf16.vlgmr.msra.gmra.mxu0 %v331_v45 }
 0x1a7   :  { %802 = vmatmul.bf16.vlgmr.msra.gmra.mxu1 %v330_v43  ;;  %815 = vmatmul.bf16.vlgmr.msra.gmra.mxu2 %v331_v45  ;;  %v4501_v43 = vld [vmem:[%s7406_s7 + $0x700] sm:$0xf] }
 0x1a8   :  { %v4502_v50 = vor.u32 %v4940_v44, %v4501_v43  ;;  %2519 = vmatpush.bf16.msra.mxu3 %v3702_v53  ;;  %2532 = vmatpush.bf16.msrb.mxu0 %v3958_v57  ;;  %v4916_v43 = vld [vmem:[%s7406_s7 + $0x65c] sm:$0xf0] }
 0x1a9   :  { %v3605_v44 = vld [vmem:[%s7406_s7] sm:$0xf] }
 0x1aa   :  { %2557 = vmatpush.bf16.msrb.mxu2 %v4502_v50  ;;  %v4780_v53 = vld [vmem:[%s7406_s7 + $0x21c] sm:$0xf0] }
 0x1ac   :  { %2533 = vmatpush.bf16.msrb.mxu0 %v3926_v18 }
 0x1ae   :  { %2558 = vmatpush.bf16.msrb.mxu2 %v4470_v2 }
 0x213   :  { %v738_v46 = vpop.f32.mrf.mxu0 }
 0x214   :  { %v751_v48 = vpop.f32.mrf.mxu1 }
 0x219   :  { %v725_v62 = vpop.f32.mrf.mxu3 }
 0x21a   :  { %v5677_v3 = vadd.f32 %v738_v46, %v725_v62  ;;  %v764_v4 = vpop.f32.mrf.mxu2 }
 0x21b   :  { %v5685_v11 = vadd.f32 %v764_v4, %v751_v48  ;;  %v740_v12 = vpop.f32.mrf.mxu0  ;;  %v4246_v48 = vor.u32 %v4876_v26, %v4245_v42  ;;  %v3669_v4 = vld [vmem:[%s7406_s7 + $0x80] sm:$0xf] }
 0x21c   :  { %v820_v7 = vrot.slane %v5677_v3, 4  ;;  %v753_v14 = vpop.f32.mrf.mxu1  ;;  %v3670_v12 = vor.u32 %v4732_v6, %v3669_v4  ;;  %v4405_v26 = vld [vmem:[%s7406_s7 + $0x640] sm:$0xf] }
 0x21d   :  { %v826_v17 = vrot.slane %v5685_v11, 4  ;;  %2544 = vmatpush.bf16.msrb.mxu1 %v4246_v48  ;;  %v4860_v14 = vld [vmem:[%s7406_s7 + $0x49c] sm:$0xf0]  ;;  %v4406_v48 = vor.u32 %v4916_v43, %v4405_v26  ;;  %v4952_v26 = vld [vmem:[%s7406_s7 + $0x784] sm:$0xf] }
 0x21e   :  { %v821_v21 = vadd.f32 %v820_v7, %v5677_v3  ;;  %v4181_v7 = vld [vmem:[%s7406_s7 + $0x480] sm:$0xf]  ;;  %2520 = vmatpush.bf16.msra.mxu3 %v3670_v12  ;;  %v4567_v43 = vld [vmem:[%s7406_s7 + $0x7a0] sm:$0xf0] }
 0x21f   :  { %v827_v28 = vadd.f32 %v826_v17, %v5685_v11  ;;  %v4182_v19 = vor.u32 %v4860_v14, %v4181_v7  ;;  %v4832_v7 = vld [vmem:[%s7406_s7 + $0x3c4] sm:$0xf] }
 0x220   :  { %v822_v30 = vrot.slane %v821_v21, 2  ;;  %v4087_v14 = vld [vmem:[%s7406_s7 + $0x3e0] sm:$0xf0] }
 0x221   :  { %v828_v33 = vrot.slane %v827_v28, 2  ;;  %v727_v34 = vpop.f32.mrf.mxu3  ;;  %2545 = vmatpush.bf16.msrb.mxu1 %v4214_v63  ;;  %v4118_v63 = vor.u32 %v4844_v59, %v4117_v58  ;;  %v4535_v58 = vld [vmem:[%s7406_s7 + $0x760] sm:$0xf0] }
 0x222   :  { %v823_v38 = vadd.f32 %v822_v30, %v821_v21  ;;  %v766_v39 = vpop.f32.mrf.mxu2  ;;  %v4924_v21 = vld [vmem:[%s7406_s7 + $0x69c] sm:$0xf0] }
 0x223   :  { %v829_v45 = vadd.f32 %v828_v33, %v827_v28  ;;  %v790_v46 = vpop.f32.mrf.mxu0  ;;  %v4438_v25 = vor.u32 %v4924_v21, %v4437_v20  ;;  %v4788_v33 = vld [vmem:[%s7406_s7 + $0x25c] sm:$0xf0]  ;;  %v4896_v20 = vld [vmem:[%s7406_s7 + $0x5c4] sm:$0xf] }
 0x224   :  { %v824_v5 = vrot.slane %v823_v38, 1  ;;  %v803_v49 = vpop.f32.mrf.mxu1  ;;  %v3894_v36 = vor.u32 %v4788_v33, %v3893_v32  ;;  %v4343_v21 = vld [vmem:[%s7406_s7 + $0x5e0] sm:$0xf0] }
 0x225   :  { %v830_v52 = vrot.slane %v829_v45, 1  ;;  %2546 = vmatpush.bf16.msrb.mxu1 %v4182_v19  ;;  %2559 = vmatpush.bf16.msrb.mxu2 %v4438_v25  ;;  %v4090_v19 = vor.u32 %v4832_v7, %v4087_v14  ;;  %v4936_v7 = vld [vmem:[%s7406_s7 + $0x704] sm:$0xf] }
 0x226   :  { %v825_v56 = vadd.f32 %v824_v5, %v823_v38  ;;  %v4852_v38 = vld [vmem:[%s7406_s7 + $0x45c] sm:$0xf0]  ;;  %2534 = vmatpush.bf16.msrb.mxu0 %v3894_v36  ;;  %v4055_v36 = vld [vmem:[%s7406_s7 + $0x3a0] sm:$0xf0] }
 0x227   :  { %v831_v62 = vadd.f32 %v830_v52, %v829_v45  ;;  %v4150_v42 = vor.u32 %v4852_v38, %v4149_v37  ;;  %v4716_v5 = vld [vmem:[%s7406_s7 + $0x1c] sm:$0xf0]  ;;  %v4888_v37 = vld [vmem:[%s7406_s7 + $0x584] sm:$0xf] }
 0x228   :  { %v844_v1 = vmul.f32 %v825_v56, %v5145_v41  ;;  %v3606_v51 = vor.u32 %v4716_v5, %v3605_v44  ;;  %v3861_v52 = vld [vmem:[%s7406_s7 + $0x200] sm:$0xf]  ;;  %v4311_v38 = vld [vmem:[%s7406_s7 + $0x5a0] sm:$0xf0] }
 0x229   :  { %v845_v9 = vmul.f32 %v831_v62, %v5145_v41  ;;  %v777_v10 = vpop.f32.mrf.mxu3  ;;  %2547 = vmatpush.bf16.msrb.mxu1 %v4150_v42  ;;  %2560 = vmatpush.bf16.msrb.mxu2 %v4406_v48  ;;  %v3862_v57 = vor.u32 %v4780_v53, %v3861_v52  ;;  %v4314_v42 = vor.u32 %v4888_v37, %v4311_v38  ;;  %v3767_v44 = vld [vmem:[%s7406_s7 + $0x160] sm:$0xf0] }
 0x22a   :  { %v5784_v15 = vsub.f32 %v5677_v3, %v844_v1  ;;  %v5786_v16 = vadd.f32 %v790_v46, %v777_v10  ;;  %v816_v17 = vpop.f32.mrf.mxu2  ;;  %v4908_v1 = vld [vmem:[%s7406_s7 + $0x61c] sm:$0xf0]  ;;  %v4570_v48 = vor.u32 %v4952_v26, %v4567_v43  ;;  %v4816_v5 = vld [vmem:[%s7406_s7 + $0x344] sm:$0xf] }
 0x22b   :  { %v5795_v22 = vsub.f32 %v5685_v11, %v845_v9  ;;  %v5797_v24 = vadd.f32 %v816_v17, %v803_v49  ;;  %v792_v3 = vpop.f32.mrf.mxu0  ;;  %v4724_v11 = vld [vmem:[%s7406_s7 + $0x5c] sm:$0xf0]  ;;  %2535 = vmatpush.bf16.msrb.mxu0 %v3862_v57  ;;  %v4374_v6 = vor.u32 %v4908_v1, %v4373_v0  ;;  %v3831_v9 = vld [vmem:[%s7406_s7 + $0x1e0] sm:$0xf0] }
 0x22c   :  { %v852_v27 = vmul.f32 %v5784_v15, %v5784_v15  ;;  %v832_v28 = vrot.slane %v5786_v16, 4  ;;  %v805_v23 = vpop.f32.mrf.mxu1  ;;  %v3638_v61 = vor.u32 %v4724_v11, %v3637_v29  ;;  %v3834_v13 = vor.u32 %v4768_v8, %v3831_v9  ;;  %v4279_v52 = vld [vmem:[%s7406_s7 + $0x560] sm:$0xf0] }
 0x22d   :  { %v853_v30 = vmul.f32 %v5795_v22, %v5795_v22  ;;  %v838_v31 = vrot.slane %v5797_v24, 4  ;;  %2548 = vmatpush.bf16.msrb.mxu1 %v4118_v63  ;;  %2561 = vmatpush.bf16.msrb.mxu2 %v4374_v6  ;;  %v4599_v23 = vld [vmem:[%s7406_s7 + $0x7e0] sm:$0xf0] }
 0x22e   :  { %v856_v34 = vrot.slane %v852_v27, 4  ;;  %v833_v35 = vadd.f32 %v832_v28, %v5786_v16  ;;  %2521 = vmatpush.bf16.msra.mxu3 %v3638_v61  ;;  %v4960_v28 = vld [vmem:[%s7406_s7 + $0x7c4] sm:$0xf] }
 0x22f   :  { %v862_v39 = vrot.slane %v853_v30, 4  ;;  %v839_v40 = vadd.f32 %v838_v31, %v5797_v24  ;;  %2580 = vmatpush.bf16.msra.mxu0 %v4090_v19  ;;  %v4602_v11 = vor.u32 %v4960_v28, %v4599_v23  ;;  %v3799_v31 = vld [vmem:[%s7406_s7 + $0x1a0] sm:$0xf0] }
 0x230   :  { %v857_v45 = vadd.f32 %v856_v34, %v852_v27  ;;  %v834_v46 = vrot.slane %v833_v35, 2  ;;  %v4346_v27 = vor.u32 %v4896_v20, %v4343_v21  ;;  %v4824_v61 = vld [vmem:[%s7406_s7 + $0x384] sm:$0xf] }
 0x231   :  { %v863_v49 = vadd.f32 %v862_v39, %v853_v30  ;;  %v840_v50 = vrot.slane %v839_v40, 2  ;;  %v779_v47 = vpop.f32.mrf.mxu3  ;;  %v4760_v30 = vld [vmem:[%s7406_s7 + $0x184] sm:$0xf]  ;;  %2606 = vmatpush.bf16.msra.mxu2 %v4602_v11 }
 0x232   :  { %v858_v54 = vrot.slane %v857_v45, 2  ;;  %v835_v55 = vadd.f32 %v834_v46, %v833_v35  ;;  %v818_v56 = vpop.f32.mrf.mxu2  ;;  %2522 = vmatpush.bf16.msra.mxu3 %v3606_v51  ;;  %2593 = vmatpush.bf16.msra.mxu1 %v4346_v27  ;;  %v3802_v35 = vor.u32 %v4760_v30, %v3799_v31  ;;  %v4880_v51 = vld [vmem:[%s7406_s7 + $0x544] sm:$0xf] }
 0x233   :  { %v864_v60 = vrot.slane %v863_v49, 2  ;;  %v841_v62 = vadd.f32 %v840_v50, %v839_v40  ;;  %v4058_v40 = vor.u32 %v4824_v61, %v4055_v36  ;;  %v4282_v56 = vor.u32 %v4880_v51, %v4279_v52  ;;  %v4944_v57 = vld [vmem:[%s7406_s7 + $0x744] sm:$0xf] }
 0x234   :  { %v859_v2 = vadd.f32 %v858_v54, %v857_v45  ;;  %v836_v4 = vrot.slane %v835_v55, 1  ;;  %v4752_v45 = vld [vmem:[%s7406_s7 + $0x144] sm:$0xf] }
 0x235   :  { %v865_v10 = vadd.f32 %v864_v60, %v863_v49  ;;  %v842_v12 = vrot.slane %v841_v62, 1  ;;  %v4023_v49 = vld [vmem:[%s7406_s7 + $0x360] sm:$0xf0]  ;;  %2581 = vmatpush.bf16.msra.mxu0 %v4058_v40  ;;  %2607 = vmatpush.bf16.msra.mxu2 %v4570_v48  ;;  %v4538_v60 = vor.u32 %v4944_v57, %v4535_v58 }
 0x236   :  { %v860_v17 = vrot.slane %v859_v2, 1  ;;  %v837_v18 = vadd.f32 %v836_v4, %v835_v55  ;;  %2567 = vmatpush.bf16.msrb.mxu3 %v3834_v13  ;;  %v4026_v47 = vor.u32 %v4816_v5, %v4023_v49  ;;  %2594 = vmatpush.bf16.msra.mxu1 %v4314_v42  ;;  %v3735_v63 = vld [vmem:[%s7406_s7 + $0x120] sm:$0xf0] }
 0x237   :  { %v866_v3 = vrot.slane %v865_v10, 1  ;;  %v843_v25 = vadd.f32 %v842_v12, %v841_v62  ;;  %v4744_v62 = vld [vmem:[%s7406_s7 + $0x104] sm:$0xf] }
 0x238   :  { %v846_v29 = vmul.f32 %v837_v18, %v5145_v41  ;;  %v861_v32 = vadd.f32 %v860_v17, %v859_v2  ;;  %v3738_v1 = vor.u32 %v4744_v62, %v3735_v63  ;;  %v4808_v2 = vld [vmem:[%s7406_s7 + $0x304] sm:$0xf] }
 0x239   :  { %v867_v33 = vadd.f32 %v866_v3, %v865_v10  ;;  %v847_v34 = vmul.f32 %v843_v25, %v5145_v41  ;;  %v3991_v4 = vld [vmem:[%s7406_s7 + $0x320] sm:$0xf0]  ;;  %2582 = vmatpush.bf16.msra.mxu0 %v4026_v47  ;;  %2608 = vmatpush.bf16.msra.mxu2 %v4538_v60 }
 0x23a   :  { %v5900_v39 = vsub.f32 %v5786_v16, %v846_v29  ;;  %2568 = vmatpush.bf16.msrb.mxu3 %v3802_v35  ;;  %v880_v53 = vmul.f32 %v861_v32, %v5145_v41  ;;  %v3994_v8 = vor.u32 %v4808_v2, %v3991_v4  ;;  %v4872_v9 = vld [vmem:[%s7406_s7 + $0x504] sm:$0xf]  ;;  %2595 = vmatpush.bf16.msra.mxu1 %v4282_v56 }
 0x23b   :  { %v881_v46 = vmul.f32 %v867_v33, %v5145_v41  ;;  %v5913_v16 = vsub.f32 %v5797_v24, %v847_v34  ;;  %v3770_v24 = vor.u32 %v4752_v45, %v3767_v44  ;;  %v4247_v13 = vld [vmem:[%s7406_s7 + $0x520] sm:$0xf0] }
 0x23c   :  { %v854_v50 = vmul.f32 %v5900_v39, %v5900_v39  ;;  %v5959_v10 = vadd.f32 1e-05, %v880_v53  ;;  %v4250_v17 = vor.u32 %v4872_v9, %v4247_v13  ;;  %v4503_v18 = vld [vmem:[%s7406_s7 + $0x720] sm:$0xf0] }
 0x23d   :  { %v5933_v54 = vadd.f32 1e-05, %v881_v46  ;;  %v855_v55 = vmul.f32 %v5913_v16, %v5913_v16  ;;  %v4736_v19 = vld [vmem:[%s7406_s7 + $0xc4] sm:$0xf]  ;;  %v4506_v21 = vor.u32 %v4936_v7, %v4503_v18  ;;  %2583 = vmatpush.bf16.msra.mxu0 %v3994_v8 }
 0x23e   :  { %v868_v59 = vrot.slane %v854_v50, 4  ;;  %2569 = vmatpush.bf16.msrb.mxu3 %v3770_v24  ;;  %v3703_v3 = vld [vmem:[%s7406_s7 + $0xe0] sm:$0xf0]  ;;  %2596 = vmatpush.bf16.msra.mxu1 %v4250_v17  ;;  %vm895_vm7 = vweird.f32 %v5959_v10 }
 0x23f   :  { %4979 = vrsqrt.f32 %v5933_v54  ;;  %v874_v0 = vrot.slane %v855_v55, 4  ;;  %v4800_v25 = vld [vmem:[%s7406_s7 + $0x2c4] sm:$0xf]  ;;  %v3706_v28 = vor.u32 %v4736_v19, %v3703_v3  ;;  %2609 = vmatpush.bf16.msra.mxu2 %v4506_v21  ;;  %vm905_vm13 = vweird.f32 %v5933_v54 }
 0x240   :  { %v869_v6 = vadd.f32 %v868_v59, %v854_v50  ;;  %v3959_v23 = vld [vmem:[%s7406_s7 + $0x2e0] sm:$0xf0]  ;;  %4981 = vrsqrt.f32 %v5959_v10 }
 0x241   :  { %v875_v12 = vadd.f32 %v874_v0, %v855_v55  ;;  %v4864_v29 = vld [vmem:[%s7406_s7 + $0x4c4] sm:$0xf]  ;;  %v3962_v61 = vor.u32 %v4800_v25, %v3959_v23 }
 0x242   :  { %v870_v14 = vrot.slane %v869_v6, 2  ;;  %2570 = vmatpush.bf16.msrb.mxu3 %v3738_v1  ;;  %v4215_v11 = vld [vmem:[%s7406_s7 + $0x4e0] sm:$0xf0] }
 0x243   :  { %v876_v20 = vrot.slane %v875_v12, 2  ;;  %v4928_v32 = vld [vmem:[%s7406_s7 + $0x6c4] sm:$0xf]  ;;  %v4218_v37 = vor.u32 %v4864_v29, %v4215_v11  ;;  %2584 = vmatpush.bf16.msra.mxu0 %v3962_v61 }
 0x244   :  { %v871_v27 = vadd.f32 %v870_v14, %v869_v6  ;;  %v4471_v33 = vld [vmem:[%s7406_s7 + $0x6e0] sm:$0xf0] }
 0x245   :  { %v5988_v30 = vpop.eup %4979  ;;  %v877_v31 = vadd.f32 %v876_v20, %v875_v12  ;;  %v4728_v34 = vld [vmem:[%s7406_s7 + $0x84] sm:$0xf]  ;;  %v4474_v26 = vor.u32 %v4928_v32, %v4471_v33  ;;  %2597 = vmatpush.bf16.msra.mxu1 %v4218_v37 }
 0x246   :  { %v900_v35 = vmul.f32 %v5988_v30, %v5933_v54  ;;  %v872_v36 = vrot.slane %v871_v27, 1  ;;  %v3671_v38 = vld [vmem:[%s7406_s7 + $0xa0] sm:$0xf0]  ;;  %2571 = vmatpush.bf16.msrb.mxu3 %v3706_v28  ;;  %v6025_v52 = vpop.eup %4981  ;;  %vm906_vm12 = vweird.f32 %v5988_v30 }
 0x247   :  { %v4792_v40 = vld [vmem:[%s7406_s7 + $0x284] sm:$0xf]  ;;  %v878_v42 = vrot.slane %v877_v31, 1  ;;  %v3674_v43 = vor.u32 %v4728_v34, %v3671_v38  ;;  %2610 = vmatpush.bf16.msra.mxu2 %v4474_v26  ;;  %v890_v4 = vmul.f32 %v6025_v52, %v5959_v10  ;;  %vm907_vm14 = vmor %vm905_vm13, %vm906_vm12  ;;  %vm896_vm3 = vweird.f32 %v6025_v52 }
 0x248   :  { %v3927_v45 = vld [vmem:[%s7406_s7 + $0x2a0] sm:$0xf0]  ;;  %v901_v46 = vmul.f32 %v5988_v30, %v900_v35  ;;  %v873_v48 = vadd.f32 %v872_v36, %v871_v27  ;;  %vm897_vm9 = vmor %vm895_vm7, %vm896_vm3 }
 0x249   :  { %v3930_v44 = vor.u32 %v4792_v40, %v3927_v45  ;;  %v4856_v5 = vld [vmem:[%s7406_s7 + $0x484] sm:$0xf]  ;;  %v879_v50 = vadd.f32 %v878_v42, %v877_v31  ;;  %v891_v29 = vmul.f32 %v6025_v52, %v890_v4 }
 0x24a   :  { %v4183_v49 = vld [vmem:[%s7406_s7 + $0x4a0] sm:$0xf0]  ;;  %v882_v47 = vmul.f32 %v873_v48, %v5145_v41  ;;  %2572 = vmatpush.bf16.msrb.mxu3 %v3674_v43  ;;  %v902_v59 = vmul.f32 0.5, %v901_v46 }
 0x24b   :  { %v4920_v24 = vld [vmem:[%s7406_s7 + $0x684] sm:$0xf]  ;;  %v883_v53 = vmul.f32 %v879_v50, %v5145_v41  ;;  %v4186_v55 = vor.u32 %v4856_v5, %v4183_v49  ;;  %2585 = vmatpush.bf16.msra.mxu0 %v3930_v44  ;;  %v892_v34 = vmul.f32 0.5, %v891_v29 }
 0x24c   :  { %v4439_v51 = vld [vmem:[%s7406_s7 + $0x6a0] sm:$0xf0]  ;;  %v6034_v60 = vadd.f32 1e-05, %v882_v47  ;;  %v903_v61 = vsub.f32 1.5, %v902_v59 }
 0x24d   :  { %v4442_v56 = vor.u32 %v4920_v24, %v4439_v51  ;;  %v4720_v57 = vld [vmem:[%s7406_s7 + $0x44] sm:$0xf]  ;;  %v6039_v0 = vadd.f32 1e-05, %v883_v53  ;;  %2598 = vmatpush.bf16.msra.mxu1 %v4186_v55  ;;  %v893_v42 = vsub.f32 1.5, %v892_v34 }
 0x24e   :  { %v3639_v58 = vld [vmem:[%s7406_s7 + $0x60] sm:$0xf0]  ;;  %4983 = vrsqrt.f32 %v6034_v60  ;;  %v904_v37 = vmul.f32 %v5988_v30, %v903_v61  ;;  %vm915_vm2 = vweird.f32 %v6034_v60  ;;  %v3805_v61 = vld [vmem:[%s7406_s7 + $0x188] sm:$0xf] }
 0x24f   :  { %v3642_v62 = vor.u32 %v4720_v57, %v3639_v58  ;;  %v4784_v63 = vld [vmem:[%s7406_s7 + $0x244] sm:$0xf]  ;;  %2611 = vmatpush.bf16.msra.mxu2 %v4442_v56  ;;  %4985 = vrsqrt.f32 %v6039_v0  ;;  %v894_v44 = vmul.f32 %v6025_v52, %v893_v42  ;;  %vm925_vm5 = vweird.f32 %v6039_v0  ;;  %v4957_v42 = vld [vmem:[%s7406_s7 + $0x7a4] sm:$0xf0] }
 0x250   :  { %v3895_v1 = vld [vmem:[%s7406_s7 + $0x260] sm:$0xf0]  ;;  %v908_v45 = vsel %vm907_vm14, %v5988_v30, %v904_v37  ;;  %v4317_v37 = vld [vmem:[%s7406_s7 + $0x588] sm:$0xf] }
 0x251   :  { %v4848_v2 = vld [vmem:[%s7406_s7 + $0x444] sm:$0xf]  ;;  %v3898_v6 = vor.u32 %v4784_v63, %v3895_v1  ;;  %2573 = vmatpush.bf16.msrb.mxu3 %v3642_v62  ;;  %v933_v54 = vrot.slane %v908_v45, 7  ;;  %v898_v51 = vsel %vm897_vm9, %v6025_v52, %v894_v44  ;;  %v3773_v45 = vld [vmem:[%s7406_s7 + $0x148] sm:$0xf] }
 0x252   :  { %v4151_v8 = vld [vmem:[%s7406_s7 + $0x460] sm:$0xf0] }
 0x253   :  { %v4912_v9 = vld [vmem:[%s7406_s7 + $0x644] sm:$0xf]  ;;  %v4154_v13 = vor.u32 %v4848_v2, %v4151_v8  ;;  %2586 = vmatpush.bf16.msra.mxu0 %v3898_v6  ;;  %v936_v53 = vsel %vm308_vm10, %v898_v51, %v933_v54  ;;  %v4821_v54 = vld [vmem:[%s7406_s7 + $0x364] sm:$0xf0] }
 0x254   :  { %v4407_v12 = vld [vmem:[%s7406_s7 + $0x660] sm:$0xf0]  ;;  %v4984_v31 = vpop.eup %4983 }
 0x255   :  { %v4712_v7 = vld [vmem:[%s7406_s7 + $0x4] sm:$0xf]  ;;  %v4410_v18 = vor.u32 %v4912_v9, %v4407_v12  ;;  %2599 = vmatpush.bf16.msra.mxu1 %v4154_v13  ;;  %v4986_v32 = vpop.eup %4985  ;;  %v910_v33 = vmul.f32 %v4984_v31, %v6034_v60  ;;  %vm916_vm15 = vweird.f32 %v4984_v31  ;;  %v3837_v9 = vld [vmem:[%s7406_s7 + $0x1c8] sm:$0xf] }
 0x256   :  { %v3607_v14 = vld [vmem:[%s7406_s7 + $0x20] sm:$0xf0]  ;;  %v920_v35 = vmul.f32 %v4986_v32, %v6039_v0  ;;  %vm926_vm1 = vweird.f32 %v4986_v32  ;;  %vm917_vm4 = vmor %vm915_vm2, %vm916_vm15 }
 0x257   :  { %v4776_v17 = vld [vmem:[%s7406_s7 + $0x204] sm:$0xf]  ;;  %v3610_v19 = vor.u32 %v4712_v7, %v3607_v14  ;;  %2612 = vmatpush.bf16.msra.mxu2 %v4410_v18  ;;  %v911_v36 = vmul.f32 %v4984_v31, %v910_v33  ;;  %vm927_vm6 = vmor %vm925_vm5, %vm926_vm1  ;;  %v4605_v18 = vld [vmem:[%s7406_s7 + $0x7c8] sm:$0xf] }
 0x258   :  { %v3863_v20 = vld [vmem:[%s7406_s7 + $0x220] sm:$0xf0]  ;;  %v921_v38 = vmul.f32 %v4986_v32, %v920_v35  ;;  %v4061_v35 = vld [vmem:[%s7406_s7 + $0x388] sm:$0xf] }
 0x259   :  { %v4840_v21 = vld [vmem:[%s7406_s7 + $0x404] sm:$0xf]  ;;  %v3866_v25 = vor.u32 %v4776_v17, %v3863_v20  ;;  %2574 = vmatpush.bf16.msrb.mxu3 %v3610_v19  ;;  %v912_v40 = vmul.f32 0.5, %v911_v36  ;;  %v4773_v17 = vld [vmem:[%s7406_s7 + $0x1e4] sm:$0xf0] }
 0x25a   :  { %v4119_v3 = vld [vmem:[%s7406_s7 + $0x420] sm:$0xf0]  ;;  %v922_v26 = vmul.f32 0.5, %v921_v38  ;;  %v4829_v36 = vld [vmem:[%s7406_s7 + $0x3a4] sm:$0xf0] }
 0x25b   :  { %v4122_v27 = vor.u32 %v4840_v21, %v4119_v3  ;;  %v4904_v28 = vld [vmem:[%s7406_s7 + $0x604] sm:$0xf]  ;;  %2587 = vmatpush.bf16.msra.mxu0 %v3866_v25  ;;  %v913_v43 = vsub.f32 1.5, %v912_v40  ;;  %v4965_v25 = vld [vmem:[%s7406_s7 + $0x7e4] sm:$0xf0] }
 0x25c   :  { %v4375_v23 = vld [vmem:[%s7406_s7 + $0x620] sm:$0xf0]  ;;  %v923_v46 = vsub.f32 1.5, %v922_v26  ;;  %v4606_v34 = vor.u32 %v4965_v25, %v4605_v18  ;;  %v4893_v38 = vld [vmem:[%s7406_s7 + $0x5a4] sm:$0xf0] }
 0x25d   :  { %v4378_v11 = vor.u32 %v4904_v28, %v4375_v23  ;;  %2600 = vmatpush.bf16.msra.mxu1 %v4122_v27  ;;  %v914_v48 = vmul.f32 %v4984_v31, %v913_v43  ;;  %v884_v47 = vld [vmem:[%s7405_s6] ss:$2 sm:$0xf]  ;;  %v3602_v10 = vld [vmem:[%s7405_s6 + $0x1] ss:$2 sm:$0xf]  ;;  %v3838_v27 = vor.u32 %v4773_v17, %v3837_v9  ;;  %v4062_v43 = vor.u32 %v4829_v36, %v4061_v35 }
 0x25e   :  { %v924_v5 = vmul.f32 %v4986_v32, %v923_v46  ;;  %v959_v58 = vperm.slane %v3602_v10, 0  ;;  %v960_v59 = vperm.slane %v3602_v10, 1  ;;  %v961_v60 = vperm.slane %v3602_v10, 2  ;;  %v4573_v40 = vld [vmem:[%s7406_s7 + $0x788] sm:$0xf] }
 0x25f   :  { %2613 = vmatpush.bf16.msra.mxu2 %v4378_v11  ;;  %v918_v49 = vsel %vm917_vm4, %v4984_v31, %v914_v48  ;;  %v962_v62 = vperm.slane %v3602_v10, 3  ;;  %v4757_v46 = vld [vmem:[%s7406_s7 + $0x164] sm:$0xf0]  ;;  %v4318_v48 = vor.u32 %v4893_v38, %v4317_v37  ;;  %v4574_v44 = vor.u32 %v4957_v42, %v4573_v40 }
 0x260   :  { %v934_v50 = vrot.slane %v918_v49, 6  ;;  %v928_v30 = vsel %vm927_vm6, %v4986_v32, %v924_v5  ;;  %v4765_v32 = vld [vmem:[%s7406_s7 + $0x1a4] sm:$0xf0] }
 0x261   :  { %v935_v24 = vrot.slane %v928_v30, 5  ;;  %v3806_v26 = vor.u32 %v4765_v32, %v3805_v61  ;;  %v4029_v5 = vld [vmem:[%s7406_s7 + $0x348] sm:$0xf] }
 0x262   :  { %v4285_v49 = vld [vmem:[%s7406_s7 + $0x548] sm:$0xf]  ;;  %v4030_v51 = vor.u32 %v4821_v54, %v4029_v5 }
 0x263   :  { %v938_v55 = vsel %vm937_vm8, %v934_v50, %v935_v24  ;;  %v4885_v50 = vld [vmem:[%s7406_s7 + $0x564] sm:$0xf0] }
 0x264   :  { %v940_v56 = vsel %vm939_vm11, %v936_v53, %v938_v55  ;;  %v4541_v30 = vld [vmem:[%s7406_s7 + $0x748] sm:$0xf]  ;;  %v4286_v10 = vor.u32 %v4885_v50, %v4285_v49 }
 0x265   :  { %v942_v57 = vmul.f32 %v940_v56, %v884_v47  ;;  %v4949_v24 = vld [vmem:[%s7406_s7 + $0x764] sm:$0xf0]  ;;  %v3774_v47 = vor.u32 %v4757_v46, %v3773_v45 }
 0x266   :  { %v3741_v53 = vld [vmem:[%s7406_s7 + $0x108] sm:$0xf]  ;;  %v4542_v56 = vor.u32 %v4949_v24, %v4541_v30 }
 0x267   :  { %v944_v63 = vperm.slane %v942_v57, 0  ;;  %v945_v0 = vperm.slane %v942_v57, 1  ;;  %v946_v1 = vperm.slane %v942_v57, 2  ;;  %v947_v2 = vperm.slane %v942_v57, 3  ;;  %v4749_v55 = vld [vmem:[%s7406_s7 + $0x124] sm:$0xf0] }
 0x268   :  { %v3997_v57 = vld [vmem:[%s7406_s7 + $0x308] sm:$0xf] }
 0x269   :  { %v952_v52 = vmul.f32 %v944_v63, %v5784_v15  ;;  %v953_v4 = vmul.f32 %v945_v0, %v5795_v22  ;;  %v954_v6 = vmul.f32 %v946_v1, %v5900_v39  ;;  %v955_v8 = vmul.f32 %v947_v2, %v5913_v16  ;;  %v4093_v15 = vld [vmem:[%s7406_s7 + $0x3c8] sm:$0xf] }
 0x26a   :  { %v4837_v22 = vld [vmem:[%s7406_s7 + $0x3e4] sm:$0xf0]  ;;  %v3742_v0 = vor.u32 %v4749_v55, %v3741_v53  ;;  %v3839_v53 = vld [vmem:[%s7406_s7 + $0x1e8] sm:$0xf0] }
 0x26b   :  { %v967_v12 = vadd.f32 %v959_v58, %v952_v52  ;;  %v968_v13 = vadd.f32 %v960_v59, %v953_v4  ;;  %v969_v7 = vadd.f32 %v961_v60, %v954_v6  ;;  %v970_v14 = vadd.f32 %v962_v62, %v955_v8  ;;  %v4349_v39 = vld [vmem:[%s7406_s7 + $0x5c8] sm:$0xf]  ;;  %v4833_v55 = vld [vmem:[%s7406_s7 + $0x3cc] sm:$0xf] }
 0x26c   :  { %v4901_v16 = vld [vmem:[%s7406_s7 + $0x5e4] sm:$0xf0]  ;;  %v4094_v28 = vor.u32 %v4837_v22, %v4093_v15 }
 0x26d   :  { %v971_v19 = vmax.f32 %v967_v12, 0.0  ;;  %v972_v20 = vmax.f32 %v968_v13, 0.0  ;;  %v973_v21 = vmax.f32 %v969_v7, 0.0  ;;  %v974_v3 = vmax.f32 %v970_v14, 0.0  ;;  %v4813_v58 = vld [vmem:[%s7406_s7 + $0x324] sm:$0xf0] }
 0x26e   :  { %v4350_v33 = vor.u32 %v4901_v16, %v4349_v39  ;;  %v4253_v59 = vld [vmem:[%s7406_s7 + $0x508] sm:$0xf]  ;;  %v3998_v1 = vor.u32 %v4813_v58, %v3997_v57 }
 0x26f   :  { %v6134_v23 = vpack.c.bf16 %v971_v19, %v971_v19  ;;  %v6136_v29 = vpack.c.bf16 %v972_v20, %v972_v20  ;;  %v6138_v11 = vpack.c.bf16 %v973_v21, %v973_v21  ;;  %v6140_v31 = vpack.c.bf16 %v974_v3, %v974_v3  ;;  %v4877_v60 = vld [vmem:[%s7406_s7 + $0x524] sm:$0xf0] }
 0x270   :  { %v4509_v62 = vld [vmem:[%s7406_s7 + $0x708] sm:$0xf]  ;;  %v4254_v4 = vor.u32 %v4877_v60, %v4253_v59  ;;  %v4351_v59 = vld [vmem:[%s7406_s7 + $0x5e8] sm:$0xf0] }
 0x271   :  { %2523 = vmatmul.bf16.vlgmr.msra.gmra.mxu3 %v6134_v23  ;;  %2536 = vmatmul.bf16.vlgmr.msrb.gmra.mxu0 %v6136_v29  ;;  %v4941_v63 = vld [vmem:[%s7406_s7 + $0x724] sm:$0xf0]  ;;  %v4961_v60 = vld [vmem:[%s7406_s7 + $0x7cc] sm:$0xf] }
 0x272   :  { %2549 = vmatmul.bf16.vlgmr.msrb.gmra.mxu1 %v6138_v11  ;;  %2562 = vmatmul.bf16.vlgmr.msrb.gmra.mxu2 %v6140_v31  ;;  %v3709_v2 = vld [vmem:[%s7406_s7 + $0xc8] sm:$0xf]  ;;  %v4510_v6 = vor.u32 %v4941_v63, %v4509_v62  ;;  %v4607_v62 = vld [vmem:[%s7406_s7 + $0x7e8] sm:$0xf0] }
 0x273   :  { %2619 = vmatpush.bf16.msra.mxu3 %v3838_v27  ;;  %2632 = vmatpush.bf16.msrb.mxu0 %v4094_v28  ;;  %v4741_v52 = vld [vmem:[%s7406_s7 + $0xe4] sm:$0xf0] }
 0x274   :  { %2645 = vmatpush.bf16.msrb.mxu1 %v4350_v33  ;;  %2658 = vmatpush.bf16.msrb.mxu2 %v4606_v34  ;;  %v3965_v8 = vld [vmem:[%s7406_s7 + $0x2c8] sm:$0xf]  ;;  %v3710_v17 = vor.u32 %v4741_v52, %v3709_v2  ;;  %v4761_v52 = vld [vmem:[%s7406_s7 + $0x18c] sm:$0xf] }
 0x275   :  { %v4805_v9 = vld [vmem:[%s7406_s7 + $0x2e4] sm:$0xf0] }
 0x276   :  { %v4221_v12 = vld [vmem:[%s7406_s7 + $0x4c8] sm:$0xf]  ;;  %v3966_v15 = vor.u32 %v4805_v9, %v3965_v8  ;;  %v4610_v8 = vor.u32 %v4961_v60, %v4607_v62  ;;  %v4825_v9 = vld [vmem:[%s7406_s7 + $0x38c] sm:$0xf] }
 0x277   :  { %2620 = vmatpush.bf16.msra.mxu3 %v3806_v26  ;;  %2633 = vmatpush.bf16.msrb.mxu0 %v4062_v43  ;;  %v4869_v13 = vld [vmem:[%s7406_s7 + $0x4e4] sm:$0xf0]  ;;  %v3935_v60 = vld [vmem:[%s7406_s7 + $0x2a8] sm:$0xf0] }
 0x278   :  { %2646 = vmatpush.bf16.msrb.mxu1 %v4318_v48  ;;  %2659 = vmatpush.bf16.msrb.mxu2 %v4574_v44  ;;  %v4477_v7 = vld [vmem:[%s7406_s7 + $0x6c8] sm:$0xf]  ;;  %v4222_v16 = vor.u32 %v4869_v13, %v4221_v12  ;;  %v4063_v12 = vld [vmem:[%s7406_s7 + $0x3a8] sm:$0xf0] }
 0x279   :  { %v4933_v14 = vld [vmem:[%s7406_s7 + $0x6e4] sm:$0xf0]  ;;  %v4889_v13 = vld [vmem:[%s7406_s7 + $0x58c] sm:$0xf] }
 0x27a   :  { %v3677_v22 = vld [vmem:[%s7406_s7 + $0x88] sm:$0xf]  ;;  %v4478_v18 = vor.u32 %v4933_v14, %v4477_v7  ;;  %v4319_v7 = vld [vmem:[%s7406_s7 + $0x5a8] sm:$0xf0] }
 0x27b   :  { %2621 = vmatpush.bf16.msra.mxu3 %v3774_v47  ;;  %2634 = vmatpush.bf16.msrb.mxu0 %v4030_v51  ;;  %v4733_v39 = vld [vmem:[%s7406_s7 + $0xa4] sm:$0xf0]  ;;  %v4769_v51 = vld [vmem:[%s7406_s7 + $0x1cc] sm:$0xf] }
 0x27c   :  { %2647 = vmatpush.bf16.msrb.mxu1 %v4286_v10  ;;  %2660 = vmatpush.bf16.msrb.mxu2 %v4542_v56  ;;  %v3933_v19 = vld [vmem:[%s7406_s7 + $0x288] sm:$0xf]  ;;  %v3678_v28 = vor.u32 %v4733_v39, %v3677_v22  ;;  %v4095_v10 = vld [vmem:[%s7406_s7 + $0x3e8] sm:$0xf0]  ;;  %v4066_v22 = vor.u32 %v4825_v9, %v4063_v12 }
 0x27d   :  { %v4797_v20 = vld [vmem:[%s7406_s7 + $0x2a4] sm:$0xf0]  ;;  %v4897_v56 = vld [vmem:[%s7406_s7 + $0x5cc] sm:$0xf]  ;;  %v4098_v2 = vor.u32 %v4833_v55, %v4095_v10 }
 0x27e   :  { %v4189_v21 = vld [vmem:[%s7406_s7 + $0x488] sm:$0xf]  ;;  %v3934_v61 = vor.u32 %v4797_v20, %v3933_v19  ;;  %v4953_v14 = vld [vmem:[%s7406_s7 + $0x78c] sm:$0xf] }
 0x27f   :  { %2622 = vmatpush.bf16.msra.mxu3 %v3742_v0  ;;  %2635 = vmatpush.bf16.msrb.mxu0 %v3998_v1  ;;  %v4861_v3 = vld [vmem:[%s7406_s7 + $0x4a4] sm:$0xf0]  ;;  %v3842_v1 = vor.u32 %v4769_v51, %v3839_v53  ;;  %v4753_v39 = vld [vmem:[%s7406_s7 + $0x14c] sm:$0xf] }
 0x280   :  { %2648 = vmatpush.bf16.msrb.mxu1 %v4254_v4  ;;  %2661 = vmatpush.bf16.msrb.mxu2 %v4510_v6  ;;  %v4445_v25 = vld [vmem:[%s7406_s7 + $0x688] sm:$0xf]  ;;  %v4190_v34 = vor.u32 %v4861_v3, %v4189_v21  ;;  %v3807_v4 = vld [vmem:[%s7406_s7 + $0x1a8] sm:$0xf0]  ;;  %v4354_v6 = vor.u32 %v4897_v56, %v4351_v59 }
 0x281   :  { %2575 = vmatmul.bf16.vlgmr.msrb.gmra.mxu3 %v6134_v23  ;;  %2588 = vmatmul.bf16.vlgmr.msra.gmra.mxu0 %v6136_v29  ;;  %v4925_v27 = vld [vmem:[%s7406_s7 + $0x6a4] sm:$0xf0]  ;;  %v4817_v20 = vld [vmem:[%s7406_s7 + $0x34c] sm:$0xf] }
 0x282   :  { %2601 = vmatmul.bf16.vlgmr.msra.gmra.mxu1 %v6138_v11  ;;  %2614 = vmatmul.bf16.vlgmr.msra.gmra.mxu2 %v6140_v31  ;;  %v3645_v32 = vld [vmem:[%s7406_s7 + $0x48] sm:$0xf]  ;;  %v4446_v35 = vor.u32 %v4925_v27, %v4445_v25  ;;  %v4031_v21 = vld [vmem:[%s7406_s7 + $0x368] sm:$0xf0] }
 0x283   :  { %2623 = vmatpush.bf16.msra.mxu3 %v3710_v17  ;;  %2636 = vmatpush.bf16.msrb.mxu0 %v3966_v15  ;;  %v4725_v33 = vld [vmem:[%s7406_s7 + $0x64] sm:$0xf0]  ;;  %v4575_v17 = vld [vmem:[%s7406_s7 + $0x7a8] sm:$0xf0]  ;;  %v3810_v15 = vor.u32 %v4761_v52, %v3807_v4 }
 0x284   :  { %2649 = vmatpush.bf16.msrb.mxu1 %v4222_v16  ;;  %2662 = vmatpush.bf16.msrb.mxu2 %v4478_v18  ;;  %v3901_v36 = vld [vmem:[%s7406_s7 + $0x248] sm:$0xf]  ;;  %v3646_v45 = vor.u32 %v4725_v33, %v3645_v32  ;;  %v3775_v16 = vld [vmem:[%s7406_s7 + $0x168] sm:$0xf0]  ;;  %v4322_v18 = vor.u32 %v4889_v13, %v4319_v7  ;;  %v4578_v19 = vor.u32 %v4953_v14, %v4575_v17 }
 0x285   :  { %v4789_v37 = vld [vmem:[%s7406_s7 + $0x264] sm:$0xf0]  ;;  %v4881_v3 = vld [vmem:[%s7406_s7 + $0x54c] sm:$0xf]  ;;  %v4034_v32 = vor.u32 %v4817_v20, %v4031_v21 }
 0x286   :  { %v4157_v38 = vld [vmem:[%s7406_s7 + $0x448] sm:$0xf]  ;;  %v3902_v46 = vor.u32 %v4789_v37, %v3901_v36  ;;  %v4287_v25 = vld [vmem:[%s7406_s7 + $0x568] sm:$0xf0] }
 0x287   :  { %v4853_v40 = vld [vmem:[%s7406_s7 + $0x464] sm:$0xf0]  ;;  %2624 = vmatpush.bf16.msra.mxu3 %v3678_v28  ;;  %2637 = vmatpush.bf16.msrb.mxu0 %v3934_v61  ;;  %v4945_v27 = vld [vmem:[%s7406_s7 + $0x74c] sm:$0xf]  ;;  %v3778_v61 = vor.u32 %v4753_v39, %v3775_v16 }
 0x288   :  { %v4413_v42 = vld [vmem:[%s7406_s7 + $0x648] sm:$0xf]  ;;  %2650 = vmatpush.bf16.msrb.mxu1 %v4190_v34  ;;  %2663 = vmatpush.bf16.msrb.mxu2 %v4446_v35  ;;  %v4158_v54 = vor.u32 %v4853_v40, %v4157_v38  ;;  %v4543_v28 = vld [vmem:[%s7406_s7 + $0x768] sm:$0xf0]  ;;  %v4290_v35 = vor.u32 %v4881_v3, %v4287_v25 }
 0x289   :  { %v4917_v26 = vld [vmem:[%s7406_s7 + $0x664] sm:$0xf0]  ;;  %v4745_v33 = vld [vmem:[%s7406_s7 + $0x10c] sm:$0xf]  ;;  %v4546_v36 = vor.u32 %v4945_v27, %v4543_v28 }
 0x28a   :  { %v3613_v43 = vld [vmem:[%s7406_s7 + $0x8] sm:$0xf]  ;;  %v4414_v49 = vor.u32 %v4917_v26, %v4413_v42  ;;  %v3743_v34 = vld [vmem:[%s7406_s7 + $0x128] sm:$0xf0] }
 0x28b   :  { %v4717_v48 = vld [vmem:[%s7406_s7 + $0x24] sm:$0xf0]  ;;  %2625 = vmatpush.bf16.msra.mxu3 %v3646_v45  ;;  %2638 = vmatpush.bf16.msrb.mxu0 %v3902_v46  ;;  %v4809_v37 = vld [vmem:[%s7406_s7 + $0x30c] sm:$0xf]  ;;  %v3746_v45 = vor.u32 %v4745_v33, %v3743_v34  ;;  %v4774_v33 = vld [vmem:[%s7406_s7 + $0x1ec] sm:$0xf0] }
 0x28c   :  { %v3869_v44 = vld [vmem:[%s7406_s7 + $0x208] sm:$0xf]  ;;  %v3614_v57 = vor.u32 %v4717_v48, %v3613_v43  ;;  %2651 = vmatpush.bf16.msrb.mxu1 %v4158_v54  ;;  %2664 = vmatpush.bf16.msrb.mxu2 %v4414_v49  ;;  %v3999_v38 = vld [vmem:[%s7406_s7 + $0x328] sm:$0xf0]  ;;  %v4101_v34 = vld [vmem:[%s7406_s7 + $0x3d0] sm:$0xf] }
 0x28d   :  { %v4781_v5 = vld [vmem:[%s7406_s7 + $0x224] sm:$0xf0]  ;;  %v4873_v40 = vld [vmem:[%s7406_s7 + $0x50c] sm:$0xf]  ;;  %v4002_v46 = vor.u32 %v4809_v37, %v3999_v38 }
 0x28e   :  { %v4125_v50 = vld [vmem:[%s7406_s7 + $0x408] sm:$0xf]  ;;  %v3870_v58 = vor.u32 %v4781_v5, %v3869_v44  ;;  %v4255_v42 = vld [vmem:[%s7406_s7 + $0x528] sm:$0xf0] }
 0x28f   :  { %v4845_v30 = vld [vmem:[%s7406_s7 + $0x424] sm:$0xf0]  ;;  %2626 = vmatpush.bf16.msra.mxu3 %v3614_v57  ;;  %v4937_v26 = vld [vmem:[%s7406_s7 + $0x70c] sm:$0xf]  ;;  %v4258_v5 = vor.u32 %v4873_v40, %v4255_v42  ;;  %v4902_v40 = vld [vmem:[%s7406_s7 + $0x5ec] sm:$0xf0] }
 0x290   :  { %v4381_v24 = vld [vmem:[%s7406_s7 + $0x608] sm:$0xf]  ;;  %v4126_v63 = vor.u32 %v4845_v30, %v4125_v50  ;;  %2639 = vmatpush.bf16.msrb.mxu0 %v3870_v58  ;;  %v4511_v43 = vld [vmem:[%s7406_s7 + $0x728] sm:$0xf0]  ;;  %v4613_v42 = vld [vmem:[%s7406_s7 + $0x7d0] sm:$0xf] }
 0x291   :  { %v4909_v47 = vld [vmem:[%s7406_s7 + $0x624] sm:$0xf0]  ;;  %v4737_v48 = vld [vmem:[%s7406_s7 + $0xcc] sm:$0xf]  ;;  %v4514_v54 = vor.u32 %v4937_v26, %v4511_v43  ;;  %v4966_v26 = vld [vmem:[%s7406_s7 + $0x7ec] sm:$0xf0] }
 0x292   :  { %v4382_v0 = vor.u32 %v4909_v47, %v4381_v24  ;;  %2652 = vmatpush.bf16.msrb.mxu1 %v4126_v63  ;;  %2627 = vmatmul.bf16.vlgmr.msra.gmra.mxu3 %v6134_v23  ;;  %v3711_v44 = vld [vmem:[%s7406_s7 + $0xe8] sm:$0xf0] }
 0x293   :  { %2671 = vmatpush.bf16.msrb.mxu3 %v3842_v1  ;;  %2640 = vmatmul.bf16.vlgmr.msrb.gmra.mxu0 %v6136_v29  ;;  %v4801_v49 = vld [vmem:[%s7406_s7 + $0x2cc] sm:$0xf]  ;;  %v3714_v53 = vor.u32 %v4737_v48, %v3711_v44  ;;  %v3813_v44 = vld [vmem:[%s7406_s7 + $0x190] sm:$0xf] }
 0x294   :  { %2665 = vmatpush.bf16.msrb.mxu2 %v4382_v0  ;;  %2684 = vmatpush.bf16.msra.mxu0 %v4098_v2  ;;  %v3967_v50 = vld [vmem:[%s7406_s7 + $0x2e8] sm:$0xf0] }
 0x295   :  { %2653 = vmatmul.bf16.vlgmr.msrb.gmra.mxu1 %v6138_v11  ;;  %v4865_v30 = vld [vmem:[%s7406_s7 + $0x4cc] sm:$0xf]  ;;  %v3970_v55 = vor.u32 %v4801_v49, %v3967_v50  ;;  %v4614_v49 = vor.u32 %v4966_v26, %v4613_v42  ;;  %v4069_v50 = vld [vmem:[%s7406_s7 + $0x390] sm:$0xf] }
 0x296   :  { %2697 = vmatpush.bf16.msra.mxu1 %v4354_v6  ;;  %v4223_v24 = vld [vmem:[%s7406_s7 + $0x4e8] sm:$0xf0]  ;;  %v4798_v42 = vld [vmem:[%s7406_s7 + $0x2ac] sm:$0xf0] }
 0x297   :  { %2666 = vmatmul.bf16.vlgmr.msrb.gmra.mxu2 %v6140_v31  ;;  %2672 = vmatpush.bf16.msrb.mxu3 %v3810_v15  ;;  %v4929_v47 = vld [vmem:[%s7406_s7 + $0x6cc] sm:$0xf]  ;;  %v4226_v57 = vor.u32 %v4865_v30, %v4223_v24  ;;  %v4830_v30 = vld [vmem:[%s7406_s7 + $0x3ac] sm:$0xf0] }
 0x298   :  { %2710 = vmatpush.bf16.msra.mxu2 %v4610_v8  ;;  %2685 = vmatpush.bf16.msra.mxu0 %v4066_v22  ;;  %v4479_v51 = vld [vmem:[%s7406_s7 + $0x6e8] sm:$0xf0]  ;;  %v4325_v24 = vld [vmem:[%s7406_s7 + $0x590] sm:$0xf] }
 0x299   :  { %v4729_v10 = vld [vmem:[%s7406_s7 + $0x8c] sm:$0xf]  ;;  %v4482_v58 = vor.u32 %v4929_v47, %v4479_v51  ;;  %v4894_v47 = vld [vmem:[%s7406_s7 + $0x5ac] sm:$0xf0] }
 0x29a   :  { %2698 = vmatpush.bf16.msra.mxu1 %v4322_v18  ;;  %v3679_v56 = vld [vmem:[%s7406_s7 + $0xa8] sm:$0xf0]  ;;  %v4581_v51 = vld [vmem:[%s7406_s7 + $0x790] sm:$0xf] }
 0x29b   :  { %2673 = vmatpush.bf16.msrb.mxu3 %v3778_v61  ;;  %v4793_v59 = vld [vmem:[%s7406_s7 + $0x28c] sm:$0xf]  ;;  %v3682_v2 = vor.u32 %v4729_v10, %v3679_v56  ;;  %v4070_v10 = vor.u32 %v4830_v30, %v4069_v50  ;;  %v3781_v56 = vld [vmem:[%s7406_s7 + $0x150] sm:$0xf] }
 0x29c   :  { %2711 = vmatpush.bf16.msra.mxu2 %v4578_v19  ;;  %2686 = vmatpush.bf16.msra.mxu0 %v4034_v32  ;;  %v4857_v62 = vld [vmem:[%s7406_s7 + $0x48c] sm:$0xf]  ;;  %v3938_v52 = vor.u32 %v4793_v59, %v3935_v60  ;;  %v3845_v32 = vld [vmem:[%s7406_s7 + $0x1d0] sm:$0xf] }
 0x29d   :  { %v4191_v63 = vld [vmem:[%s7406_s7 + $0x4a8] sm:$0xf0]  ;;  %v4037_v60 = vld [vmem:[%s7406_s7 + $0x350] sm:$0xf] }
 0x29e   :  { %2699 = vmatpush.bf16.msra.mxu1 %v4290_v35  ;;  %v4921_v0 = vld [vmem:[%s7406_s7 + $0x68c] sm:$0xf]  ;;  %v4194_v8 = vor.u32 %v4857_v62, %v4191_v63  ;;  %v4838_v35 = vld [vmem:[%s7406_s7 + $0x3ec] sm:$0xf0] }
 0x29f   :  { %2674 = vmatpush.bf16.msrb.mxu3 %v3746_v45  ;;  %v4447_v1 = vld [vmem:[%s7406_s7 + $0x6a8] sm:$0xf0]  ;;  %v4102_v48 = vor.u32 %v4838_v35, %v4101_v34  ;;  %v4822_v62 = vld [vmem:[%s7406_s7 + $0x36c] sm:$0xf0] }
 0x2a0   :  { %2712 = vmatpush.bf16.msra.mxu2 %v4546_v36  ;;  %2687 = vmatpush.bf16.msra.mxu0 %v4002_v46  ;;  %v4721_v4 = vld [vmem:[%s7406_s7 + $0x4c] sm:$0xf]  ;;  %v4450_v9 = vor.u32 %v4921_v0, %v4447_v1  ;;  %v4357_v36 = vld [vmem:[%s7406_s7 + $0x5d0] sm:$0xf]  ;;  %v3846_v46 = vor.u32 %v4774_v33, %v3845_v32 }
 0x2a1   :  { %v3647_v6 = vld [vmem:[%s7406_s7 + $0x68] sm:$0xf0]  ;;  %v4293_v63 = vld [vmem:[%s7406_s7 + $0x550] sm:$0xf] }
 0x2a2   :  { %2700 = vmatpush.bf16.msra.mxu1 %v4258_v5  ;;  %v4785_v12 = vld [vmem:[%s7406_s7 + $0x24c] sm:$0xf]  ;;  %v3650_v39 = vor.u32 %v4721_v4, %v3647_v6  ;;  %v4766_v5 = vld [vmem:[%s7406_s7 + $0x1ac] sm:$0xf0]  ;;  %v4038_v4 = vor.u32 %v4822_v62, %v4037_v60 }
 0x2a3   :  { %2675 = vmatpush.bf16.msrb.mxu3 %v3714_v53  ;;  %v3903_v13 = vld [vmem:[%s7406_s7 + $0x268] sm:$0xf0]  ;;  %v4958_v53 = vld [vmem:[%s7406_s7 + $0x7ac] sm:$0xf0] }
 0x2a4   :  { %2713 = vmatpush.bf16.msra.mxu2 %v4514_v54  ;;  %2688 = vmatpush.bf16.msra.mxu0 %v3970_v55  ;;  %v4849_v7 = vld [vmem:[%s7406_s7 + $0x44c] sm:$0xf]  ;;  %v3906_v16 = vor.u32 %v4785_v12, %v3903_v13  ;;  %v4358_v54 = vor.u32 %v4902_v40, %v4357_v36  ;;  %v3814_v55 = vor.u32 %v4766_v5, %v3813_v44  ;;  %v4886_v0 = vld [vmem:[%s7406_s7 + $0x56c] sm:$0xf0] }
 0x2a5   :  { %v4159_v14 = vld [vmem:[%s7406_s7 + $0x468] sm:$0xf0]  ;;  %v4582_v59 = vor.u32 %v4958_v53, %v4581_v51  ;;  %v4549_v1 = vld [vmem:[%s7406_s7 + $0x750] sm:$0xf] }
 0x2a6   :  { %2701 = vmatpush.bf16.msra.mxu1 %v4226_v57  ;;  %v4913_v17 = vld [vmem:[%s7406_s7 + $0x64c] sm:$0xf]  ;;  %v4162_v21 = vor.u32 %v4849_v7, %v4159_v14  ;;  %v4758_v57 = vld [vmem:[%s7406_s7 + $0x16c] sm:$0xf0] }
 0x2a7   :  { %v4415_v15 = vld [vmem:[%s7406_s7 + $0x668] sm:$0xf0]  ;;  %2676 = vmatpush.bf16.msrb.mxu3 %v3682_v2  ;;  %v4950_v2 = vld [vmem:[%s7406_s7 + $0x76c] sm:$0xf0] }
 0x2a8   :  { %2714 = vmatpush.bf16.msra.mxu2 %v4482_v58  ;;  %v4713_v22 = vld [vmem:[%s7406_s7 + $0xc] sm:$0xf]  ;;  %2689 = vmatpush.bf16.msra.mxu0 %v3938_v52  ;;  %v4418_v3 = vor.u32 %v4913_v17, %v4415_v15  ;;  %v4326_v58 = vor.u32 %v4894_v47, %v4325_v24  ;;  %v3782_v52 = vor.u32 %v4758_v57, %v3781_v56  ;;  %v3749_v6 = vld [vmem:[%s7406_s7 + $0x110] sm:$0xf] }
 0x2a9   :  { %v3615_v18 = vld [vmem:[%s7406_s7 + $0x28] sm:$0xf0]  ;;  %v4550_v12 = vor.u32 %v4950_v2, %v4549_v1  ;;  %v4005_v13 = vld [vmem:[%s7406_s7 + $0x310] sm:$0xf] }
 0x2aa   :  { %v4777_v19 = vld [vmem:[%s7406_s7 + $0x20c] sm:$0xf]  ;;  %2702 = vmatpush.bf16.msra.mxu1 %v4194_v8  ;;  %v3618_v37 = vor.u32 %v4713_v22, %v3615_v18  ;;  %v4750_v8 = vld [vmem:[%s7406_s7 + $0x12c] sm:$0xf0] }
 0x2ab   :  { %v3871_v20 = vld [vmem:[%s7406_s7 + $0x228] sm:$0xf0]  ;;  %2677 = vmatpush.bf16.msrb.mxu3 %v3650_v39  ;;  %v4814_v7 = vld [vmem:[%s7406_s7 + $0x32c] sm:$0xf0]  ;;  %v3750_v39 = vor.u32 %v4750_v8, %v3749_v6  ;;  %v3847_v6 = vld [vmem:[%s7406_s7 + $0x1f0] sm:$0xf0] }
 0x2ac   :  { %2715 = vmatpush.bf16.msra.mxu2 %v4450_v9  ;;  %v4841_v25 = vld [vmem:[%s7406_s7 + $0x40c] sm:$0xf]  ;;  %2690 = vmatpush.bf16.msra.mxu0 %v3906_v16  ;;  %v3874_v38 = vor.u32 %v4777_v19, %v3871_v20  ;;  %v4294_v9 = vor.u32 %v4886_v0, %v4293_v63  ;;  %v4261_v14 = vld [vmem:[%s7406_s7 + $0x510] sm:$0xf]  ;;  %v4006_v16 = vor.u32 %v4814_v7, %v4005_v13  ;;  %v4834_v8 = vld [vmem:[%s7406_s7 + $0x3d4] sm:$0xf] }
 0x2ad   :  { %v4127_v27 = vld [vmem:[%s7406_s7 + $0x428] sm:$0xf0]  ;;  %v4878_v17 = vld [vmem:[%s7406_s7 + $0x52c] sm:$0xf0] }
 0x2ae   :  { %v4905_v28 = vld [vmem:[%s7406_s7 + $0x60c] sm:$0xf]  ;;  %2703 = vmatpush.bf16.msra.mxu1 %v4162_v21  ;;  %v4130_v43 = vor.u32 %v4841_v25, %v4127_v27  ;;  %v4517_v15 = vld [vmem:[%s7406_s7 + $0x710] sm:$0xf]  ;;  %v4262_v20 = vor.u32 %v4878_v17, %v4261_v14  ;;  %v4359_v14 = vld [vmem:[%s7406_s7 + $0x5f0] sm:$0xf0] }
 0x2af   :  { %v4383_v61 = vld [vmem:[%s7406_s7 + $0x628] sm:$0xf0]  ;;  %2678 = vmatpush.bf16.msrb.mxu3 %v3618_v37  ;;  %v4942_v22 = vld [vmem:[%s7406_s7 + $0x72c] sm:$0xf0]  ;;  %v4962_v17 = vld [vmem:[%s7406_s7 + $0x7d4] sm:$0xf] }
 0x2b0   :  { %2716 = vmatpush.bf16.msra.mxu2 %v4418_v3  ;;  %v4386_v45 = vor.u32 %v4905_v28, %v4383_v61  ;;  %2691 = vmatpush.bf16.msra.mxu0 %v3874_v38  ;;  %v3717_v18 = vld [vmem:[%s7406_s7 + $0xd0] sm:$0xf]  ;;  %v4518_v21 = vor.u32 %v4942_v22, %v4517_v15  ;;  %v4615_v15 = vld [vmem:[%s7406_s7 + $0x7f0] sm:$0xf0] }
 0x2b1   :  { %v4742_v19 = vld [vmem:[%s7406_s7 + $0xec] sm:$0xf0] }
 0x2b2   :  { %2704 = vmatpush.bf16.msra.mxu1 %v4130_v43  ;;  %2679 = vmatmul.bf16.vlgmr.msrb.gmra.mxu3 %v6134_v23  ;;  %v3973_v3 = vld [vmem:[%s7406_s7 + $0x2d0] sm:$0xf]  ;;  %v3718_v33 = vor.u32 %v4742_v19, %v3717_v18  ;;  %v4762_v19 = vld [vmem:[%s7406_s7 + $0x194] sm:$0xf] }
 0x2b3   :  { %2723 = vmatpush.bf16.msra.mxu3 %v3846_v46  ;;  %2692 = vmatmul.bf16.vlgmr.msra.gmra.mxu0 %v6136_v29  ;;  %v4806_v25 = vld [vmem:[%s7406_s7 + $0x2ec] sm:$0xf0] }
 0x2b4   :  { %2717 = vmatpush.bf16.msra.mxu2 %v4386_v45  ;;  %2736 = vmatpush.bf16.msrb.mxu0 %v4102_v48  ;;  %v4229_v27 = vld [vmem:[%s7406_s7 + $0x4d0] sm:$0xf]  ;;  %v3974_v34 = vor.u32 %v4806_v25, %v3973_v3  ;;  %v4618_v3 = vor.u32 %v4962_v17, %v4615_v15  ;;  %v4826_v25 = vld [vmem:[%s7406_s7 + $0x394] sm:$0xf] }
 0x2b5   :  { %2705 = vmatmul.bf16.vlgmr.msra.gmra.mxu1 %v6138_v11  ;;  %v4870_v28 = vld [vmem:[%s7406_s7 + $0x4ec] sm:$0xf0]  ;;  %v3943_v17 = vld [vmem:[%s7406_s7 + $0x2b0] sm:$0xf0] }
 0x2b6   :  { %2749 = vmatpush.bf16.msrb.mxu1 %v4358_v54  ;;  %v4485_v61 = vld [vmem:[%s7406_s7 + $0x6d0] sm:$0xf]  ;;  %v4230_v37 = vor.u32 %v4870_v28, %v4229_v27  ;;  %v4071_v27 = vld [vmem:[%s7406_s7 + $0x3b0] sm:$0xf0] }
 0x2b7   :  { %2718 = vmatmul.bf16.vlgmr.msra.gmra.mxu2 %v6140_v31  ;;  %2724 = vmatpush.bf16.msra.mxu3 %v3814_v55  ;;  %v4934_v32 = vld [vmem:[%s7406_s7 + $0x6ec] sm:$0xf0]  ;;  %v4890_v28 = vld [vmem:[%s7406_s7 + $0x594] sm:$0xf] }
 0x2b8   :  { %2762 = vmatpush.bf16.msrb.mxu2 %v4614_v49  ;;  %2737 = vmatpush.bf16.msrb.mxu0 %v4070_v10  ;;  %v3685_v35 = vld [vmem:[%s7406_s7 + $0x90] sm:$0xf]  ;;  %v4486_v38 = vor.u32 %v4934_v32, %v4485_v61  ;;  %v4327_v61 = vld [vmem:[%s7406_s7 + $0x5b0] sm:$0xf0] }
 0x2b9   :  { %v4734_v36 = vld [vmem:[%s7406_s7 + $0xac] sm:$0xf0]  ;;  %v4954_v32 = vld [vmem:[%s7406_s7 + $0x794] sm:$0xf] }
 0x2ba   :  { %2750 = vmatpush.bf16.msrb.mxu1 %v4326_v58  ;;  %v3941_v40 = vld [vmem:[%s7406_s7 + $0x290] sm:$0xf]  ;;  %v3686_v48 = vor.u32 %v4734_v36, %v3685_v35  ;;  %v4074_v35 = vor.u32 %v4826_v25, %v4071_v27  ;;  %v4754_v36 = vld [vmem:[%s7406_s7 + $0x154] sm:$0xf] }
 0x2bb   :  { %2725 = vmatpush.bf16.msra.mxu3 %v3782_v52  ;;  %v4197_v26 = vld [vmem:[%s7406_s7 + $0x490] sm:$0xf]  ;;  %v3942_v44 = vor.u32 %v4798_v42, %v3941_v40  ;;  %v4818_v42 = vld [vmem:[%s7406_s7 + $0x354] sm:$0xf] }
 0x2bc   :  { %2763 = vmatpush.bf16.msrb.mxu2 %v4582_v59  ;;  %2738 = vmatpush.bf16.msrb.mxu0 %v4038_v4  ;;  %v4862_v43 = vld [vmem:[%s7406_s7 + $0x4ac] sm:$0xf0]  ;;  %v4770_v4 = vld [vmem:[%s7406_s7 + $0x1d4] sm:$0xf] }
 0x2bd   :  { %v4453_v45 = vld [vmem:[%s7406_s7 + $0x690] sm:$0xf]  ;;  %v4198_v49 = vor.u32 %v4862_v43, %v4197_v26  ;;  %v4039_v26 = vld [vmem:[%s7406_s7 + $0x370] sm:$0xf0] }
 0x2be   :  { %2751 = vmatpush.bf16.msrb.mxu1 %v4294_v9  ;;  %v4926_v46 = vld [vmem:[%s7406_s7 + $0x6ac] sm:$0xf0]  ;;  %v4103_v9 = vld [vmem:[%s7406_s7 + $0x3f0] sm:$0xf0] }
 0x2bf   :  { %2726 = vmatpush.bf16.msra.mxu3 %v3750_v39  ;;  %v3653_v5 = vld [vmem:[%s7406_s7 + $0x50] sm:$0xf]  ;;  %v4454_v50 = vor.u32 %v4926_v46, %v4453_v45  ;;  %v4106_v18 = vor.u32 %v4834_v8, %v4103_v9  ;;  %v4882_v43 = vld [vmem:[%s7406_s7 + $0x554] sm:$0xf] }
 0x2c0   :  { %2764 = vmatpush.bf16.msrb.mxu2 %v4550_v12  ;;  %2739 = vmatpush.bf16.msrb.mxu0 %v4006_v16  ;;  %v4726_v54 = vld [vmem:[%s7406_s7 + $0x6c] sm:$0xf0]  ;;  %v4898_v12 = vld [vmem:[%s7406_s7 + $0x5d4] sm:$0xf]  ;;  %v3850_v16 = vor.u32 %v4770_v4, %v3847_v6 }
 0x2c1   :  { %v3909_v30 = vld [vmem:[%s7406_s7 + $0x250] sm:$0xf]  ;;  %v3654_v56 = vor.u32 %v4726_v54, %v3653_v5  ;;  %v4295_v45 = vld [vmem:[%s7406_s7 + $0x570] sm:$0xf0]  ;;  %v4042_v5 = vor.u32 %v4818_v42, %v4039_v26 }
 0x2c2   :  { %2752 = vmatpush.bf16.msrb.mxu1 %v4262_v20  ;;  %v4790_v24 = vld [vmem:[%s7406_s7 + $0x26c] sm:$0xf0]  ;;  %v3815_v20 = vld [vmem:[%s7406_s7 + $0x1b0] sm:$0xf0] }
 0x2c3   :  { %2727 = vmatpush.bf16.msra.mxu3 %v3718_v33  ;;  %v4165_v47 = vld [vmem:[%s7406_s7 + $0x450] sm:$0xf]  ;;  %v3910_v57 = vor.u32 %v4790_v24, %v3909_v30  ;;  %v4583_v33 = vld [vmem:[%s7406_s7 + $0x7b0] sm:$0xf0] }
 0x2c4   :  { %2765 = vmatpush.bf16.msrb.mxu2 %v4518_v21  ;;  %2740 = vmatpush.bf16.msrb.mxu0 %v3974_v34  ;;  %v4854_v51 = vld [vmem:[%s7406_s7 + $0x46c] sm:$0xf0]  ;;  %v4362_v21 = vor.u32 %v4898_v12, %v4359_v14  ;;  %v3818_v34 = vor.u32 %v4762_v19, %v3815_v20  ;;  %v4586_v40 = vor.u32 %v4954_v32, %v4583_v33  ;;  %v4946_v46 = vld [vmem:[%s7406_s7 + $0x754] sm:$0xf] }
 0x2c5   :  { %v4421_v53 = vld [vmem:[%s7406_s7 + $0x650] sm:$0xf]  ;;  %v4166_v62 = vor.u32 %v4854_v51, %v4165_v47  ;;  %v4746_v54 = vld [vmem:[%s7406_s7 + $0x114] sm:$0xf] }
 0x2c6   :  { %2753 = vmatpush.bf16.msrb.mxu1 %v4230_v37  ;;  %v4918_v55 = vld [vmem:[%s7406_s7 + $0x66c] sm:$0xf0]  ;;  %v3783_v37 = vld [vmem:[%s7406_s7 + $0x170] sm:$0xf0] }
 0x2c7   :  { %v3621_v10 = vld [vmem:[%s7406_s7 + $0x10] sm:$0xf]  ;;  %2728 = vmatpush.bf16.msra.mxu3 %v3686_v48  ;;  %v4422_v63 = vor.u32 %v4918_v55, %v4421_v53  ;;  %v4551_v48 = vld [vmem:[%s7406_s7 + $0x770] sm:$0xf0] }
 0x2c8   :  { %2766 = vmatpush.bf16.msrb.mxu2 %v4486_v38  ;;  %2741 = vmatpush.bf16.msrb.mxu0 %v3942_v44  ;;  %v4718_v58 = vld [vmem:[%s7406_s7 + $0x2c] sm:$0xf0]  ;;  %v4330_v38 = vor.u32 %v4890_v28, %v4327_v61  ;;  %v3786_v44 = vor.u32 %v4754_v36, %v3783_v37  ;;  %v4554_v30 = vor.u32 %v4946_v46, %v4551_v48  ;;  %v4810_v24 = vld [vmem:[%s7406_s7 + $0x314] sm:$0xf] }
 0x2c9   :  { %v3877_v59 = vld [vmem:[%s7406_s7 + $0x210] sm:$0xf]  ;;  %v3622_v13 = vor.u32 %v4718_v58, %v3621_v10  ;;  %v4007_v47 = vld [vmem:[%s7406_s7 + $0x330] sm:$0xf0] }
 0x2ca   :  { %v4782_v60 = vld [vmem:[%s7406_s7 + $0x22c] sm:$0xf0]  ;;  %2754 = vmatpush.bf16.msrb.mxu1 %v4198_v49  ;;  %v3751_v49 = vld [vmem:[%s7406_s7 + $0x130] sm:$0xf0] }
 0x2cb   :  { %v4133_v0 = vld [vmem:[%s7406_s7 + $0x410] sm:$0xf]  ;;  %2729 = vmatpush.bf16.msra.mxu3 %v3654_v56  ;;  %v3878_v7 = vor.u32 %v4782_v60, %v3877_v59  ;;  %v4874_v51 = vld [vmem:[%s7406_s7 + $0x514] sm:$0xf]  ;;  %v3754_v56 = vor.u32 %v4746_v54, %v3751_v49  ;;  %v4775_v54 = vld [vmem:[%s7406_s7 + $0x1f4] sm:$0xf0] }
 0x2cc   :  { %2767 = vmatpush.bf16.msrb.mxu2 %v4454_v50  ;;  %v4846_v1 = vld [vmem:[%s7406_s7 + $0x42c] sm:$0xf0]  ;;  %2742 = vmatpush.bf16.msrb.mxu0 %v3910_v57  ;;  %v4298_v50 = vor.u32 %v4882_v43, %v4295_v45  ;;  %v4263_v53 = vld [vmem:[%s7406_s7 + $0x530] sm:$0xf0]  ;;  %v4010_v57 = vor.u32 %v4810_v24, %v4007_v47  ;;  %v4109_v49 = vld [vmem:[%s7406_s7 + $0x3d8] sm:$0xf] }
 0x2cd   :  { %v4389_v2 = vld [vmem:[%s7406_s7 + $0x610] sm:$0xf]  ;;  %v4134_v22 = vor.u32 %v4846_v1, %v4133_v0  ;;  %v4938_v55 = vld [vmem:[%s7406_s7 + $0x714] sm:$0xf]  ;;  %v4266_v60 = vor.u32 %v4874_v51, %v4263_v53  ;;  %v4903_v51 = vld [vmem:[%s7406_s7 + $0x5f4] sm:$0xf0] }
 0x2ce   :  { %v4910_v52 = vld [vmem:[%s7406_s7 + $0x62c] sm:$0xf0]  ;;  %2755 = vmatpush.bf16.msrb.mxu1 %v4166_v62  ;;  %v4519_v10 = vld [vmem:[%s7406_s7 + $0x730] sm:$0xf0]  ;;  %v4621_v53 = vld [vmem:[%s7406_s7 + $0x7d8] sm:$0xf] }
 0x2cf   :  { %v4390_v39 = vor.u32 %v4910_v52, %v4389_v2  ;;  %2730 = vmatpush.bf16.msra.mxu3 %v3622_v13  ;;  %v4738_v58 = vld [vmem:[%s7406_s7 + $0xd4] sm:$0xf]  ;;  %v4522_v62 = vor.u32 %v4938_v55, %v4519_v10  ;;  %v4967_v55 = vld [vmem:[%s7406_s7 + $0x7f4] sm:$0xf0] }
 0x2d0   :  { %2768 = vmatpush.bf16.msrb.mxu2 %v4422_v63  ;;  %2743 = vmatpush.bf16.msrb.mxu0 %v3878_v7  ;;  %v3719_v59 = vld [vmem:[%s7406_s7 + $0xf0] sm:$0xf0] }
 0x2d1   :  { %v4802_v63 = vld [vmem:[%s7406_s7 + $0x2d4] sm:$0xf]  ;;  %v3722_v6 = vor.u32 %v4738_v58, %v3719_v59  ;;  %v3821_v59 = vld [vmem:[%s7406_s7 + $0x198] sm:$0xf] }
 0x2d2   :  { %2756 = vmatpush.bf16.msrb.mxu1 %v4134_v22  ;;  %2731 = vmatmul.bf16.vlgmr.msra.gmra.mxu3 %v6134_v23  ;;  %v3975_v0 = vld [vmem:[%s7406_s7 + $0x2f0] sm:$0xf0] }
 0x2d3   :  { %2775 = vmatpush.bf16.msrb.mxu3 %v3850_v16  ;;  %2744 = vmatmul.bf16.vlgmr.msrb.gmra.mxu0 %v6136_v29  ;;  %v4866_v1 = vld [vmem:[%s7406_s7 + $0x4d4] sm:$0xf]  ;;  %v3978_v8 = vor.u32 %v4802_v63, %v3975_v0  ;;  %v4622_v63 = vor.u32 %v4967_v55, %v4621_v53  ;;  %v4077_v0 = vld [vmem:[%s7406_s7 + $0x398] sm:$0xf] }
 0x2d4   :  { %2769 = vmatpush.bf16.msrb.mxu2 %v4390_v39  ;;  %2788 = vmatpush.bf16.msra.mxu0 %v4106_v18  ;;  %v4231_v2 = vld [vmem:[%s7406_s7 + $0x4f0] sm:$0xf0] }
 0x2d5   :  { %2757 = vmatmul.bf16.vlgmr.msrb.gmra.mxu1 %v6138_v11  ;;  %v4930_v52 = vld [vmem:[%s7406_s7 + $0x6d4] sm:$0xf]  ;;  %v4234_v13 = vor.u32 %v4866_v1, %v4231_v2  ;;  %v4831_v1 = vld [vmem:[%s7406_s7 + $0x3b4] sm:$0xf0] }
 0x2d6   :  { %2801 = vmatpush.bf16.msra.mxu1 %v4362_v21  ;;  %v4487_v4 = vld [vmem:[%s7406_s7 + $0x6f0] sm:$0xf0]  ;;  %v4333_v2 = vld [vmem:[%s7406_s7 + $0x598] sm:$0xf] }
 0x2d7   :  { %2770 = vmatmul.bf16.vlgmr.msrb.gmra.mxu2 %v6140_v31  ;;  %2776 = vmatpush.bf16.msrb.mxu3 %v3818_v34  ;;  %v4730_v9 = vld [vmem:[%s7406_s7 + $0x94] sm:$0xf]  ;;  %v4490_v7 = vor.u32 %v4930_v52, %v4487_v4  ;;  %v4895_v52 = vld [vmem:[%s7406_s7 + $0x5b4] sm:$0xf0] }
 0x2d8   :  { %2814 = vmatpush.bf16.msra.mxu2 %v4618_v3  ;;  %2789 = vmatpush.bf16.msra.mxu0 %v4074_v35  ;;  %v3687_v12 = vld [vmem:[%s7406_s7 + $0xb0] sm:$0xf0]  ;;  %v4589_v4 = vld [vmem:[%s7406_s7 + $0x798] sm:$0xf] }
 0x2d9   :  { %v4794_v14 = vld [vmem:[%s7406_s7 + $0x294] sm:$0xf]  ;;  %v3690_v18 = vor.u32 %v4730_v9, %v3687_v12  ;;  %v4078_v9 = vor.u32 %v4831_v1, %v4077_v0  ;;  %v3789_v12 = vld [vmem:[%s7406_s7 + $0x158] sm:$0xf] }
 0x2da   :  { %2802 = vmatpush.bf16.msra.mxu1 %v4330_v38  ;;  %v4858_v15 = vld [vmem:[%s7406_s7 + $0x494] sm:$0xf]  ;;  %v3946_v19 = vor.u32 %v4794_v14, %v3943_v17  ;;  %v4045_v17 = vld [vmem:[%s7406_s7 + $0x358] sm:$0xf] }
 0x2db   :  { %2777 = vmatpush.bf16.msrb.mxu3 %v3786_v44  ;;  %v4199_v22 = vld [vmem:[%s7406_s7 + $0x4b0] sm:$0xf0]  ;;  %v4863_v1 = vld [vmem:[%s7406_s7 + $0x4b4] sm:$0xf0] }
 0x2dc   :  { %2815 = vmatpush.bf16.msra.mxu2 %v4586_v40  ;;  %2790 = vmatpush.bf16.msra.mxu0 %v4042_v5  ;;  %v4922_v39 = vld [vmem:[%s7406_s7 + $0x694] sm:$0xf]  ;;  %v4202_v3 = vor.u32 %v4858_v15, %v4199_v22  ;;  %v3853_v5 = vld [vmem:[%s7406_s7 + $0x1d8] sm:$0xf] }
 0x2dd   :  { %v4455_v16 = vld [vmem:[%s7406_s7 + $0x6b0] sm:$0xf0]  ;;  %v4823_v15 = vld [vmem:[%s7406_s7 + $0x374] sm:$0xf0] }
 0x2de   :  { %2803 = vmatpush.bf16.msra.mxu1 %v4298_v50  ;;  %v4722_v20 = vld [vmem:[%s7406_s7 + $0x54] sm:$0xf]  ;;  %v4458_v25 = vor.u32 %v4922_v39, %v4455_v16  ;;  %v4839_v50 = vld [vmem:[%s7406_s7 + $0x3f4] sm:$0xf0] }
 0x2df   :  { %2778 = vmatpush.bf16.msrb.mxu3 %v3754_v56  ;;  %v3655_v21 = vld [vmem:[%s7406_s7 + $0x70] sm:$0xf0]  ;;  %v4110_v58 = vor.u32 %v4839_v50, %v4109_v49  ;;  %v4301_v22 = vld [vmem:[%s7406_s7 + $0x558] sm:$0xf] }
 0x2e0   :  { %2816 = vmatpush.bf16.msra.mxu2 %v4554_v30  ;;  %2791 = vmatpush.bf16.msra.mxu0 %v4010_v57  ;;  %v4786_v27 = vld [vmem:[%s7406_s7 + $0x254] sm:$0xf]  ;;  %v3658_v36 = vor.u32 %v4722_v20, %v3655_v21  ;;  %v4365_v30 = vld [vmem:[%s7406_s7 + $0x5d8] sm:$0xf]  ;;  %v3854_v57 = vor.u32 %v4775_v54, %v3853_v5  ;;  %v4046_v21 = vor.u32 %v4823_v15, %v4045_v17 }
 0x2e1   :  { %v3911_v28 = vld [vmem:[%s7406_s7 + $0x270] sm:$0xf0]  ;;  %v4887_v39 = vld [vmem:[%s7406_s7 + $0x574] sm:$0xf0] }
 0x2e2   :  { %2804 = vmatpush.bf16.msra.mxu1 %v4266_v60  ;;  %v4850_v61 = vld [vmem:[%s7406_s7 + $0x454] sm:$0xf]  ;;  %v3914_v37 = vor.u32 %v4786_v27, %v3911_v28  ;;  %v4767_v60 = vld [vmem:[%s7406_s7 + $0x1b4] sm:$0xf0]  ;;  %v4302_v28 = vor.u32 %v4887_v39, %v4301_v22 }
 0x2e3   :  { %2779 = vmatpush.bf16.msrb.mxu3 %v3722_v6  ;;  %v4167_v32 = vld [vmem:[%s7406_s7 + $0x470] sm:$0xf0]  ;;  %v4959_v6 = vld [vmem:[%s7406_s7 + $0x7b4] sm:$0xf0] }
 0x2e4   :  { %2817 = vmatpush.bf16.msra.mxu2 %v4522_v62  ;;  %2792 = vmatpush.bf16.msra.mxu0 %v3978_v8  ;;  %v4914_v33 = vld [vmem:[%s7406_s7 + $0x654] sm:$0xf]  ;;  %v4170_v26 = vor.u32 %v4850_v61, %v4167_v32  ;;  %v4366_v62 = vor.u32 %v4903_v51, %v4365_v30  ;;  %v3822_v8 = vor.u32 %v4767_v60, %v3821_v59  ;;  %v4557_v16 = vld [vmem:[%s7406_s7 + $0x758] sm:$0xf] }
 0x2e5   :  { %v4423_v34 = vld [vmem:[%s7406_s7 + $0x670] sm:$0xf0]  ;;  %v4590_v14 = vor.u32 %v4959_v6, %v4589_v4  ;;  %v4751_v27 = vld [vmem:[%s7406_s7 + $0x134] sm:$0xf0] }
 0x2e6   :  { %2805 = vmatpush.bf16.msra.mxu1 %v4234_v13  ;;  %v4714_v35 = vld [vmem:[%s7406_s7 + $0x14] sm:$0xf]  ;;  %v4426_v43 = vor.u32 %v4914_v33, %v4423_v34  ;;  %v4759_v13 = vld [vmem:[%s7406_s7 + $0x174] sm:$0xf0] }
 0x2e7   :  { %2780 = vmatpush.bf16.msrb.mxu3 %v3690_v18  ;;  %v3623_v38 = vld [vmem:[%s7406_s7 + $0x30] sm:$0xf0]  ;;  %v4951_v18 = vld [vmem:[%s7406_s7 + $0x774] sm:$0xf0]  ;;  %v3790_v20 = vor.u32 %v4759_v13, %v3789_v12 }
 0x2e8   :  { %2818 = vmatpush.bf16.msra.mxu2 %v4490_v7  ;;  %2793 = vmatpush.bf16.msra.mxu0 %v3946_v19  ;;  %v4778_v40 = vld [vmem:[%s7406_s7 + $0x214] sm:$0xf]  ;;  %v3626_v24 = vor.u32 %v4714_v35, %v3623_v38  ;;  %v4334_v7 = vor.u32 %v4895_v52, %v4333_v2  ;;  %v4558_v61 = vor.u32 %v4951_v18, %v4557_v16  ;;  %v4013_v32 = vld [vmem:[%s7406_s7 + $0x318] sm:$0xf] }
 0x2e9   :  { %v3879_v42 = vld [vmem:[%s7406_s7 + $0x230] sm:$0xf0]  ;;  %v4815_v33 = vld [vmem:[%s7406_s7 + $0x334] sm:$0xf0] }
 0x2ea   :  { %2806 = vmatpush.bf16.msra.mxu1 %v4202_v3  ;;  %v4842_v45 = vld [vmem:[%s7406_s7 + $0x414] sm:$0xf]  ;;  %v3882_v47 = vor.u32 %v4778_v40, %v3879_v42  ;;  %v4269_v34 = vld [vmem:[%s7406_s7 + $0x518] sm:$0xf]  ;;  %v4014_v40 = vor.u32 %v4815_v33, %v4013_v32 }
 0x2eb   :  { %v4135_v46 = vld [vmem:[%s7406_s7 + $0x430] sm:$0xf0]  ;;  %2781 = vmatpush.bf16.msrb.mxu3 %v3658_v36  ;;  %v4879_v35 = vld [vmem:[%s7406_s7 + $0x534] sm:$0xf0] }
 0x2ec   :  { %2819 = vmatpush.bf16.msra.mxu2 %v4458_v25  ;;  %v4906_v48 = vld [vmem:[%s7406_s7 + $0x614] sm:$0xf]  ;;  %2794 = vmatpush.bf16.msra.mxu0 %v3914_v37  ;;  %v4138_v10 = vor.u32 %v4842_v45, %v4135_v46  ;;  %v3757_v25 = vld [vmem:[%s7406_s7 + $0x118] sm:$0xf] }
 0x2ed   :  { %v4391_v44 = vld [vmem:[%s7406_s7 + $0x630] sm:$0xf0]  ;;  %v4525_v36 = vld [vmem:[%s7406_s7 + $0x718] sm:$0xf]  ;;  %v3758_v38 = vor.u32 %v4751_v27, %v3757_v25 }
 0x2ee   :  { %2807 = vmatpush.bf16.msra.mxu1 %v4170_v26  ;;  %v4394_v56 = vor.u32 %v4906_v48, %v4391_v44  ;;  %v2537_v19 = vpop.f32.mrf.mxu0  ;;  %v4943_v37 = vld [vmem:[%s7406_s7 + $0x734] sm:$0xf0] }
 0x2ef   :  { %2782 = vmatpush.bf16.msrb.mxu3 %v3626_v24  ;;  %v2550_v3 = vpop.f32.mrf.mxu1  ;;  %v3725_v42 = vld [vmem:[%s7406_s7 + $0xd8] sm:$0xf]  ;;  %v4526_v45 = vor.u32 %v4943_v37, %v4525_v36 }
 0x2f0   :  { %2820 = vmatpush.bf16.msra.mxu2 %v4426_v43  ;;  %2795 = vmatpush.bf16.msra.mxu0 %v3882_v47  ;;  %v4743_v26 = vld [vmem:[%s7406_s7 + $0xf4] sm:$0xf0]  ;;  %v4270_v43 = vor.u32 %v4879_v35, %v4269_v34 }
 0x2f1   :  { %v3981_v48 = vld [vmem:[%s7406_s7 + $0x2d8] sm:$0xf]  ;;  %v3726_v53 = vor.u32 %v4743_v26, %v3725_v42 }
 0x2f2   :  { %2808 = vmatpush.bf16.msra.mxu1 %v4138_v10  ;;  %2783 = vmatmul.bf16.vlgmr.msrb.gmra.mxu3 %v6134_v23  ;;  %v4807_v44 = vld [vmem:[%s7406_s7 + $0x2f4] sm:$0xf0] }
 0x2f3   :  { %2827 = vmatpush.bf16.msra.mxu3 %v3854_v57  ;;  %2796 = vmatmul.bf16.vlgmr.msra.gmra.mxu0 %v6136_v29  ;;  %v4237_v5 = vld [vmem:[%s7406_s7 + $0x4d8] sm:$0xf]  ;;  %v3982_v55 = vor.u32 %v4807_v44, %v3981_v48  ;;  %v4111_v48 = vld [vmem:[%s7406_s7 + $0x3f8] sm:$0xf0] }
 0x2f4   :  { %2821 = vmatpush.bf16.msra.mxu2 %v4394_v56  ;;  %2840 = vmatpush.bf16.msrb.mxu0 %v4110_v58  ;;  %v2524_v46 = vpop.f32.mrf.mxu3  ;;  %v4871_v50 = vld [vmem:[%s7406_s7 + $0x4f4] sm:$0xf0]  ;;  %v4899_v44 = vld [vmem:[%s7406_s7 + $0x5dc] sm:$0xf] }
 0x2f5   :  { %2809 = vmatmul.bf16.vlgmr.msra.gmra.mxu1 %v6138_v11  ;;  %v2538_v54 = vadd.f32 %v2537_v19, %v2524_v46  ;;  %v2563_v49 = vpop.f32.mrf.mxu2  ;;  %v4493_v30 = vld [vmem:[%s7406_s7 + $0x6d8] sm:$0xf]  ;;  %v4238_v58 = vor.u32 %v4871_v50, %v4237_v5  ;;  %v4835_v46 = vld [vmem:[%s7406_s7 + $0x3dc] sm:$0xf] }
 0x2f6   :  { %2853 = vmatpush.bf16.msrb.mxu1 %v4366_v62  ;;  %v4935_v24 = vld [vmem:[%s7406_s7 + $0x6f4] sm:$0xf0]  ;;  %v2539_v47 = vpop.f32.mrf.mxu0  ;;  %v4367_v5 = vld [vmem:[%s7406_s7 + $0x5f8] sm:$0xf0] }
 0x2f7   :  { %2822 = vmatmul.bf16.vlgmr.msra.gmra.mxu2 %v6140_v31  ;;  %2828 = vmatpush.bf16.msra.mxu3 %v3822_v8  ;;  %v2551_v51 = vadd.f32 %v2550_v3, %v2538_v54  ;;  %v2552_v10 = vpop.f32.mrf.mxu1  ;;  %v3693_v56 = vld [vmem:[%s7406_s7 + $0x98] sm:$0xf]  ;;  %v4494_v59 = vor.u32 %v4935_v24, %v4493_v30  ;;  %v4963_v30 = vld [vmem:[%s7406_s7 + $0x7dc] sm:$0xf] }
 0x2f8   :  { %2866 = vmatpush.bf16.msrb.mxu2 %v4622_v63  ;;  %2841 = vmatpush.bf16.msrb.mxu0 %v4078_v9  ;;  %v4735_v57 = vld [vmem:[%s7406_s7 + $0xb4] sm:$0xf0]  ;;  %v4623_v24 = vld [vmem:[%s7406_s7 + $0x7f8] sm:$0xf0] }
 0x2f9   :  { %v3949_v60 = vld [vmem:[%s7406_s7 + $0x298] sm:$0xf]  ;;  %v7045_v0 = vadd.f32 %v2563_v49, %v2551_v51  ;;  %v3694_v6 = vor.u32 %v4735_v57, %v3693_v56  ;;  %v4114_v56 = vor.u32 %v4835_v46, %v4111_v48  ;;  %v4875_v46 = vld [vmem:[%s7406_s7 + $0x51c] sm:$0xf] }
 0x2fa   :  { %2854 = vmatpush.bf16.msrb.mxu1 %v4334_v7  ;;  %v4799_v62 = vld [vmem:[%s7406_s7 + $0x2b4] sm:$0xf0]  ;;  %v4271_v48 = vld [vmem:[%s7406_s7 + $0x538] sm:$0xf0] }
 0x2fb   :  { %2829 = vmatpush.bf16.msra.mxu3 %v3790_v20  ;;  %v4205_v63 = vld [vmem:[%s7406_s7 + $0x498] sm:$0xf]  ;;  %v2931_v4 = vrot.slane %v7045_v0, 4  ;;  %v3950_v8 = vor.u32 %v4799_v62, %v3949_v60  ;;  %v3823_v60 = vld [vmem:[%s7406_s7 + $0x1b8] sm:$0xf0]  ;;  %v4370_v62 = vor.u32 %v4899_v44, %v4367_v5 }
 0x2fc   :  { %2867 = vmatpush.bf16.msrb.mxu2 %v4590_v14  ;;  %2842 = vmatpush.bf16.msrb.mxu0 %v4046_v21  ;;  %v4461_v2 = vld [vmem:[%s7406_s7 + $0x698] sm:$0xf]  ;;  %v4206_v13 = vor.u32 %v4863_v1, %v4205_v63  ;;  %v2526_v14 = vpop.f32.mrf.mxu3  ;;  %v4626_v63 = vor.u32 %v4963_v30, %v4623_v24  ;;  %v4739_v30 = vld [vmem:[%s7406_s7 + $0xdc] sm:$0xf] }
 0x2fd   :  { %v4927_v52 = vld [vmem:[%s7406_s7 + $0x6b4] sm:$0xf0]  ;;  %v2932_v39 = vadd.f32 %v2931_v4, %v7045_v0  ;;  %v2565_v16 = vpop.f32.mrf.mxu2  ;;  %v4891_v4 = vld [vmem:[%s7406_s7 + $0x59c] sm:$0xf] }
 0x2fe   :  { %2855 = vmatpush.bf16.msrb.mxu1 %v4302_v28  ;;  %v3661_v9 = vld [vmem:[%s7406_s7 + $0x58] sm:$0xf]  ;;  %v4462_v7 = vor.u32 %v4927_v52, %v4461_v2  ;;  %v2589_v21 = vpop.f32.mrf.mxu0  ;;  %v4827_v2 = vld [vmem:[%s7406_s7 + $0x39c] sm:$0xf] }
 0x2ff   :  { %2830 = vmatpush.bf16.msra.mxu3 %v3758_v38  ;;  %v4727_v12 = vld [vmem:[%s7406_s7 + $0x74] sm:$0xf0]  ;;  %v2933_v28 = vrot.slane %v2932_v39, 2  ;;  %v2602_v33 = vpop.f32.mrf.mxu1  ;;  %v4079_v52 = vld [vmem:[%s7406_s7 + $0x3b8] sm:$0xf0] }
 0x300   :  { %2868 = vmatpush.bf16.msrb.mxu2 %v4558_v61  ;;  %2843 = vmatpush.bf16.msrb.mxu0 %v4014_v40  ;;  %v3917_v17 = vld [vmem:[%s7406_s7 + $0x258] sm:$0xf]  ;;  %v3662_v61 = vor.u32 %v4727_v12, %v3661_v9  ;;  %v4335_v12 = vld [vmem:[%s7406_s7 + $0x5b8] sm:$0xf0] }
 0x301   :  { %v4791_v15 = vld [vmem:[%s7406_s7 + $0x274] sm:$0xf0]  ;;  %v2934_v26 = vadd.f32 %v2933_v28, %v2932_v39  ;;  %v4755_v39 = vld [vmem:[%s7406_s7 + $0x15c] sm:$0xf] }
 0x302   :  { %2856 = vmatpush.bf16.msrb.mxu1 %v4270_v43  ;;  %v4173_v22 = vld [vmem:[%s7406_s7 + $0x458] sm:$0xf]  ;;  %v3918_v32 = vor.u32 %v4791_v15, %v3917_v17  ;;  %v4771_v43 = vld [vmem:[%s7406_s7 + $0x1dc] sm:$0xf] }
 0x303   :  { %2831 = vmatpush.bf16.msra.mxu3 %v3726_v53  ;;  %v4855_v18 = vld [vmem:[%s7406_s7 + $0x474] sm:$0xf0]  ;;  %v2935_v54 = vrot.slane %v2934_v26, 1  ;;  %v3791_v16 = vld [vmem:[%s7406_s7 + $0x178] sm:$0xf0] }
 0x304   :  { %2869 = vmatpush.bf16.msrb.mxu2 %v4526_v45  ;;  %2844 = vmatpush.bf16.msrb.mxu0 %v3982_v55  ;;  %v4429_v19 = vld [vmem:[%s7406_s7 + $0x658] sm:$0xf]  ;;  %v4174_v36 = vor.u32 %v4855_v18, %v4173_v22  ;;  %v3855_v45 = vld [vmem:[%s7406_s7 + $0x1f8] sm:$0xf0]  ;;  %v2576_v53 = vpop.f32.mrf.mxu3  ;;  %v4082_v22 = vor.u32 %v4827_v2, %v4079_v52 }
 0x305   :  { %v4919_v20 = vld [vmem:[%s7406_s7 + $0x674] sm:$0xf0]  ;;  %v2936_v55 = vadd.f32 %v2935_v54, %v2934_v26  ;;  %v3858_v10 = vor.u32 %v4771_v43, %v3855_v45  ;;  %v2590_v57 = vadd.f32 %v2589_v21, %v2576_v53  ;;  %v4819_v18 = vld [vmem:[%s7406_s7 + $0x35c] sm:$0xf] }
 0x306   :  { %2857 = vmatpush.bf16.msrb.mxu1 %v4238_v58  ;;  %v3629_v3 = vld [vmem:[%s7406_s7 + $0x18] sm:$0xf]  ;;  %v4430_v37 = vor.u32 %v4919_v20, %v4429_v19  ;;  %v2615_v58 = vpop.f32.mrf.mxu2  ;;  %v2591_v1 = vpop.f32.mrf.mxu0  ;;  %v4047_v20 = vld [vmem:[%s7406_s7 + $0x378] sm:$0xf0] }
 0x307   :  { %v4719_v25 = vld [vmem:[%s7406_s7 + $0x34] sm:$0xf0]  ;;  %2832 = vmatpush.bf16.msra.mxu3 %v3694_v6  ;;  %v2980_v6 = vmul.f32 %v2936_v55, %v5145_v41  ;;  %v2604_v9 = vpop.f32.mrf.mxu1  ;;  %v4883_v21 = vld [vmem:[%s7406_s7 + $0x55c] sm:$0xf] }
 0x308   :  { %2870 = vmatpush.bf16.msrb.mxu2 %v4494_v59  ;;  %v3885_v27 = vld [vmem:[%s7406_s7 + $0x218] sm:$0xf]  ;;  %2845 = vmatpush.bf16.msrb.mxu0 %v3950_v8  ;;  %v3630_v49 = vor.u32 %v4719_v25, %v3629_v3  ;;  %v4763_v59 = vld [vmem:[%s7406_s7 + $0x19c] sm:$0xf]  ;;  %v2603_v8 = vadd.f32 %v2602_v33, %v2590_v57  ;;  %v4274_v57 = vor.u32 %v4875_v46, %v4271_v48 }
 0x309   :  { %v4783_v34 = vld [vmem:[%s7406_s7 + $0x234] sm:$0xf0]  ;;  %v3826_v14 = vor.u32 %v4763_v59, %v3823_v60  ;;  %v7156_v17 = vsub.f32 %v7045_v0, %v2980_v6  ;;  %v4338_v0 = vor.u32 %v4891_v4, %v4335_v12  ;;  %v4303_v3 = vld [vmem:[%s7406_s7 + $0x578] sm:$0xf0] }
 0x30a   :  { %v4141_v35 = vld [vmem:[%s7406_s7 + $0x418] sm:$0xf]  ;;  %2858 = vmatpush.bf16.msrb.mxu1 %v4206_v13  ;;  %v3886_v50 = vor.u32 %v4783_v34, %v3885_v27  ;;  %v4955_v13 = vld [vmem:[%s7406_s7 + $0x79c] sm:$0xf]  ;;  %v7158_v15 = vadd.f32 %v2615_v58, %v2603_v8  ;;  %v4306_v26 = vor.u32 %v4883_v21, %v4303_v3 }
 0x30b   :  { %v4847_v38 = vld [vmem:[%s7406_s7 + $0x434] sm:$0xf0]  ;;  %2833 = vmatpush.bf16.msra.mxu3 %v3662_v61  ;;  %v2996_v25 = vmul.f32 %v7156_v17, %v7156_v17  ;;  %v4947_v28 = vld [vmem:[%s7406_s7 + $0x75c] sm:$0xf] }
 0x30c   :  { %2871 = vmatpush.bf16.msrb.mxu2 %v4462_v7  ;;  %v4397_v40 = vld [vmem:[%s7406_s7 + $0x618] sm:$0xf]  ;;  %2846 = vmatpush.bf16.msrb.mxu0 %v3918_v32  ;;  %v4142_v47 = vor.u32 %v4847_v38, %v4141_v35  ;;  %v4591_v7 = vld [vmem:[%s7406_s7 + $0x7b8] sm:$0xf0]  ;;  %v2937_v27 = vrot.slane %v7158_v15, 4  ;;  %v2578_v32 = vpop.f32.mrf.mxu3 }
 0x30d   :  { %v4911_v42 = vld [vmem:[%s7406_s7 + $0x634] sm:$0xf0]  ;;  %v4594_v19 = vor.u32 %v4955_v13, %v4591_v7  ;;  %v4559_v61 = vld [vmem:[%s7406_s7 + $0x778] sm:$0xf0]  ;;  %v3004_v34 = vrot.slane %v2996_v25, 4 }
 0x30e   :  { %2859 = vmatpush.bf16.msrb.mxu1 %v4174_v36  ;;  %v4398_v51 = vor.u32 %v4911_v42, %v4397_v40  ;;  %v4747_v33 = vld [vmem:[%s7406_s7 + $0x11c] sm:$0xf]  ;;  %v2938_v35 = vadd.f32 %v2937_v27, %v7158_v15  ;;  %v3794_v36 = vor.u32 %v4755_v39, %v3791_v16  ;;  %v2617_v38 = vpop.f32.mrf.mxu2  ;;  %v4562_v43 = vor.u32 %v4947_v28, %v4559_v61 }
 0x30f   :  { %2834 = vmatpush.bf16.msra.mxu3 %v3630_v49  ;;  %v3759_v40 = vld [vmem:[%s7406_s7 + $0x138] sm:$0xf0]  ;;  %v3005_v44 = vadd.f32 %v3004_v34, %v2996_v25 }
 0x310   :  { %2872 = vmatpush.bf16.msrb.mxu2 %v4430_v37  ;;  %2847 = vmatpush.bf16.msrb.mxu0 %v3886_v50  ;;  %v4050_v37 = vor.u32 %v4819_v18, %v4047_v20  ;;  %v4811_v42 = vld [vmem:[%s7406_s7 + $0x31c] sm:$0xf]  ;;  %v2939_v5 = vrot.slane %v2938_v35, 2  ;;  %v2641_v50 = vpop.f32.mrf.mxu0  ;;  %v3762_v53 = vor.u32 %v4747_v33, %v3759_v40 }
 0x311   :  { %v4015_v45 = vld [vmem:[%s7406_s7 + $0x338] sm:$0xf0]  ;;  %v3006_v24 = vrot.slane %v3005_v44, 2 }
 0x312   :  { %2860 = vmatpush.bf16.msrb.mxu1 %v4142_v47  ;;  %2835 = vmatmul.bf16.vlgmr.msra.gmra.mxu3 %v6134_v23  ;;  %v4939_v54 = vld [vmem:[%s7406_s7 + $0x71c] sm:$0xf]  ;;  %v2940_v47 = vadd.f32 %v2939_v5, %v2938_v35  ;;  %v4018_v55 = vor.u32 %v4811_v42, %v4015_v45 }
 0x313   :  { %2879 = vmatpush.bf16.msrb.mxu3 %v3858_v10  ;;  %2848 = vmatmul.bf16.vlgmr.msrb.gmra.mxu0 %v6136_v29  ;;  %v4527_v49 = vld [vmem:[%s7406_s7 + $0x738] sm:$0xf0] }
 0x314   :  { %2873 = vmatpush.bf16.msrb.mxu2 %v4398_v51  ;;  %2892 = vmatpush.bf16.msra.mxu0 %v4114_v56  ;;  %v2654_v51 = vpop.f32.mrf.mxu1  ;;  %v3727_v10 = vld [vmem:[%s7406_s7 + $0xf8] sm:$0xf0]  ;;  %v4530_v58 = vor.u32 %v4939_v54, %v4527_v49  ;;  %v2941_v1 = vrot.slane %v2940_v47, 1 }
 0x315   :  { %2861 = vmatmul.bf16.vlgmr.msrb.gmra.mxu1 %v6138_v11  ;;  %v4803_v56 = vld [vmem:[%s7406_s7 + $0x2dc] sm:$0xf]  ;;  %v3730_v8 = vor.u32 %v4739_v30, %v3727_v10 }
 0x316   :  { %2905 = vmatpush.bf16.msra.mxu1 %v4370_v62  ;;  %v3983_v59 = vld [vmem:[%s7406_s7 + $0x2f8] sm:$0xf0]  ;;  %v2942_v6 = vadd.f32 %v2941_v1, %v2940_v47 }
 0x317   :  { %2874 = vmatmul.bf16.vlgmr.msrb.gmra.mxu2 %v6140_v31  ;;  %2880 = vmatpush.bf16.msrb.mxu3 %v3826_v14  ;;  %v4867_v60 = vld [vmem:[%s7406_s7 + $0x4dc] sm:$0xf]  ;;  %v3986_v9 = vor.u32 %v4803_v56, %v3983_v59 }
 0x318   :  { %2918 = vmatpush.bf16.msra.mxu2 %v4626_v63  ;;  %2893 = vmatpush.bf16.msra.mxu0 %v4082_v22  ;;  %v4239_v62 = vld [vmem:[%s7406_s7 + $0x4f8] sm:$0xf0]  ;;  %v3007_v63 = vadd.f32 %v3006_v24, %v3005_v44  ;;  %v2628_v22 = vpop.f32.mrf.mxu3  ;;  %v2643_v28 = vpop.f32.mrf.mxu0 }
 0x319   :  { %v4931_v2 = vld [vmem:[%s7406_s7 + $0x6dc] sm:$0xf]  ;;  %v4242_v7 = vor.u32 %v4867_v60, %v4239_v62  ;;  %v2642_v20 = vadd.f32 %v2641_v50, %v2628_v22 }
 0x31a   :  { %2906 = vmatpush.bf16.msra.mxu1 %v4338_v0  ;;  %v4495_v52 = vld [vmem:[%s7406_s7 + $0x6f8] sm:$0xf0]  ;;  %v3008_v4 = vrot.slane %v3007_v63, 1  ;;  %v2667_v21 = vpop.f32.mrf.mxu2 }
 0x31b   :  { %2881 = vmatpush.bf16.msrb.mxu3 %v3794_v36  ;;  %v4731_v12 = vld [vmem:[%s7406_s7 + $0x9c] sm:$0xf]  ;;  %v4498_v14 = vor.u32 %v4931_v2, %v4495_v52  ;;  %v2655_v33 = vadd.f32 %v2654_v51, %v2642_v20 }
 0x31c   :  { %2919 = vmatpush.bf16.msra.mxu2 %v4594_v19  ;;  %2894 = vmatpush.bf16.msra.mxu0 %v4050_v37  ;;  %v3695_v13 = vld [vmem:[%s7406_s7 + $0xb8] sm:$0xf0]  ;;  %v3009_v0 = vadd.f32 %v3008_v4, %v3007_v63  ;;  %v2981_v19 = vmul.f32 %v2942_v6, %v5145_v41  ;;  %v2656_v34 = vpop.f32.mrf.mxu1 }
 0x31d   :  { %v4795_v39 = vld [vmem:[%s7406_s7 + $0x29c] sm:$0xf]  ;;  %v3698_v61 = vor.u32 %v4731_v12, %v3695_v13  ;;  %v2668_v46 = vadd.f32 %v2667_v21, %v2655_v33 }
 0x31e   :  { %2907 = vmatpush.bf16.msra.mxu1 %v4306_v26  ;;  %v3951_v16 = vld [vmem:[%s7406_s7 + $0x2b8] sm:$0xf0]  ;;  %v7266_v32 = vsub.f32 %v7158_v15, %v2981_v19 }
 0x31f   :  { %2882 = vmatpush.bf16.msrb.mxu3 %v3762_v53  ;;  %v4859_v18 = vld [vmem:[%s7406_s7 + $0x49c] sm:$0xf]  ;;  %v3954_v35 = vor.u32 %v4795_v39, %v3951_v16  ;;  %v2943_v50 = vrot.slane %v2668_v46, 4 }
 0x320   :  { %2920 = vmatpush.bf16.msra.mxu2 %v4562_v43  ;;  %2895 = vmatpush.bf16.msra.mxu0 %v4018_v55  ;;  %v4207_v3 = vld [vmem:[%s7406_s7 + $0x4b8] sm:$0xf0]  ;;  %v3053_v43 = vmul.f32 %v3009_v0, %v5145_v41  ;;  %v2997_v45 = vmul.f32 %v7266_v32, %v7266_v32  ;;  %v2630_v10 = vpop.f32.mrf.mxu3 }
 0x321   :  { %v4923_v25 = vld [vmem:[%s7406_s7 + $0x69c] sm:$0xf]  ;;  %v4210_v38 = vor.u32 %v4859_v18, %v4207_v3  ;;  %v2944_v62 = vadd.f32 %v2943_v50, %v2668_v46 }
 0x322   :  { %2908 = vmatpush.bf16.msra.mxu1 %v4274_v57  ;;  %v4463_v27 = vld [vmem:[%s7406_s7 + $0x6b8] sm:$0xf0]  ;;  %v3010_v49 = vrot.slane %v2997_v45, 4  ;;  %v7313_v59 = vadd.f32 1e-05, %v3053_v43  ;;  %v2669_v63 = vpop.f32.mrf.mxu2 }
 0x323   :  { %2883 = vmatpush.bf16.msrb.mxu3 %v3730_v8  ;;  %v4723_v36 = vld [vmem:[%s7406_s7 + $0x5c] sm:$0xf]  ;;  %v4466_v40 = vor.u32 %v4923_v25, %v4463_v27  ;;  %v2945_v4 = vrot.slane %v2944_v62, 2 }
 0x324   :  { %2921 = vmatpush.bf16.msra.mxu2 %v4530_v58  ;;  %2896 = vmatpush.bf16.msra.mxu0 %v3986_v9  ;;  %v3663_v37 = vld [vmem:[%s7406_s7 + $0x78] sm:$0xf0]  ;;  %v3011_v60 = vadd.f32 %v3010_v49, %v2997_v45  ;;  %4987 = vrsqrt.f32 %v7313_v59  ;;  %vm3076_vm1 = vweird.f32 %v7313_v59 }
 0x325   :  { %v4787_v15 = vld [vmem:[%s7406_s7 + $0x25c] sm:$0xf]  ;;  %v3666_v30 = vor.u32 %v4723_v36, %v3663_v37 }
 0x326   :  { %2909 = vmatpush.bf16.msra.mxu1 %v4242_v7  ;;  %v3919_v42 = vld [vmem:[%s7406_s7 + $0x278] sm:$0xf0]  ;;  %v3012_v52 = vrot.slane %v3011_v60, 2  ;;  %v2946_v7 = vadd.f32 %v2945_v4, %v2944_v62 }
 0x327   :  { %v4851_v26 = vld [vmem:[%s7406_s7 + $0x45c] sm:$0xf]  ;;  %2884 = vmatpush.bf16.msrb.mxu3 %v3698_v61  ;;  %v3922_v24 = vor.u32 %v4787_v15, %v3919_v42 }
 0x328   :  { %2922 = vmatpush.bf16.msra.mxu2 %v4498_v14  ;;  %v4175_v48 = vld [vmem:[%s7406_s7 + $0x478] sm:$0xf0]  ;;  %2897 = vmatpush.bf16.msra.mxu0 %v3954_v35  ;;  %v3013_v13 = vadd.f32 %v3012_v52, %v3011_v60  ;;  %v2947_v22 = vrot.slane %v2946_v7, 1 }
 0x329   :  { %v4915_v44 = vld [vmem:[%s7406_s7 + $0x65c] sm:$0xf]  ;;  %v4178_v53 = vor.u32 %v4851_v26, %v4175_v48 }
 0x32a   :  { %v4431_v5 = vld [vmem:[%s7406_s7 + $0x678] sm:$0xf0]  ;;  %2910 = vmatpush.bf16.msra.mxu1 %v4210_v38  ;;  %v3014_v14 = vrot.slane %v3013_v13, 1  ;;  %v2948_v16 = vadd.f32 %v2947_v22, %v2946_v7  ;;  %v4988_v18 = vpop.eup %4987 }
 0x32b   :  { %v4715_v54 = vld [vmem:[%s7406_s7 + $0x1c] sm:$0xf]  ;;  %v4434_v55 = vor.u32 %v4915_v44, %v4431_v5  ;;  %2885 = vmatpush.bf16.msrb.mxu3 %v3666_v30  ;;  %v3071_v3 = vmul.f32 %v4988_v18, %v7313_v59  ;;  %vm3077_vm13 = vweird.f32 %v4988_v18 }
 0x32c   :  { %v3631_v47 = vld [vmem:[%s7406_s7 + $0x38] sm:$0xf0]  ;;  %2923 = vmatpush.bf16.msra.mxu2 %v4466_v40  ;;  %2898 = vmatpush.bf16.msra.mxu0 %v3922_v24  ;;  %v3015_v39 = vadd.f32 %v3014_v14, %v3013_v13  ;;  %v2982_v19 = vmul.f32 %v2948_v16, %v5145_v41  ;;  %vm3078_vm2 = vmor %vm3076_vm1, %vm3077_vm13 }
 0x32d   :  { %v4779_v51 = vld [vmem:[%s7406_s7 + $0x21c] sm:$0xf]  ;;  %v3634_v6 = vor.u32 %v4715_v54, %v3631_v47  ;;  %v3072_v28 = vmul.f32 %v4988_v18, %v3071_v3 }
 0x32e   :  { %v3887_v56 = vld [vmem:[%s7406_s7 + $0x238] sm:$0xf0]  ;;  %2911 = vmatpush.bf16.msra.mxu1 %v4178_v53  ;;  %v3054_v0 = vmul.f32 %v3015_v39, %v5145_v41  ;;  %v7328_v21 = vsub.f32 %v2668_v46, %v2982_v19 }
 0x32f   :  { %v4843_v57 = vld [vmem:[%s7406_s7 + $0x41c] sm:$0xf]  ;;  %v3890_v8 = vor.u32 %v4779_v51, %v3887_v56  ;;  %2886 = vmatpush.bf16.msrb.mxu3 %v3634_v6  ;;  %v3073_v34 = vmul.f32 0.5, %v3072_v28 }
 0x330   :  { %v4143_v58 = vld [vmem:[%s7406_s7 + $0x438] sm:$0xf0]  ;;  %2924 = vmatpush.bf16.msra.mxu2 %v4434_v55  ;;  %v3063_v20 = vadd.f32 1e-05, %v3054_v0  ;;  %v2693_v25 = vpop.f32.mrf.mxu0 }
 0x331   :  { %v4907_v1 = vld [vmem:[%s7406_s7 + $0x61c] sm:$0xf]  ;;  %v4146_v9 = vor.u32 %v4843_v57, %v4143_v58  ;;  %2899 = vmatpush.bf16.msra.mxu0 %v3890_v8  ;;  %v3074_v26 = vsub.f32 1.5, %v3073_v34 }
 0x332   :  { %v4399_v2 = vld [vmem:[%s7406_s7 + $0x638] sm:$0xf0]  ;;  %2887 = vmatmul.bf16.vlgmr.msrb.gmra.mxu3 %v6134_v23  ;;  %4989 = vrsqrt.f32 %v3063_v20  ;;  %v2998_v23 = vmul.f32 %v7328_v21, %v7328_v21  ;;  %v2706_v27 = vpop.f32.mrf.mxu1  ;;  %vm3086_vm14 = vweird.f32 %v3063_v20 }
 0x333   :  { %v4402_v12 = vor.u32 %v4907_v1, %v4399_v2  ;;  %2912 = vmatpush.bf16.msra.mxu1 %v4146_v9  ;;  %v3075_v5 = vmul.f32 %v4988_v18, %v3074_v26 }
 0x334   :  { %2900 = vmatmul.bf16.vlgmr.msra.gmra.mxu0 %v6136_v29  ;;  %v3016_v29 = vrot.slane %v2998_v23, 4 }
 0x335   :  { %2925 = vmatpush.bf16.msra.mxu2 %v4402_v12  ;;  %v3079_v55 = vsel %vm3078_vm2, %v4988_v18, %v3075_v5 }
 0x336   :  { %2913 = vmatmul.bf16.vlgmr.msra.gmra.mxu1 %v6138_v11  ;;  %v3017_v33 = vadd.f32 %v3016_v29, %v2998_v23  ;;  %v2680_v11 = vpop.f32.mrf.mxu3 }
 0x337   :  { %v2694_v36 = vadd.f32 %v2693_v25, %v2680_v11 }
 0x338   :  { %2926 = vmatmul.bf16.vlgmr.msra.gmra.mxu2 %v6140_v31  ;;  %v4990_v61 = vpop.eup %4989  ;;  %v2695_v38 = vpop.f32.mrf.mxu0  ;;  %v3018_v40 = vrot.slane %v3017_v33, 2 }
 0x339   :  { %v3081_v35 = vmul.f32 %v4990_v61, %v3063_v20  ;;  %v2707_v15 = vadd.f32 %v2706_v27, %v2694_v36  ;;  %vm3087_vm12 = vweird.f32 %v4990_v61 }
 0x33a   :  { %v2719_v31 = vpop.f32.mrf.mxu2  ;;  %v2708_v42 = vpop.f32.mrf.mxu1  ;;  %v3019_v48 = vadd.f32 %v3018_v40, %v3017_v33  ;;  %vm3088_vm15 = vmor %vm3086_vm14, %vm3087_vm12 }
 0x33b   :  { %v3082_v37 = vmul.f32 %v4990_v61, %v3081_v35  ;;  %v2720_v45 = vadd.f32 %v2719_v31, %v2707_v15 }
 0x33c   :  { %v3020_v51 = vrot.slane %v3019_v48, 1 }
 0x33d   :  { %v3083_v43 = vmul.f32 0.5, %v3082_v37  ;;  %v2949_v44 = vrot.slane %v2720_v45, 4 }
 0x33e   :  { %v2682_v49 = vpop.f32.mrf.mxu3  ;;  %v3021_v57 = vadd.f32 %v3020_v51, %v3019_v48 }
 0x33f   :  { %v3084_v46 = vsub.f32 1.5, %v3083_v43  ;;  %v2950_v50 = vadd.f32 %v2949_v44, %v2720_v45 }
 0x340   :  { %v3055_v62 = vmul.f32 %v3021_v57, %v5145_v41 }
 0x341   :  { %v3085_v54 = vmul.f32 %v4990_v61, %v3084_v46  ;;  %v2951_v53 = vrot.slane %v2950_v50, 2 }
 0x342   :  { %v2721_v30 = vpop.f32.mrf.mxu2  ;;  %v3064_v59 = vadd.f32 1e-05, %v3055_v62 }
 0x343   :  { %v3089_v24 = vsel %vm3088_vm15, %v4990_v61, %v3085_v54  ;;  %v2952_v10 = vadd.f32 %v2951_v53, %v2950_v50  ;;  %vm3168_vm15 = vcmask 1044484  }
 0x344   :  { %v3158_v47 = vrot.slane %v3089_v24, 7  ;;  %4991 = vrsqrt.f32 %v3064_v59  ;;  %vm3096_vm3 = vweird.f32 %v3064_v59 }
 0x345   :  { %v2953_v58 = vrot.slane %v2952_v10, 1 }
 0x346   :  { %v7335_v56 = vsel %vm308_vm10, %v3079_v55, %v3158_v47 }
 0x347   :  { %v2954_v60 = vadd.f32 %v2953_v58, %v2952_v10 }
 0x349   :  { %v2983_v63 = vmul.f32 %v2954_v60, %v5145_v41 }
 0x34a   :  { %v4992_v39 = vpop.eup %4991 }
 0x34b   :  { %v7339_v1 = vsub.f32 %v2720_v45, %v2983_v63  ;;  %v3091_v3 = vmul.f32 %v4992_v39, %v3064_v59  ;;  %vm3097_vm10 = vweird.f32 %v4992_v39 }
 0x34c   :  { %vm3098_vm5 = vmor %vm3096_vm3, %vm3097_vm10 }
 0x34d   :  { %v2999_v2 = vmul.f32 %v7339_v1, %v7339_v1  ;;  %v3092_v33 = vmul.f32 %v4992_v39, %v3091_v3 }
 0x34f   :  { %v3022_v4 = vrot.slane %v2999_v2, 4  ;;  %v3093_v11 = vmul.f32 0.5, %v3092_v33 }
 0x350   :  { %v2745_v52 = vpop.f32.mrf.mxu0 }
 0x351   :  { %v3023_v8 = vadd.f32 %v3022_v4, %v2999_v2  ;;  %v3094_v38 = vsub.f32 1.5, %v3093_v11 }
 0x352   :  { %v2758_v6 = vpop.f32.mrf.mxu1 }
 0x353   :  { %v3024_v9 = vrot.slane %v3023_v8, 2  ;;  %v3095_v43 = vmul.f32 %v4992_v39, %v3094_v38 }
 0x355   :  { %v2732_v12 = vpop.f32.mrf.mxu3  ;;  %v3025_v13 = vadd.f32 %v3024_v9, %v3023_v8  ;;  %v3099_v49 = vsel %vm3098_vm5, %v4992_v39, %v3095_v43  ;;  %vm3170_vm5 = vcmask 1046534  }
 0x356   :  { %v2746_v7 = vadd.f32 %v2745_v52, %v2732_v12  ;;  %v3159_v24 = vrot.slane %v3099_v49, 6 }
 0x357   :  { %v3026_v16 = vrot.slane %v3025_v13, 1 }
 0x358   :  { %v2747_v22 = vpop.f32.mrf.mxu0  ;;  %v2759_v18 = vadd.f32 %v2758_v6, %v2746_v7 }
 0x359   :  { %v3027_v19 = vadd.f32 %v3026_v16, %v3025_v13 }
 0x35a   :  { %v2771_v14 = vpop.f32.mrf.mxu2  ;;  %v2760_v0 = vpop.f32.mrf.mxu1 }
 0x35b   :  { %v2772_v20 = vadd.f32 %v2771_v14, %v2759_v18  ;;  %v3056_v23 = vmul.f32 %v3027_v19, %v5145_v41 }
 0x35d   :  { %v2955_v25 = vrot.slane %v2772_v20, 4  ;;  %v2734_v29 = vpop.f32.mrf.mxu3  ;;  %v3065_v27 = vadd.f32 1e-05, %v3056_v23 }
 0x35f   :  { %v2956_v28 = vadd.f32 %v2955_v25, %v2772_v20  ;;  %4993 = vrsqrt.f32 %v3065_v27  ;;  %vm3106_vm6 = vweird.f32 %v3065_v27 }
 0x361   :  { %v2957_v34 = vrot.slane %v2956_v28, 2 }
 0x362   :  { %v2773_v61 = vpop.f32.mrf.mxu2 }
 0x363   :  { %v2958_v35 = vadd.f32 %v2957_v34, %v2956_v28 }
 0x365   :  { %v2959_v36 = vrot.slane %v2958_v35, 1  ;;  %v4994_v31 = vpop.eup %4993 }
 0x366   :  { %v3101_v40 = vmul.f32 %v4994_v31, %v3065_v27  ;;  %vm3107_vm4 = vweird.f32 %v4994_v31 }
 0x367   :  { %v2960_v37 = vadd.f32 %v2959_v36, %v2958_v35  ;;  %vm3108_vm7 = vmor %vm3106_vm6, %vm3107_vm4  ;;  %vm3172_vm6 = vcmask 1045508  }
 0x368   :  { %v3102_v42 = vmul.f32 %v4994_v31, %v3101_v40 }
 0x369   :  { %v2984_v15 = vmul.f32 %v2960_v37, %v5145_v41 }
 0x36a   :  { %v3103_v45 = vmul.f32 0.5, %v3102_v42 }
 0x36b   :  { %v7345_v26 = vsub.f32 %v2772_v20, %v2984_v15 }
 0x36c   :  { %v3104_v48 = vsub.f32 1.5, %v3103_v45 }
 0x36d   :  { %v3000_v46 = vmul.f32 %v7345_v26, %v7345_v26 }
 0x36e   :  { %v3105_v50 = vmul.f32 %v4994_v31, %v3104_v48 }
 0x36f   :  { %v3028_v5 = vrot.slane %v3000_v46, 4 }
 0x370   :  { %v2797_v44 = vpop.f32.mrf.mxu0  ;;  %v3109_v30 = vsel %vm3108_vm7, %v4994_v31, %v3105_v50  ;;  %vm3174_vm7 = vcmask 1043456  }
 0x371   :  { %v3160_v47 = vrot.slane %v3109_v30, 5  ;;  %v3029_v51 = vadd.f32 %v3028_v5, %v3000_v46 }
 0x372   :  { %v2810_v54 = vpop.f32.mrf.mxu1 }
 0x373   :  { %v3166_v57 = vsel %vm937_vm8, %v3159_v24, %v3160_v47  ;;  %v3030_v62 = vrot.slane %v3029_v51, 2 }
 0x374   :  { %v7352_v60 = vsel %vm939_vm11, %v7335_v56, %v3166_v57 }
 0x375   :  { %v2784_v53 = vpop.f32.mrf.mxu3  ;;  %v3031_v52 = vadd.f32 %v3030_v62, %v3029_v51 }
 0x376   :  { %v2798_v55 = vadd.f32 %v2797_v44, %v2784_v53 }
 0x377   :  { %v3032_v12 = vrot.slane %v3031_v52, 1 }
 0x378   :  { %v2799_v58 = vpop.f32.mrf.mxu0  ;;  %v2811_v63 = vadd.f32 %v2810_v54, %v2798_v55 }
 0x379   :  { %v3033_v14 = vadd.f32 %v3032_v12, %v3031_v52 }
 0x37a   :  { %v2823_v10 = vpop.f32.mrf.mxu2  ;;  %v2812_v59 = vpop.f32.mrf.mxu1 }
 0x37b   :  { %v2824_v2 = vadd.f32 %v2823_v10, %v2811_v63  ;;  %v3057_v16 = vmul.f32 %v3033_v14, %v5145_v41 }
 0x37d   :  { %v2961_v4 = vrot.slane %v2824_v2, 4  ;;  %v2786_v6 = vpop.f32.mrf.mxu3  ;;  %v3066_v0 = vadd.f32 1e-05, %v3057_v16 }
 0x37f   :  { %v2962_v8 = vadd.f32 %v2961_v4, %v2824_v2  ;;  %4995 = vrsqrt.f32 %v3066_v0  ;;  %vm3116_vm9 = vweird.f32 %v3066_v0 }
 0x381   :  { %v2963_v13 = vrot.slane %v2962_v8, 2 }
 0x382   :  { %v2825_v9 = vpop.f32.mrf.mxu2 }
 0x383   :  { %v2964_v7 = vadd.f32 %v2963_v13, %v2962_v8 }
 0x385   :  { %v2965_v22 = vrot.slane %v2964_v7, 1  ;;  %v4996_v35 = vpop.eup %4995 }
 0x386   :  { %v3111_v40 = vmul.f32 %v4996_v35, %v3066_v0  ;;  %vm3117_vm8 = vweird.f32 %v4996_v35 }
 0x387   :  { %v2966_v39 = vadd.f32 %v2965_v22, %v2964_v7  ;;  %vm3118_vm12 = vmor %vm3116_vm9, %vm3117_vm8  ;;  %vm3245_vm8 = vcmask 523268  }
 0x388   :  { %v3112_v44 = vmul.f32 %v4996_v35, %v3111_v40  ;;  %vm3246_vm9 = vmor %vm3245_vm8, %vm3174_vm7 }
 0x389   :  { %v2985_v56 = vmul.f32 %v2966_v39, %v5145_v41 }
 0x38a   :  { %v3113_v49 = vmul.f32 0.5, %v3112_v44 }
 0x38b   :  { %v7356_v18 = vsub.f32 %v2824_v2, %v2985_v56 }
 0x38c   :  { %v3114_v47 = vsub.f32 1.5, %v3113_v49 }
 0x38d   :  { %v3001_v19 = vmul.f32 %v7356_v18, %v7356_v18 }
 0x38e   :  { %v3115_v57 = vmul.f32 %v4996_v35, %v3114_v47 }
 0x38f   :  { %v3034_v3 = vrot.slane %v3001_v19, 4 }
 0x390   :  { %v2849_v20 = vpop.f32.mrf.mxu0  ;;  %v3119_v52 = vsel %vm3118_vm12, %v4996_v35, %v3115_v57 }
 0x391   :  { %v3035_v25 = vadd.f32 %v3034_v3, %v3001_v19  ;;  %v3161_v9 = vrot.slane %v3119_v52, 4 }
 0x392   :  { %v2862_v23 = vpop.f32.mrf.mxu1 }
 0x393   :  { %v3036_v29 = vrot.slane %v3035_v25, 2 }
 0x395   :  { %v2836_v27 = vpop.f32.mrf.mxu3  ;;  %v3037_v28 = vadd.f32 %v3036_v29, %v3035_v25 }
 0x396   :  { %v2850_v61 = vadd.f32 %v2849_v20, %v2836_v27 }
 0x397   :  { %v3038_v11 = vrot.slane %v3037_v28, 1 }
 0x398   :  { %v2851_v34 = vpop.f32.mrf.mxu0  ;;  %v2863_v36 = vadd.f32 %v2862_v23, %v2850_v61 }
 0x399   :  { %v3039_v37 = vadd.f32 %v3038_v11, %v3037_v28 }
 0x39a   :  { %v2875_v33 = vpop.f32.mrf.mxu2  ;;  %v2864_v31 = vpop.f32.mrf.mxu1 }
 0x39b   :  { %v2876_v38 = vadd.f32 %v2875_v33, %v2863_v36  ;;  %v3058_v15 = vmul.f32 %v3039_v37, %v5145_v41 }
 0x39d   :  { %v2967_v42 = vrot.slane %v2876_v38, 4  ;;  %v2838_v43 = vpop.f32.mrf.mxu3  ;;  %v3067_v45 = vadd.f32 1e-05, %v3058_v15 }
 0x39f   :  { %v2968_v46 = vadd.f32 %v2967_v42, %v2876_v38  ;;  %4997 = vrsqrt.f32 %v3067_v45  ;;  %vm3126_vm13 = vweird.f32 %v3067_v45 }
 0x3a1   :  { %v2969_v5 = vrot.slane %v2968_v46, 2 }
 0x3a2   :  { %v2877_v48 = vpop.f32.mrf.mxu2 }
 0x3a3   :  { %v2970_v54 = vadd.f32 %v2969_v5, %v2968_v46 }
 0x3a5   :  { %v2971_v50 = vrot.slane %v2970_v54, 1  ;;  %v4998_v30 = vpop.eup %4997 }
 0x3a6   :  { %v3121_v51 = vmul.f32 %v4998_v30, %v3067_v45  ;;  %vm3127_vm11 = vweird.f32 %v4998_v30 }
 0x3a7   :  { %v2972_v24 = vadd.f32 %v2971_v50, %v2970_v54  ;;  %vm3128_vm14 = vmor %vm3126_vm13, %vm3127_vm11 }
 0x3a8   :  { %v3122_v55 = vmul.f32 %v4998_v30, %v3121_v51 }
 0x3a9   :  { %v2986_v53 = vmul.f32 %v2972_v24, %v5145_v41 }
 0x3aa   :  { %v3123_v58 = vmul.f32 0.5, %v3122_v55 }
 0x3ab   :  { %v7362_v10 = vsub.f32 %v2876_v38, %v2986_v53 }
 0x3ac   :  { %v3124_v59 = vsub.f32 1.5, %v3123_v58 }
 0x3ad   :  { %v3002_v62 = vmul.f32 %v7362_v10, %v7362_v10 }
 0x3ae   :  { %v3125_v4 = vmul.f32 %v4998_v30, %v3124_v59 }
 0x3af   :  { %v3040_v6 = vrot.slane %v3002_v62, 4 }
 0x3b0   :  { %v3129_v8 = vsel %vm3128_vm14, %v4998_v30, %v3125_v4 }
 0x3b1   :  { %v2901_v63 = vpop.f32.mrf.mxu0  ;;  %v3162_v12 = vrot.slane %v3129_v8, 3  ;;  %v3041_v7 = vadd.f32 %v3040_v6, %v3002_v62  ;;  %v4627_v6 = vld [vmem:[%s7407_s8 + $0x1] ss:$2 sm:$0xff]  ;;  %v3061_v8 = vld [vmem:[%s7407_s8] ss:$2 sm:$0xff]  ;;  %s5030_s8 = smov [#allocation2]  }
 0x3b2   :  { %s3253_s26 = sshll.u32 %s5030_s8, 4  ;;  %s3254_s26 = int_to_ptr.vmem [resolvable:$true] %s3253_s26 }
 0x3b3   :  { %v2914_v2 = vpop.f32.mrf.mxu1  ;;  %v7366_v39 = vsel %vm3168_vm15, %v3161_v9, %v3162_v12  ;;  %v3042_v19 = vrot.slane %v3041_v7, 2 }
 0x3b5   :  { %v2888_v13 = vpop.f32.mrf.mxu3  ;;  %v3043_v29 = vadd.f32 %v3042_v19, %v3041_v7  ;;  %v3212_v7 = vperm.slane %v4627_v6, 6  ;;  %v3209_v19 = vperm.slane %v4627_v6, 3 }
 0x3b6   :  { %v2902_v14 = vadd.f32 %v2901_v63, %v2888_v13 }
 0x3b7   :  { %v3044_v33 = vrot.slane %v3043_v29, 1 }
 0x3b8   :  { %v2915_v56 = vadd.f32 %v2914_v2, %v2902_v14  ;;  %v3213_v14 = vperm.slane %v4627_v6, 7 }
 0x3b9   :  { %v2903_v16 = vpop.f32.mrf.mxu0  ;;  %v3045_v11 = vadd.f32 %v3044_v33, %v3043_v29 }
 0x3ba   :  { %v3206_v16 = vperm.slane %v4627_v6, 0 }
 0x3bb   :  { %v2927_v22 = vpop.f32.mrf.mxu2  ;;  %v2916_v0 = vpop.f32.mrf.mxu1  ;;  %v3059_v37 = vmul.f32 %v3045_v11, %v5145_v41 }
 0x3bc   :  { %v2928_v20 = vadd.f32 %v2927_v22, %v2915_v56  ;;  %v3207_v56 = vperm.slane %v4627_v6, 1  ;;  %v3208_v0 = vperm.slane %v4627_v6, 2 }
 0x3bd   :  { %v2890_v25 = vpop.f32.mrf.mxu3  ;;  %v3068_v15 = vadd.f32 1e-05, %v3059_v37 }
 0x3be   :  { %v2973_v3 = vsel %vm68_vm0, %v2928_v20, 0.0 }
 0x3bf   :  { %v2974_v23 = vrot.slane %v2973_v3, 4  ;;  %4999 = vrsqrt.f32 %v3068_v15  ;;  %vm3136_vm1 = vweird.f32 %v3068_v15 }
 0x3c1   :  { %v2975_v28 = vadd.f32 %v2974_v23, %v2973_v3  ;;  %v3211_v3 = vperm.slane %v4627_v6, 5 }
 0x3c3   :  { %v2929_v27 = vpop.f32.mrf.mxu2  ;;  %v2976_v61 = vrot.slane %v2975_v28, 2 }
 0x3c5   :  { %v2977_v34 = vadd.f32 %v2976_v61, %v2975_v28  ;;  %v5000_v44 = vpop.eup %4999 }
 0x3c6   :  { %v3131_v49 = vmul.f32 %v5000_v44, %v3068_v15 }
 0x3c7   :  { %v2978_v35 = vrot.slane %v2977_v34, 1 }
 0x3c8   :  { %v3132_v24 = vmul.f32 %v5000_v44, %v3131_v49 }
 0x3c9   :  { %v2979_v36 = vadd.f32 %v2978_v35, %v2977_v34 }
 0x3ca   :  { %v3133_v47 = vmul.f32 0.5, %v3132_v24 }
 0x3cb   :  { %v2987_v31 = vmul.f32 %v2979_v36, %v5145_v41 }
 0x3cc   :  { %v3134_v53 = vsub.f32 1.5, %v3133_v47 }
 0x3cd   :  { %v7371_v38 = vsub.f32 %v2928_v20, %v2987_v31  ;;  %v3210_v20 = vperm.slane %v4627_v6, 4 }
 0x3ce   :  { %v3135_v58 = vmul.f32 %v5000_v44, %v3134_v53 }
 0x3cf   :  { %v3003_v40 = vmul.f32 %v7371_v38, %v7371_v38 }
 0x3d1   :  { %v3046_v42 = vsel %vm68_vm0, %v3003_v40, 0.0  ;;  %vm3137_vm0 = vweird.f32 %v5000_v44 }
 0x3d2   :  { %v3047_v43 = vrot.slane %v3046_v42, 4  ;;  %vm3138_vm10 = vmor %vm3136_vm1, %vm3137_vm0 }
 0x3d3   :  { %v3139_v59 = vsel %vm3138_vm10, %v5000_v44, %v3135_v58 }
 0x3d4   :  { %v3048_v45 = vadd.f32 %v3047_v43, %v3046_v42  ;;  %v3163_v52 = vrot.slane %v3139_v59, 2 }
 0x3d6   :  { %v3049_v46 = vrot.slane %v3048_v45, 2 }
 0x3d8   :  { %v3050_v48 = vadd.f32 %v3049_v46, %v3048_v45 }
 0x3da   :  { %v3051_v5 = vrot.slane %v3050_v48, 1 }
 0x3dc   :  { %v3052_v54 = vadd.f32 %v3051_v5, %v3050_v48 }
 0x3de   :  { %v3060_v50 = vmul.f32 %v3052_v54, %v5145_v41 }
 0x3e0   :  { %v3069_v30 = vadd.f32 1e-05, %v3060_v50 }
 0x3e2   :  { %5001 = vrsqrt.f32 %v3069_v30  ;;  %vm3146_vm3 = vweird.f32 %v3069_v30 }
 0x3e8   :  { %v5002_v51 = vpop.eup %5001 }
 0x3e9   :  { %v3141_v55 = vmul.f32 %v5002_v51, %v3069_v30  ;;  %vm3147_vm2 = vweird.f32 %v5002_v51 }
 0x3ea   :  { %vm3148_vm4 = vmor %vm3146_vm3, %vm3147_vm2 }
 0x3eb   :  { %v3142_v57 = vmul.f32 %v5002_v51, %v3141_v55 }
 0x3ed   :  { %v3143_v62 = vmul.f32 0.5, %v3142_v57 }
 0x3ef   :  { %v3144_v63 = vsub.f32 1.5, %v3143_v62 }
 0x3f1   :  { %v3145_v2 = vmul.f32 %v5002_v51, %v3144_v63 }
 0x3f3   :  { %v3149_v41 = vsel %vm3148_vm4, %v5002_v51, %v3145_v2 }
 0x3f4   :  { %v3164_v4 = vrot.slane %v3149_v41, 1 }
 0x3f6   :  { %v3171_v9 = vsel %vm3170_vm5, %v3163_v52, %v3164_v4 }
 0x3f7   :  { %v3173_v12 = vsel %vm3172_vm6, %v7366_v39, %v3171_v9 }
 0x3f8   :  { %v3175_v13 = vsel %vm3174_vm7, %v7352_v60, %v3173_v12 }
 0x3f9   :  { %v3177_v22 = vmul.f32 %v3175_v13, %v3061_v8 }
 0x3fb   :  { %v3185_v23 = vperm.slane %v3177_v22, 6  ;;  %v3186_v25 = vperm.slane %v3177_v22, 7  ;;  %v3179_v29 = vperm.slane %v3177_v22, 0  ;;  %v3180_v27 = vperm.slane %v3177_v22, 1 }
 0x3fc   :  { %v3181_v28 = vperm.slane %v3177_v22, 2  ;;  %v3182_v61 = vperm.slane %v3177_v22, 3  ;;  %v3183_v39 = vperm.slane %v3177_v22, 4  ;;  %v3184_v33 = vperm.slane %v3177_v22, 5 }
 0x3fd   :  { %v3201_v60 = vmul.f32 %v3185_v23, %v7362_v10  ;;  %v3202_v34 = vmul.f32 %v3186_v25, %v7371_v38  ;;  %v3195_v35 = vmul.f32 %v3179_v29, %v7156_v17  ;;  %v3196_v11 = vmul.f32 %v3180_v27, %v7266_v32 }
 0x3fe   :  { %v3197_v36 = vmul.f32 %v3181_v28, %v7328_v21  ;;  %v3198_v31 = vmul.f32 %v3182_v61, %v7339_v1  ;;  %v3199_v37 = vmul.f32 %v3183_v39, %v7345_v26  ;;  %v3200_v40 = vmul.f32 %v3184_v33, %v7356_v18 }
 0x3ff   :  { %v3228_v15 = vadd.f32 %v3212_v7, %v3201_v60  ;;  %v3229_v42 = vadd.f32 %v3213_v14, %v3202_v34  ;;  %v3222_v43 = vadd.f32 %v3206_v16, %v3195_v35  ;;  %v3223_v45 = vadd.f32 %v3207_v56, %v3196_v11 }
 0x400   :  { %v3224_v46 = vadd.f32 %v3208_v0, %v3197_v36  ;;  %v3225_v10 = vadd.f32 %v3209_v19, %v3198_v31  ;;  %v3226_v48 = vadd.f32 %v3210_v20, %v3199_v37  ;;  %v3227_v38 = vadd.f32 %v3211_v3, %v3200_v40 }
 0x401   :  { %v3236_v44 = vmax.f32 %v3228_v15, 0.0  ;;  %v3237_v17 = vmax.f32 %v3229_v42, 0.0  ;;  %v3230_v5 = vmax.f32 %v3222_v43, 0.0  ;;  %v3231_v32 = vmax.f32 %v3223_v45, 0.0 }
 0x402   :  { %v3232_v21 = vmax.f32 %v3224_v46, 0.0  ;;  %v3233_v1 = vmax.f32 %v3225_v10, 0.0  ;;  %v3234_v26 = vmax.f32 %v3226_v48, 0.0  ;;  %v3235_v54 = vmax.f32 %v3227_v38, 0.0 }
 0x403   :  { %v3241_v18 = vpack.c.bf16 %v3237_v17, %v3236_v44  ;;  %v3238_v49 = vpack.c.bf16 %v3231_v32, %v3230_v5 }
 0x404   :  { %v3239_v50 = vpack.c.bf16 %v3233_v1, %v3232_v21  ;;  %v3240_v30 = vpack.c.bf16 %v3235_v54, %v3234_v26 }
 0x405   :  { %3247 = vst.msk [vmem:[#allocation2 + $0x18] sm:$0xff] %vm3246_vm9, %v3241_v18 }
 0x406   :  { %3242 = vst [vmem:[#allocation2] sm:$0xff] %v3238_v49 }
 0x407   :  { %3243 = vst [vmem:[#allocation2 + $0x8] sm:$0xff] %v3239_v50 }
 0x408   :  { %3244 = vst [vmem:[#allocation2 + $0x10] sm:$0xff] %v3240_v30 }
 0x409   :  { %3258 = dma.vmem_to_hbm [thread:$0]  %s3254_s26, 512, %s3256_s29, [#allocation3]  }
 0x40a   :  { %5027 = dma.done.wait [#allocation3], 512  }
 0x40b   :  { %5028 = vsyncadd [#allocation3], 4294966784 }
 0x40c   :  { %3263 = vsyncpa [#allocation3], 1 }

</bundles_post_ra>
